<compile_context>
chip_gen: v7x
topology: tpu7x:2x2x1
jax: 0.10.0
libtpu: 0.0.40
codegen_flags: <defaults>
</compile_context>

<pallas_src>
import functools

import jax
import jax.numpy as jnp
from jax import lax
from jax.experimental import pallas as pl
from jax.experimental.pallas import tpu as pltpu

STATIC_INPUT_DIM = 7
STATIC_INPUT_PAD = 8       # feature/K dim padded to a sublane multiple
STATIC_HIDDEN_DIM = 64
ODE_HIDDEN_DIM = 64
ENC_HIDDEN = 128
INJ_WIDTH = 0.001
N_SUB = 8                  # fixed RK4 substeps per output interval


def _softplus(x):
    # numerically stable softplus, matches torch.nn.Softplus semantics
    return jnp.maximum(x, 0.0) + jnp.log1p(jnp.exp(-jnp.abs(x)))


def neural_ode_kernel(
    scal_ref,          # SMEM (3,)   [amt, II, inj_effect_scale]
    t_ref,             # SMEM (T,)   output times
    x_ref,             # VMEM (Bt, 8)          padded static features
    w1_ref, b1_ref,    # VMEM (8,128), (1,128) static_encoder layer 1 (K padded)
    w2_ref, b2_ref,    # VMEM (128,64), (1,64) static_encoder layer 2
    wi_ref, bi_ref,    # VMEM (64,64), (1,64)  initial_state_layer
    woa_ref,           # VMEM (64,64)  ODE net L1 block acting on state
    wob_ref,           # VMEM (64,64)  ODE net L1 block acting on static_embed
    wot_ref,           # VMEM (1,64)   ODE net L1 row acting on the time feature
    bo1_ref,           # VMEM (1,64)   ODE net L1 bias
    wo2_ref, bo2_ref,  # VMEM (64,64), (1,64)  ODE net L2
    wr_ref, br_ref,    # VMEM (1,64), (1,1)    readout (row form)
    wcp_ref, bcp_ref,  # VMEM (1,64), (1,1)    initial_cp (row form)
    o_ref,             # VMEM OUT (Bt, T)
    *, dot_dtype=jnp.float32,
):
    n_t = o_ref.shape[1]

    # ---- dosing scalars (batch means over the real batch, from the wrapper)
    #      and folded constants ----
    amt = scal_ref[0]
    ii = scal_ref[1]
    inj_scale = scal_ref[2]
    inv_ii = 1.0 / ii
    inj_amp = inj_scale * amt
    inv_two_w2 = jnp.float32(1.0 / (2.0 * INJ_WIDTH * INJ_WIDTH))

    x = x_ref[...]                                  # (Bt, 8)

    # ---- static encoder: Linear(7,128) -> ReLU -> Linear(128,64) -> ReLU ----
    h1 = jnp.maximum(
        jnp.dot(x, w1_ref[...], preferred_element_type=jnp.float32) + b1_ref[...], 0.0)
    se = jnp.maximum(
        jnp.dot(h1, w2_ref[...], preferred_element_type=jnp.float32) + b2_ref[...], 0.0)

    # ---- initial cp (VPU mul + XLU lane reduce; no N=1 MXU matmul) ----
    init_cp = _softplus(
        jnp.sum(se * wcp_ref[...], axis=-1, keepdims=True) + bcp_ref[...])   # (Bt,1)

    # ---- initial ODE state ----
    h = jnp.dot(se, wi_ref[...], preferred_element_type=jnp.float32) + bi_ref[...]  # (Bt,64)

    # ---- hoisted, h-independent pieces of the ODE vector field ----
    woa = woa_ref[...].astype(dot_dtype)            # (64,64) in dot dtype
    wo2 = wo2_ref[...].astype(dot_dtype)
    pre = jnp.dot(se, wob_ref[...], preferred_element_type=jnp.float32) + bo1_ref[...]  # (Bt,64)
    wot_row = wot_ref[...]                          # (1,64)  -- NOT broadcast to (Bt,64)
    bo2_row = bo2_ref[...]                          # (1,64)
    wr_row = wr_ref[...]                            # (1,64)
    br = br_ref[...]                                # (1,1)

    def make_bias(tv):
        # Time-only terms, kept as (1,64) rows (sublane-broadcast in the add):
        # layer-1 time-feature column and layer-2 bias + Gaussian injection.
        rem = tv - jnp.trunc(tv * inv_ii) * ii       # fmod(t, II), trunc-style
        inj = inj_amp * jnp.exp(-(rem * rem) * inv_two_w2)
        return tv * wot_row, bo2_row + inj

    def odef(hh, b1_row, b2_row):
        z1 = jnp.tanh(
            jnp.dot(hh.astype(dot_dtype), woa, preferred_element_type=jnp.float32)
            + pre + b1_row)
        return (jnp.dot(z1.astype(dot_dtype), wo2, preferred_element_type=jnp.float32)
                + b2_row)

    def readout(hh):
        # (64 -> 1) readout on VPU + XLU lane reduce.
        return _softplus(jnp.sum(hh * wr_row, axis=-1, keepdims=True) + br) + init_cp

    # column selector for lane-dense output accumulation (hoisted)
    col_idx = lax.broadcasted_iota(jnp.int32, (1, n_t), 1)

    # h(t[0]) = h0 -> column 0
    out0 = jnp.where(col_idx == 0, readout(h), jnp.float32(0.0))     # (Bt, T)

    # bias at t[0]; reused as the start-of-substep bias of the first substep
    b1a0, b2a0 = make_bias(t_ref[0])

    def interval_body(k, carry):
        hh, out, b1a, b2a = carry
        t_prev = t_ref[k - 1]
        t_cur = t_ref[k]
        dt = (t_cur - t_prev) * jnp.float32(1.0 / N_SUB)
        half_dt = 0.5 * dt
        dt6 = dt * jnp.float32(1.0 / 6.0)
        two_dt6 = 2.0 * dt6
        # RK4 substeps fully unrolled (small, static) so MXU pushes, tanh
        # (EUP) and the incremental accumulator adds (VPU) overlap.
        for s in range(N_SUB):
            ts = t_prev + dt * jnp.float32(s)
            b1m, b2m = make_bias(ts + half_dt)
            b1e, b2e = make_bias(ts + dt)
            k1 = odef(hh, b1a, b2a)
            acc = hh + dt6 * k1
            k2 = odef(hh + half_dt * k1, b1m, b2m)
            acc = acc + two_dt6 * k2
            k3 = odef(hh + half_dt * k2, b1m, b2m)
            acc = acc + two_dt6 * k3
            k4 = odef(hh + dt * k3, b1e, b2e)
            hh = acc + dt6 * k4
            b1a, b2a = b1e, b2e          # substep-end bias == next substep start
        out = jnp.where(col_idx == k, readout(hh), out)
        return hh, out, b1a, b2a

    _, out_final, _, _ = lax.fori_loop(1, n_t, interval_body, (h, out0, b1a0, b2a0))
    # single lane-dense slab write per batch tile
    o_ref[...] = out_final


def init_params(key):
    ks = jax.random.split(key, 16)

    def w(k, shape, scale=0.1):
        return jax.random.normal(k, shape, dtype=jnp.float32) * scale

    return {
        "w1": w(ks[0], (STATIC_INPUT_DIM, ENC_HIDDEN)),
        "b1": w(ks[1], (1, ENC_HIDDEN), 0.01),
        "w2": w(ks[2], (ENC_HIDDEN, STATIC_HIDDEN_DIM)),
        "b2": w(ks[3], (1, STATIC_HIDDEN_DIM), 0.01),
        "wi": w(ks[4], (STATIC_HIDDEN_DIM, ODE_HIDDEN_DIM)),
        "bi": w(ks[5], (1, ODE_HIDDEN_DIM), 0.01),
        # ODEF.net[0]: Linear(64 + 64 + 1, 64), split into three blocks
        "woa": w(ks[6], (ODE_HIDDEN_DIM, 64)),       # acts on state
        "wob": w(ks[7], (STATIC_HIDDEN_DIM, 64)),    # acts on static_embed
        "wot": w(ks[8], (1, 64)),                    # acts on the time feature
        "bo1": w(ks[9], (1, 64), 0.01),
        "wo2": w(ks[10], (64, ODE_HIDDEN_DIM)),
        "bo2": w(ks[11], (1, ODE_HIDDEN_DIM), 0.01),
        "inj_scale": jnp.ones((1,), dtype=jnp.float32),   # nn.Parameter(1.0)
        "wr": w(ks[12], (ODE_HIDDEN_DIM, 1)),
        "br": w(ks[13], (1, 1), 0.01),
        "wcp": w(ks[14], (STATIC_HIDDEN_DIM, 1)),
        "bcp": w(ks[15], (1, 1), 0.01),
    }


def _pick_ode_dot_dtype():
    """bf16 MXU operands on v6e/v7x; f32 on v5e and older generations."""
    try:
        kind = jax.devices()[0].device_kind.lower()
    except Exception:
        return jnp.float32
    for old in ("v2", "v3", "v4", "v5"):
        if old in kind:
            return jnp.float32
    if "tpu" in kind or "v6" in kind or "7x" in kind:
        return jnp.bfloat16
    return jnp.float32


def neural_ode_forward(t, static_features, params, *, ode_dot_dtype=None):
    t = t.astype(jnp.float32)
    x = static_features.astype(jnp.float32)
    T = t.shape[0]
    B = x.shape[0]

    if ode_dot_dtype is None:
        ode_dot_dtype = _pick_ode_dot_dtype()

    # batch tile: vreg-friendly (<=64 rows => every (Bt,64) f32 live value is
    # <=8 vregs) and, whenever the padded batch allows, >=2 grid points so the
    # "parallel" batch axis can shard across v7x's two TensorCores.
    bp8 = ((B + 7) // 8) * 8
    if bp8 <= 8:
        batch_tile = bp8
    else:
        batch_tile = max(8, min(64, ((bp8 // 2) // 8) * 8))
    Bp = pl.cdiv(bp8, batch_tile) * batch_tile

    # dosing scalars are batch means over the *real* (unpadded) batch,
    # matching static_features[:, 5].mean() / [:, 6].mean() in PyTorch.
    amt = jnp.mean(x[:, 5])
    ii = jnp.mean(x[:, 6])
    scalars = jnp.stack([amt, ii, params["inj_scale"][0]]).astype(jnp.float32)

    # pad batch to the tile size and the 7-wide feature dim to 8
    x_pad = jnp.zeros((Bp, STATIC_INPUT_PAD), jnp.float32)
    x_pad = x_pad.at[:B, :STATIC_INPUT_DIM].set(x)
    w1_pad = jnp.zeros((STATIC_INPUT_PAD, ENC_HIDDEN), jnp.float32)
    w1_pad = w1_pad.at[:STATIC_INPUT_DIM].set(params["w1"])

    # readout / initial_cp weights passed as (1,64) rows (lane-reduce readout)
    wr_row = params["wr"].T.astype(jnp.float32)
    wcp_row = params["wcp"].T.astype(jnp.float32)

    VMEM = pl.BlockSpec(memory_space=pltpu.MemorySpace.VMEM)
    SMEM = pl.BlockSpec(memory_space=pltpu.MemorySpace.SMEM)

    in_specs = [
        SMEM,                                                            # scalars
        SMEM,                                                            # t
        pl.BlockSpec((batch_tile, STATIC_INPUT_PAD), lambda i: (i, 0)),  # x
        VMEM, VMEM,              # w1, b1
        VMEM, VMEM,              # w2, b2
        VMEM, VMEM,              # wi, bi
        VMEM, VMEM, VMEM, VMEM,  # woa, wob, wot, bo1
        VMEM, VMEM,              # wo2, bo2
        VMEM, VMEM,              # wr (row), br
        VMEM, VMEM,              # wcp (row), bcp
    ]

    kernel = functools.partial(neural_ode_kernel, dot_dtype=ode_dot_dtype)

    out = pl.pallas_call(
        kernel,
        out_shape=jax.ShapeDtypeStruct((Bp, T), jnp.float32),
        grid=(Bp // batch_tile,),
        in_specs=in_specs,
        out_specs=pl.BlockSpec((batch_tile, T), lambda i: (i, 0)),
        compiler_params=pltpu.CompilerParams(
            dimension_semantics=("parallel",)),
    )(
        scalars, t, x_pad,
        w1_pad, params["b1"],
        params["w2"], params["b2"],
        params["wi"], params["bi"],
        params["woa"], params["wob"], params["wot"], params["bo1"],
        params["wo2"], params["bo2"],
        wr_row, params["br"],
        wcp_row, params["bcp"],
    )
    # kernel writes (Bp, T); PyTorch module returns (B, T, 1)
    return out[:B, :, None]


if __name__ == "__main__":
    key = jax.random.PRNGKey(0)
    k_param, k_x = jax.random.split(key)

    params = init_params(k_param)

    B, T = 2, 8
    # static features in [0.5, 2.0] so amt (col 5) and II (col 6) are nonzero
    static_features = jax.random.uniform(
        k_x, (B, STATIC_INPUT_DIM), minval=0.5, maxval=2.0, dtype=jnp.float32)
    t = jnp.linspace(0.0, 2.0, T, dtype=jnp.float32)

    cp_pred = neural_ode_forward(t, static_features, params)
    cp_pred = jax.block_until_ready(cp_pred)

    assert cp_pred.shape == (B, T, 1)
    assert bool(jnp.all(jnp.isfinite(cp_pred)))
    print("KERNEL_OK")
</pallas_src>

<mosaic_0001>
module attributes {stable_mosaic.version = 11 : i64} {
  func.func @neural_ode_kernel(%arg0: i32, %arg1: memref<3xf32, #tpu.memory_space<smem>>, %arg2: memref<8xf32, #tpu.memory_space<smem>>, %arg3: memref<8x8xf32, #tpu.memory_space<vmem>>, %arg4: memref<8x128xf32, #tpu.memory_space<vmem>>, %arg5: memref<1x128xf32, #tpu.memory_space<vmem>>, %arg6: memref<128x64xf32, #tpu.memory_space<vmem>>, %arg7: memref<1x64xf32, #tpu.memory_space<vmem>>, %arg8: memref<64x64xf32, #tpu.memory_space<vmem>>, %arg9: memref<1x64xf32, #tpu.memory_space<vmem>>, %arg10: memref<64x64xf32, #tpu.memory_space<vmem>>, %arg11: memref<64x64xf32, #tpu.memory_space<vmem>>, %arg12: memref<1x64xf32, #tpu.memory_space<vmem>>, %arg13: memref<1x64xf32, #tpu.memory_space<vmem>>, %arg14: memref<64x64xf32, #tpu.memory_space<vmem>>, %arg15: memref<1x64xf32, #tpu.memory_space<vmem>>, %arg16: memref<1x64xf32, #tpu.memory_space<vmem>>, %arg17: memref<1x1xf32, #tpu.memory_space<vmem>>, %arg18: memref<1x64xf32, #tpu.memory_space<vmem>>, %arg19: memref<1x1xf32, #tpu.memory_space<vmem>>, %arg20: memref<8x8xf32, #tpu.memory_space<vmem>>) attributes {dimension_semantics = [#tpu.dimension_semantics<parallel>], iteration_bounds = array<i64: 1>, scalar_prefetch = 0 : i64, scratch_operands = 0 : i64, tpu.core_type = #tpu.core_type<tc>, window_params = [{transform_indices = @transform_0, window_bounds = array<i64: 3>}, {transform_indices = @transform_1, window_bounds = array<i64: 8>}, {transform_indices = @transform_2, window_bounds = array<i64: 8, 8>}, {pipeline_mode = #tpu.pipeline_mode<synchronous>, transform_indices = @transform_3, window_bounds = array<i64: 8, 128>}, {pipeline_mode = #tpu.pipeline_mode<synchronous>, transform_indices = @transform_4, window_bounds = array<i64: 1, 128>}, {pipeline_mode = #tpu.pipeline_mode<synchronous>, transform_indices = @transform_5, window_bounds = array<i64: 128, 64>}, {pipeline_mode = #tpu.pipeline_mode<synchronous>, transform_indices = @transform_6, window_bounds = array<i64: 1, 64>}, {pipeline_mode = #tpu.pipeline_mode<synchronous>, transform_indices = @transform_7, window_bounds = array<i64: 64, 64>}, {pipeline_mode = #tpu.pipeline_mode<synchronous>, transform_indices = @transform_8, window_bounds = array<i64: 1, 64>}, {pipeline_mode = #tpu.pipeline_mode<synchronous>, transform_indices = @transform_9, window_bounds = array<i64: 64, 64>}, {pipeline_mode = #tpu.pipeline_mode<synchronous>, transform_indices = @transform_10, window_bounds = array<i64: 64, 64>}, {pipeline_mode = #tpu.pipeline_mode<synchronous>, transform_indices = @transform_11, window_bounds = array<i64: 1, 64>}, {pipeline_mode = #tpu.pipeline_mode<synchronous>, transform_indices = @transform_12, window_bounds = array<i64: 1, 64>}, {pipeline_mode = #tpu.pipeline_mode<synchronous>, transform_indices = @transform_13, window_bounds = array<i64: 64, 64>}, {pipeline_mode = #tpu.pipeline_mode<synchronous>, transform_indices = @transform_14, window_bounds = array<i64: 1, 64>}, {pipeline_mode = #tpu.pipeline_mode<synchronous>, transform_indices = @transform_15, window_bounds = array<i64: 1, 64>}, {pipeline_mode = #tpu.pipeline_mode<synchronous>, transform_indices = @transform_16, window_bounds = array<i64: 1, 1>}, {pipeline_mode = #tpu.pipeline_mode<synchronous>, transform_indices = @transform_17, window_bounds = array<i64: 1, 64>}, {pipeline_mode = #tpu.pipeline_mode<synchronous>, transform_indices = @transform_18, window_bounds = array<i64: 1, 1>}, {transform_indices = @transform_19, window_bounds = array<i64: 8, 8>}]} {
    %c0 = arith.constant 0 : index
    %0 = memref.load %arg1[%c0] : memref<3xf32, #tpu.memory_space<smem>>
    %c1 = arith.constant 1 : index
    %1 = memref.load %arg1[%c1] : memref<3xf32, #tpu.memory_space<smem>>
    %c2 = arith.constant 2 : index
    %2 = memref.load %arg1[%c2] : memref<3xf32, #tpu.memory_space<smem>>
    %cst = arith.constant 1.000000e+00 : f32
    %3 = arith.divf %cst, %1 : f32
    %4 = arith.mulf %2, %0 : f32
    %c0_0 = arith.constant 0 : index
    %c0_1 = arith.constant 0 : index
    %5 = vector.load %arg3[%c0_0, %c0_1] : memref<8x8xf32, #tpu.memory_space<vmem>>, vector<8x8xf32>
    %c0_2 = arith.constant 0 : index
    %c0_3 = arith.constant 0 : index
    %6 = vector.load %arg4[%c0_2, %c0_3] : memref<8x128xf32, #tpu.memory_space<vmem>>, vector<8x128xf32>
    %cst_4 = arith.constant dense<0.000000e+00> : vector<8x128xf32>
    %7 = tpu.matmul %5, %6, %cst_4 {dimension_numbers = #tpu.dot_dimension_numbers<[1], [0], [0], [1], [0, 0, 1, 1], [], []>} : vector<8x8xf32>, vector<8x128xf32>, vector<8x128xf32> -> vector<8x128xf32>
    %c0_5 = arith.constant 0 : index
    %c0_6 = arith.constant 0 : index
    %8 = vector.load %arg5[%c0_5, %c0_6] : memref<1x128xf32, #tpu.memory_space<vmem>>, vector<1x128xf32>
    %9 = vector.broadcast %8 : vector<1x128xf32> to vector<8x128xf32>
    %10 = arith.addf %7, %9 : vector<8x128xf32>
    %cst_7 = arith.constant 0.000000e+00 : f32
    %11 = vector.broadcast %cst_7 : f32 to vector<8x128xf32>
    %12 = arith.maximumf %10, %11 : vector<8x128xf32>
    %c0_8 = arith.constant 0 : index
    %c0_9 = arith.constant 0 : index
    %13 = vector.load %arg6[%c0_8, %c0_9] : memref<128x64xf32, #tpu.memory_space<vmem>>, vector<128x64xf32>
    %cst_10 = arith.constant dense<0.000000e+00> : vector<8x64xf32>
    %14 = tpu.matmul %12, %13, %cst_10 {dimension_numbers = #tpu.dot_dimension_numbers<[1], [0], [0], [1], [0, 0, 1, 1], [], []>} : vector<8x128xf32>, vector<128x64xf32>, vector<8x64xf32> -> vector<8x64xf32>
    %c0_11 = arith.constant 0 : index
    %c0_12 = arith.constant 0 : index
    %15 = vector.load %arg7[%c0_11, %c0_12] : memref<1x64xf32, #tpu.memory_space<vmem>>, vector<1x64xf32>
    %16 = vector.broadcast %15 : vector<1x64xf32> to vector<8x64xf32>
    %17 = arith.addf %14, %16 : vector<8x64xf32>
    %cst_13 = arith.constant 0.000000e+00 : f32
    %18 = vector.broadcast %cst_13 : f32 to vector<8x64xf32>
    %19 = arith.maximumf %17, %18 : vector<8x64xf32>
    %c0_14 = arith.constant 0 : index
    %c0_15 = arith.constant 0 : index
    %20 = vector.load %arg18[%c0_14, %c0_15] : memref<1x64xf32, #tpu.memory_space<vmem>>, vector<1x64xf32>
    %21 = vector.broadcast %20 : vector<1x64xf32> to vector<8x64xf32>
    %22 = arith.mulf %19, %21 : vector<8x64xf32>
    %cst_16 = arith.constant dense<0.000000e+00> : vector<8xf32>
    %23 = vector.multi_reduction <add>, %22, %cst_16 [1] : vector<8x64xf32> to vector<8xf32>
    %24 = vector.shape_cast %23 : vector<8xf32> to vector<8x1xf32>
    %c0_17 = arith.constant 0 : index
    %c0_18 = arith.constant 0 : index
    %25 = vector.load %arg19[%c0_17, %c0_18] : memref<1x1xf32, #tpu.memory_space<vmem>>, vector<1x1xf32>
    %26 = vector.broadcast %25 : vector<1x1xf32> to vector<8x1xf32>
    %27 = arith.addf %24, %26 : vector<8x1xf32>
    %cst_19 = arith.constant 0.000000e+00 : f32
    %28 = vector.broadcast %cst_19 : f32 to vector<8x1xf32>
    %29 = arith.maximumf %27, %28 : vector<8x1xf32>
    %30 = math.absf %27 : vector<8x1xf32>
    %cst_20 = arith.constant 0.000000e+00 : f32
    %31 = vector.broadcast %cst_20 : f32 to vector<8x1xf32>
    %32 = arith.subf %31, %30 : vector<8x1xf32>
    %33 = math.exp %32 : vector<8x1xf32>
    %34 = math.log1p %33 : vector<8x1xf32>
    %35 = arith.addf %29, %34 : vector<8x1xf32>
    %c0_21 = arith.constant 0 : index
    %c0_22 = arith.constant 0 : index
    %36 = vector.load %arg8[%c0_21, %c0_22] : memref<64x64xf32, #tpu.memory_space<vmem>>, vector<64x64xf32>
    %cst_23 = arith.constant dense<0.000000e+00> : vector<8x64xf32>
    %37 = tpu.matmul %19, %36, %cst_23 {dimension_numbers = #tpu.dot_dimension_numbers<[1], [0], [0], [1], [0, 0, 1, 1], [], []>} : vector<8x64xf32>, vector<64x64xf32>, vector<8x64xf32> -> vector<8x64xf32>
    %c0_24 = arith.constant 0 : index
    %c0_25 = arith.constant 0 : index
    %38 = vector.load %arg9[%c0_24, %c0_25] : memref<1x64xf32, #tpu.memory_space<vmem>>, vector<1x64xf32>
    %39 = vector.broadcast %38 : vector<1x64xf32> to vector<8x64xf32>
    %40 = arith.addf %37, %39 : vector<8x64xf32>
    %c0_26 = arith.constant 0 : index
    %c0_27 = arith.constant 0 : index
    %41 = vector.load %arg10[%c0_26, %c0_27] : memref<64x64xf32, #tpu.memory_space<vmem>>, vector<64x64xf32>
    %c0_28 = arith.constant 0 : index
    %c0_29 = arith.constant 0 : index
    %42 = vector.load %arg14[%c0_28, %c0_29] : memref<64x64xf32, #tpu.memory_space<vmem>>, vector<64x64xf32>
    %c0_30 = arith.constant 0 : index
    %c0_31 = arith.constant 0 : index
    %43 = vector.load %arg11[%c0_30, %c0_31] : memref<64x64xf32, #tpu.memory_space<vmem>>, vector<64x64xf32>
    %cst_32 = arith.constant dense<0.000000e+00> : vector<8x64xf32>
    %44 = tpu.matmul %19, %43, %cst_32 {dimension_numbers = #tpu.dot_dimension_numbers<[1], [0], [0], [1], [0, 0, 1, 1], [], []>} : vector<8x64xf32>, vector<64x64xf32>, vector<8x64xf32> -> vector<8x64xf32>
    %c0_33 = arith.constant 0 : index
    %c0_34 = arith.constant 0 : index
    %45 = vector.load %arg13[%c0_33, %c0_34] : memref<1x64xf32, #tpu.memory_space<vmem>>, vector<1x64xf32>
    %46 = vector.broadcast %45 : vector<1x64xf32> to vector<8x64xf32>
    %47 = arith.addf %44, %46 : vector<8x64xf32>
    %c0_35 = arith.constant 0 : index
    %c0_36 = arith.constant 0 : index
    %48 = vector.load %arg12[%c0_35, %c0_36] : memref<1x64xf32, #tpu.memory_space<vmem>>, vector<1x64xf32>
    %c0_37 = arith.constant 0 : index
    %c0_38 = arith.constant 0 : index
    %49 = vector.load %arg15[%c0_37, %c0_38] : memref<1x64xf32, #tpu.memory_space<vmem>>, vector<1x64xf32>
    %c0_39 = arith.constant 0 : index
    %c0_40 = arith.constant 0 : index
    %50 = vector.load %arg16[%c0_39, %c0_40] : memref<1x64xf32, #tpu.memory_space<vmem>>, vector<1x64xf32>
    %c0_41 = arith.constant 0 : index
    %c0_42 = arith.constant 0 : index
    %51 = vector.load %arg17[%c0_41, %c0_42] : memref<1x1xf32, #tpu.memory_space<vmem>>, vector<1x1xf32>
    %52 = tpu.iota {dimensions = array<i32: 1>} : vector<1x8xi32>
    %c0_i32 = arith.constant 0 : i32
    %53 = vector.broadcast %c0_i32 : i32 to vector<1x8xi32>
    %54 = arith.cmpi eq, %52, %53 : vector<1x8xi32>
    %55 = vector.broadcast %50 : vector<1x64xf32> to vector<8x64xf32>
    %56 = arith.mulf %40, %55 : vector<8x64xf32>
    %cst_43 = arith.constant dense<0.000000e+00> : vector<8xf32>
    %57 = vector.multi_reduction <add>, %56, %cst_43 [1] : vector<8x64xf32> to vector<8xf32>
    %58 = vector.shape_cast %57 : vector<8xf32> to vector<8x1xf32>
    %59 = vector.broadcast %51 : vector<1x1xf32> to vector<8x1xf32>
    %60 = arith.addf %58, %59 : vector<8x1xf32>
    %cst_44 = arith.constant 0.000000e+00 : f32
    %61 = vector.broadcast %cst_44 : f32 to vector<8x1xf32>
    %62 = arith.maximumf %60, %61 : vector<8x1xf32>
    %63 = math.absf %60 : vector<8x1xf32>
    %cst_45 = arith.constant 0.000000e+00 : f32
    %64 = vector.broadcast %cst_45 : f32 to vector<8x1xf32>
    %65 = arith.subf %64, %63 : vector<8x1xf32>
    %66 = math.exp %65 : vector<8x1xf32>
    %67 = math.log1p %66 : vector<8x1xf32>
    %68 = arith.addf %62, %67 : vector<8x1xf32>
    %69 = arith.addf %68, %35 : vector<8x1xf32>
    %cst_46 = arith.constant 0.000000e+00 : f32
    %70 = vector.shape_cast %54 : vector<1x8xi1> to vector<1x8xi1>
    %71 = vector.broadcast %70 : vector<1x8xi1> to vector<8x8xi1>
    %72 = vector.shape_cast %69 : vector<8x1xf32> to vector<8x1xf32>
    %73 = vector.broadcast %72 : vector<8x1xf32> to vector<8x8xf32>
    %74 = vector.broadcast %cst_46 : f32 to vector<8x8xf32>
    %75 = arith.select %71, %73, %74 : vector<8x8xi1>, vector<8x8xf32>
    %c0_47 = arith.constant 0 : index
    %76 = memref.load %arg2[%c0_47] : memref<8xf32, #tpu.memory_space<smem>>
    %77 = arith.mulf %76, %3 : f32
    %cst_48 = arith.constant 0.000000e+00 : f32
    %78 = arith.cmpf olt, %77, %cst_48 : f32
    %79 = math.ceil %77 : f32
    %80 = math.floor %77 : f32
    %81 = arith.select %78, %79, %80 : f32
    %82 = arith.mulf %81, %1 : f32
    %83 = arith.subf %76, %82 : f32
    %84 = arith.mulf %83, %83 : f32
    %cst_49 = arith.constant 0.000000e+00 : f32
    %85 = arith.subf %cst_49, %84 : f32
    %cst_50 = arith.constant 5.000000e+05 : f32
    %86 = arith.mulf %85, %cst_50 : f32
    %87 = math.exp %86 : f32
    %88 = arith.mulf %4, %87 : f32
    %89 = vector.broadcast %76 : f32 to vector<1x64xf32>
    %90 = arith.mulf %89, %48 : vector<1x64xf32>
    %91 = vector.broadcast %88 : f32 to vector<1x64xf32>
    %92 = arith.addf %49, %91 : vector<1x64xf32>
    %cst_51 = arith.constant 5.000000e+05 : f32
    %c1_i32 = arith.constant 1 : i32
    %c7_i32 = arith.constant 7 : i32
    %93 = arith.addi %c1_i32, %c7_i32 : i32
    %c1_i32_52 = arith.constant 1 : i32
    %94:4 = scf.for %arg21 = %c1_i32 to %93 step %c1_i32_52 iter_args(%arg22 = %40, %arg23 = %75, %arg24 = %90, %arg25 = %92) -> (vector<8x64xf32>, vector<8x8xf32>, vector<1x64xf32>, vector<1x64xf32>)  : i32 {
      %c1_i32_56 = arith.constant 1 : i32
      %96 = arith.subi %arg21, %c1_i32_56 : i32
      %97 = arith.index_cast %96 : i32 to index
      %98 = memref.load %arg2[%97] : memref<8xf32, #tpu.memory_space<smem>>
      %99 = arith.index_cast %arg21 : i32 to index
      %100 = memref.load %arg2[%99] : memref<8xf32, #tpu.memory_space<smem>>
      %101 = arith.subf %100, %98 : f32
      %cst_57 = arith.constant 1.250000e-01 : f32
      %102 = arith.mulf %101, %cst_57 : f32
      %cst_58 = arith.constant 5.000000e-01 : f32
      %103 = arith.mulf %cst_58, %102 : f32
      %cst_59 = arith.constant 0.166666672 : f32
      %104 = arith.mulf %102, %cst_59 : f32
      %cst_60 = arith.constant 2.000000e+00 : f32
      %105 = arith.mulf %cst_60, %104 : f32
      %cst_61 = arith.constant 0.000000e+00 : f32
      %106 = arith.mulf %102, %cst_61 : f32
      %107 = arith.addf %98, %106 : f32
      %108 = arith.addf %107, %103 : f32
      %109 = arith.mulf %108, %3 : f32
      %cst_62 = arith.constant 0.000000e+00 : f32
      %110 = arith.cmpf olt, %109, %cst_62 : f32
      %111 = math.ceil %109 : f32
      %112 = math.floor %109 : f32
      %113 = arith.select %110, %111, %112 : f32
      %114 = arith.mulf %113, %1 : f32
      %115 = arith.subf %108, %114 : f32
      %116 = arith.mulf %115, %115 : f32
      %cst_63 = arith.constant 0.000000e+00 : f32
      %117 = arith.subf %cst_63, %116 : f32
      %118 = arith.mulf %117, %cst_51 : f32
      %119 = math.exp %118 : f32
      %120 = arith.mulf %4, %119 : f32
      %121 = vector.broadcast %108 : f32 to vector<1x64xf32>
      %122 = arith.mulf %121, %48 : vector<1x64xf32>
      %123 = vector.broadcast %120 : f32 to vector<1x64xf32>
      %124 = arith.addf %49, %123 : vector<1x64xf32>
      %125 = arith.addf %107, %102 : f32
      %126 = arith.mulf %125, %3 : f32
      %cst_64 = arith.constant 0.000000e+00 : f32
      %127 = arith.cmpf olt, %126, %cst_64 : f32
      %128 = math.ceil %126 : f32
      %129 = math.floor %126 : f32
      %130 = arith.select %127, %128, %129 : f32
      %131 = arith.mulf %130, %1 : f32
      %132 = arith.subf %125, %131 : f32
      %133 = arith.mulf %132, %132 : f32
      %cst_65 = arith.constant 0.000000e+00 : f32
      %134 = arith.subf %cst_65, %133 : f32
      %135 = arith.mulf %134, %cst_51 : f32
      %136 = math.exp %135 : f32
      %137 = arith.mulf %4, %136 : f32
      %138 = vector.broadcast %125 : f32 to vector<1x64xf32>
      %139 = arith.mulf %138, %48 : vector<1x64xf32>
      %140 = vector.broadcast %137 : f32 to vector<1x64xf32>
      %141 = arith.addf %49, %140 : vector<1x64xf32>
      %cst_66 = arith.constant dense<0.000000e+00> : vector<8x64xf32>
      %142 = tpu.matmul %arg22, %41, %cst_66 {dimension_numbers = #tpu.dot_dimension_numbers<[1], [0], [0], [1], [0, 0, 1, 1], [], []>} : vector<8x64xf32>, vector<64x64xf32>, vector<8x64xf32> -> vector<8x64xf32>
      %143 = arith.addf %142, %47 : vector<8x64xf32>
      %144 = vector.broadcast %arg24 : vector<1x64xf32> to vector<8x64xf32>
      %145 = arith.addf %143, %144 : vector<8x64xf32>
      %146 = math.tanh %145 : vector<8x64xf32>
      %cst_67 = arith.constant dense<0.000000e+00> : vector<8x64xf32>
      %147 = tpu.matmul %146, %42, %cst_67 {dimension_numbers = #tpu.dot_dimension_numbers<[1], [0], [0], [1], [0, 0, 1, 1], [], []>} : vector<8x64xf32>, vector<64x64xf32>, vector<8x64xf32> -> vector<8x64xf32>
      %148 = vector.broadcast %arg25 : vector<1x64xf32> to vector<8x64xf32>
      %149 = arith.addf %147, %148 : vector<8x64xf32>
      %150 = vector.broadcast %104 : f32 to vector<8x64xf32>
      %151 = arith.mulf %150, %149 : vector<8x64xf32>
      %152 = arith.addf %arg22, %151 : vector<8x64xf32>
      %153 = vector.broadcast %103 : f32 to vector<8x64xf32>
      %154 = arith.mulf %153, %149 : vector<8x64xf32>
      %155 = arith.addf %arg22, %154 : vector<8x64xf32>
      %cst_68 = arith.constant dense<0.000000e+00> : vector<8x64xf32>
      %156 = tpu.matmul %155, %41, %cst_68 {dimension_numbers = #tpu.dot_dimension_numbers<[1], [0], [0], [1], [0, 0, 1, 1], [], []>} : vector<8x64xf32>, vector<64x64xf32>, vector<8x64xf32> -> vector<8x64xf32>
      %157 = arith.addf %156, %47 : vector<8x64xf32>
      %158 = vector.broadcast %122 : vector<1x64xf32> to vector<8x64xf32>
      %159 = arith.addf %157, %158 : vector<8x64xf32>
      %160 = math.tanh %159 : vector<8x64xf32>
      %cst_69 = arith.constant dense<0.000000e+00> : vector<8x64xf32>
      %161 = tpu.matmul %160, %42, %cst_69 {dimension_numbers = #tpu.dot_dimension_numbers<[1], [0], [0], [1], [0, 0, 1, 1], [], []>} : vector<8x64xf32>, vector<64x64xf32>, vector<8x64xf32> -> vector<8x64xf32>
      %162 = vector.broadcast %124 : vector<1x64xf32> to vector<8x64xf32>
      %163 = arith.addf %161, %162 : vector<8x64xf32>
      %164 = vector.broadcast %105 : f32 to vector<8x64xf32>
      %165 = arith.mulf %164, %163 : vector<8x64xf32>
      %166 = arith.addf %152, %165 : vector<8x64xf32>
      %167 = vector.broadcast %103 : f32 to vector<8x64xf32>
      %168 = arith.mulf %167, %163 : vector<8x64xf32>
      %169 = arith.addf %arg22, %168 : vector<8x64xf32>
      %cst_70 = arith.constant dense<0.000000e+00> : vector<8x64xf32>
      %170 = tpu.matmul %169, %41, %cst_70 {dimension_numbers = #tpu.dot_dimension_numbers<[1], [0], [0], [1], [0, 0, 1, 1], [], []>} : vector<8x64xf32>, vector<64x64xf32>, vector<8x64xf32> -> vector<8x64xf32>
      %171 = arith.addf %170, %47 : vector<8x64xf32>
      %172 = vector.broadcast %122 : vector<1x64xf32> to vector<8x64xf32>
      %173 = arith.addf %171, %172 : vector<8x64xf32>
      %174 = math.tanh %173 : vector<8x64xf32>
      %cst_71 = arith.constant dense<0.000000e+00> : vector<8x64xf32>
      %175 = tpu.matmul %174, %42, %cst_71 {dimension_numbers = #tpu.dot_dimension_numbers<[1], [0], [0], [1], [0, 0, 1, 1], [], []>} : vector<8x64xf32>, vector<64x64xf32>, vector<8x64xf32> -> vector<8x64xf32>
      %176 = vector.broadcast %124 : vector<1x64xf32> to vector<8x64xf32>
      %177 = arith.addf %175, %176 : vector<8x64xf32>
      %178 = vector.broadcast %105 : f32 to vector<8x64xf32>
      %179 = arith.mulf %178, %177 : vector<8x64xf32>
      %180 = arith.addf %166, %179 : vector<8x64xf32>
      %181 = vector.broadcast %102 : f32 to vector<8x64xf32>
      %182 = arith.mulf %181, %177 : vector<8x64xf32>
      %183 = arith.addf %arg22, %182 : vector<8x64xf32>
      %cst_72 = arith.constant dense<0.000000e+00> : vector<8x64xf32>
      %184 = tpu.matmul %183, %41, %cst_72 {dimension_numbers = #tpu.dot_dimension_numbers<[1], [0], [0], [1], [0, 0, 1, 1], [], []>} : vector<8x64xf32>, vector<64x64xf32>, vector<8x64xf32> -> vector<8x64xf32>
      %185 = arith.addf %184, %47 : vector<8x64xf32>
      %186 = vector.broadcast %139 : vector<1x64xf32> to vector<8x64xf32>
      %187 = arith.addf %185, %186 : vector<8x64xf32>
      %188 = math.tanh %187 : vector<8x64xf32>
      %cst_73 = arith.constant dense<0.000000e+00> : vector<8x64xf32>
      %189 = tpu.matmul %188, %42, %cst_73 {dimension_numbers = #tpu.dot_dimension_numbers<[1], [0], [0], [1], [0, 0, 1, 1], [], []>} : vector<8x64xf32>, vector<64x64xf32>, vector<8x64xf32> -> vector<8x64xf32>
      %190 = vector.broadcast %141 : vector<1x64xf32> to vector<8x64xf32>
      %191 = arith.addf %189, %190 : vector<8x64xf32>
      %192 = vector.broadcast %104 : f32 to vector<8x64xf32>
      %193 = arith.mulf %192, %191 : vector<8x64xf32>
      %194 = arith.addf %180, %193 : vector<8x64xf32>
      %cst_74 = arith.constant 1.000000e+00 : f32
      %195 = arith.mulf %102, %cst_74 : f32
      %196 = arith.addf %98, %195 : f32
      %197 = arith.addf %196, %103 : f32
      %198 = arith.mulf %197, %3 : f32
      %cst_75 = arith.constant 0.000000e+00 : f32
      %199 = arith.cmpf olt, %198, %cst_75 : f32
      %200 = math.ceil %198 : f32
      %201 = math.floor %198 : f32
      %202 = arith.select %199, %200, %201 : f32
      %203 = arith.mulf %202, %1 : f32
      %204 = arith.subf %197, %203 : f32
      %205 = arith.mulf %204, %204 : f32
      %cst_76 = arith.constant 0.000000e+00 : f32
      %206 = arith.subf %cst_76, %205 : f32
      %207 = arith.mulf %206, %cst_51 : f32
      %208 = math.exp %207 : f32
      %209 = arith.mulf %4, %208 : f32
      %210 = vector.broadcast %197 : f32 to vector<1x64xf32>
      %211 = arith.mulf %210, %48 : vector<1x64xf32>
      %212 = vector.broadcast %209 : f32 to vector<1x64xf32>
      %213 = arith.addf %49, %212 : vector<1x64xf32>
      %214 = arith.addf %196, %102 : f32
      %215 = arith.mulf %214, %3 : f32
      %cst_77 = arith.constant 0.000000e+00 : f32
      %216 = arith.cmpf olt, %215, %cst_77 : f32
      %217 = math.ceil %215 : f32
      %218 = math.floor %215 : f32
      %219 = arith.select %216, %217, %218 : f32
      %220 = arith.mulf %219, %1 : f32
      %221 = arith.subf %214, %220 : f32
      %222 = arith.mulf %221, %221 : f32
      %cst_78 = arith.constant 0.000000e+00 : f32
      %223 = arith.subf %cst_78, %222 : f32
      %224 = arith.mulf %223, %cst_51 : f32
      %225 = math.exp %224 : f32
      %226 = arith.mulf %4, %225 : f32
      %227 = vector.broadcast %214 : f32 to vector<1x64xf32>
      %228 = arith.mulf %227, %48 : vector<1x64xf32>
      %229 = vector.broadcast %226 : f32 to vector<1x64xf32>
      %230 = arith.addf %49, %229 : vector<1x64xf32>
      %cst_79 = arith.constant dense<0.000000e+00> : vector<8x64xf32>
      %231 = tpu.matmul %194, %41, %cst_79 {dimension_numbers = #tpu.dot_dimension_numbers<[1], [0], [0], [1], [0, 0, 1, 1], [], []>} : vector<8x64xf32>, vector<64x64xf32>, vector<8x64xf32> -> vector<8x64xf32>
      %232 = arith.addf %231, %47 : vector<8x64xf32>
      %233 = vector.broadcast %139 : vector<1x64xf32> to vector<8x64xf32>
      %234 = arith.addf %232, %233 : vector<8x64xf32>
      %235 = math.tanh %234 : vector<8x64xf32>
      %cst_80 = arith.constant dense<0.000000e+00> : vector<8x64xf32>
      %236 = tpu.matmul %235, %42, %cst_80 {dimension_numbers = #tpu.dot_dimension_numbers<[1], [0], [0], [1], [0, 0, 1, 1], [], []>} : vector<8x64xf32>, vector<64x64xf32>, vector<8x64xf32> -> vector<8x64xf32>
      %237 = vector.broadcast %141 : vector<1x64xf32> to vector<8x64xf32>
      %238 = arith.addf %236, %237 : vector<8x64xf32>
      %239 = vector.broadcast %104 : f32 to vector<8x64xf32>
      %240 = arith.mulf %239, %238 : vector<8x64xf32>
      %241 = arith.addf %194, %240 : vector<8x64xf32>
      %242 = vector.broadcast %103 : f32 to vector<8x64xf32>
      %243 = arith.mulf %242, %238 : vector<8x64xf32>
      %244 = arith.addf %194, %243 : vector<8x64xf32>
      %cst_81 = arith.constant dense<0.000000e+00> : vector<8x64xf32>
      %245 = tpu.matmul %244, %41, %cst_81 {dimension_numbers = #tpu.dot_dimension_numbers<[1], [0], [0], [1], [0, 0, 1, 1], [], []>} : vector<8x64xf32>, vector<64x64xf32>, vector<8x64xf32> -> vector<8x64xf32>
      %246 = arith.addf %245, %47 : vector<8x64xf32>
      %247 = vector.broadcast %211 : vector<1x64xf32> to vector<8x64xf32>
      %248 = arith.addf %246, %247 : vector<8x64xf32>
      %249 = math.tanh %248 : vector<8x64xf32>
      %cst_82 = arith.constant dense<0.000000e+00> : vector<8x64xf32>
      %250 = tpu.matmul %249, %42, %cst_82 {dimension_numbers = #tpu.dot_dimension_numbers<[1], [0], [0], [1], [0, 0, 1, 1], [], []>} : vector<8x64xf32>, vector<64x64xf32>, vector<8x64xf32> -> vector<8x64xf32>
      %251 = vector.broadcast %213 : vector<1x64xf32> to vector<8x64xf32>
      %252 = arith.addf %250, %251 : vector<8x64xf32>
      %253 = vector.broadcast %105 : f32 to vector<8x64xf32>
      %254 = arith.mulf %253, %252 : vector<8x64xf32>
      %255 = arith.addf %241, %254 : vector<8x64xf32>
      %256 = vector.broadcast %103 : f32 to vector<8x64xf32>
      %257 = arith.mulf %256, %252 : vector<8x64xf32>
      %258 = arith.addf %194, %257 : vector<8x64xf32>
      %cst_83 = arith.constant dense<0.000000e+00> : vector<8x64xf32>
      %259 = tpu.matmul %258, %41, %cst_83 {dimension_numbers = #tpu.dot_dimension_numbers<[1], [0], [0], [1], [0, 0, 1, 1], [], []>} : vector<8x64xf32>, vector<64x64xf32>, vector<8x64xf32> -> vector<8x64xf32>
      %260 = arith.addf %259, %47 : vector<8x64xf32>
      %261 = vector.broadcast %211 : vector<1x64xf32> to vector<8x64xf32>
      %262 = arith.addf %260, %261 : vector<8x64xf32>
      %263 = math.tanh %262 : vector<8x64xf32>
      %cst_84 = arith.constant dense<0.000000e+00> : vector<8x64xf32>
      %264 = tpu.matmul %263, %42, %cst_84 {dimension_numbers = #tpu.dot_dimension_numbers<[1], [0], [0], [1], [0, 0, 1, 1], [], []>} : vector<8x64xf32>, vector<64x64xf32>, vector<8x64xf32> -> vector<8x64xf32>
      %265 = vector.broadcast %213 : vector<1x64xf32> to vector<8x64xf32>
      %266 = arith.addf %264, %265 : vector<8x64xf32>
      %267 = vector.broadcast %105 : f32 to vector<8x64xf32>
      %268 = arith.mulf %267, %266 : vector<8x64xf32>
      %269 = arith.addf %255, %268 : vector<8x64xf32>
      %270 = vector.broadcast %102 : f32 to vector<8x64xf32>
      %271 = arith.mulf %270, %266 : vector<8x64xf32>
      %272 = arith.addf %194, %271 : vector<8x64xf32>
      %cst_85 = arith.constant dense<0.000000e+00> : vector<8x64xf32>
      %273 = tpu.matmul %272, %41, %cst_85 {dimension_numbers = #tpu.dot_dimension_numbers<[1], [0], [0], [1], [0, 0, 1, 1], [], []>} : vector<8x64xf32>, vector<64x64xf32>, vector<8x64xf32> -> vector<8x64xf32>
      %274 = arith.addf %273, %47 : vector<8x64xf32>
      %275 = vector.broadcast %228 : vector<1x64xf32> to vector<8x64xf32>
      %276 = arith.addf %274, %275 : vector<8x64xf32>
      %277 = math.tanh %276 : vector<8x64xf32>
      %cst_86 = arith.constant dense<0.000000e+00> : vector<8x64xf32>
      %278 = tpu.matmul %277, %42, %cst_86 {dimension_numbers = #tpu.dot_dimension_numbers<[1], [0], [0], [1], [0, 0, 1, 1], [], []>} : vector<8x64xf32>, vector<64x64xf32>, vector<8x64xf32> -> vector<8x64xf32>
      %279 = vector.broadcast %230 : vector<1x64xf32> to vector<8x64xf32>
      %280 = arith.addf %278, %279 : vector<8x64xf32>
      %281 = vector.broadcast %104 : f32 to vector<8x64xf32>
      %282 = arith.mulf %281, %280 : vector<8x64xf32>
      %283 = arith.addf %269, %282 : vector<8x64xf32>
      %cst_87 = arith.constant 2.000000e+00 : f32
      %284 = arith.mulf %102, %cst_87 : f32
      %285 = arith.addf %98, %284 : f32
      %286 = arith.addf %285, %103 : f32
      %287 = arith.mulf %286, %3 : f32
      %cst_88 = arith.constant 0.000000e+00 : f32
      %288 = arith.cmpf olt, %287, %cst_88 : f32
      %289 = math.ceil %287 : f32
      %290 = math.floor %287 : f32
      %291 = arith.select %288, %289, %290 : f32
      %292 = arith.mulf %291, %1 : f32
      %293 = arith.subf %286, %292 : f32
      %294 = arith.mulf %293, %293 : f32
      %cst_89 = arith.constant 0.000000e+00 : f32
      %295 = arith.subf %cst_89, %294 : f32
      %296 = arith.mulf %295, %cst_51 : f32
      %297 = math.exp %296 : f32
      %298 = arith.mulf %4, %297 : f32
      %299 = vector.broadcast %286 : f32 to vector<1x64xf32>
      %300 = arith.mulf %299, %48 : vector<1x64xf32>
      %301 = vector.broadcast %298 : f32 to vector<1x64xf32>
      %302 = arith.addf %49, %301 : vector<1x64xf32>
      %303 = arith.addf %285, %102 : f32
      %304 = arith.mulf %303, %3 : f32
      %cst_90 = arith.constant 0.000000e+00 : f32
      %305 = arith.cmpf olt, %304, %cst_90 : f32
      %306 = math.ceil %304 : f32
      %307 = math.floor %304 : f32
      %308 = arith.select %305, %306, %307 : f32
      %309 = arith.mulf %308, %1 : f32
      %310 = arith.subf %303, %309 : f32
      %311 = arith.mulf %310, %310 : f32
      %cst_91 = arith.constant 0.000000e+00 : f32
      %312 = arith.subf %cst_91, %311 : f32
      %313 = arith.mulf %312, %cst_51 : f32
      %314 = math.exp %313 : f32
      %315 = arith.mulf %4, %314 : f32
      %316 = vector.broadcast %303 : f32 to vector<1x64xf32>
      %317 = arith.mulf %316, %48 : vector<1x64xf32>
      %318 = vector.broadcast %315 : f32 to vector<1x64xf32>
      %319 = arith.addf %49, %318 : vector<1x64xf32>
      %cst_92 = arith.constant dense<0.000000e+00> : vector<8x64xf32>
      %320 = tpu.matmul %283, %41, %cst_92 {dimension_numbers = #tpu.dot_dimension_numbers<[1], [0], [0], [1], [0, 0, 1, 1], [], []>} : vector<8x64xf32>, vector<64x64xf32>, vector<8x64xf32> -> vector<8x64xf32>
      %321 = arith.addf %320, %47 : vector<8x64xf32>
      %322 = vector.broadcast %228 : vector<1x64xf32> to vector<8x64xf32>
      %323 = arith.addf %321, %322 : vector<8x64xf32>
      %324 = math.tanh %323 : vector<8x64xf32>
      %cst_93 = arith.constant dense<0.000000e+00> : vector<8x64xf32>
      %325 = tpu.matmul %324, %42, %cst_93 {dimension_numbers = #tpu.dot_dimension_numbers<[1], [0], [0], [1], [0, 0, 1, 1], [], []>} : vector<8x64xf32>, vector<64x64xf32>, vector<8x64xf32> -> vector<8x64xf32>
      %326 = vector.broadcast %230 : vector<1x64xf32> to vector<8x64xf32>
      %327 = arith.addf %325, %326 : vector<8x64xf32>
      %328 = vector.broadcast %104 : f32 to vector<8x64xf32>
      %329 = arith.mulf %328, %327 : vector<8x64xf32>
      %330 = arith.addf %283, %329 : vector<8x64xf32>
      %331 = vector.broadcast %103 : f32 to vector<8x64xf32>
      %332 = arith.mulf %331, %327 : vector<8x64xf32>
      %333 = arith.addf %283, %332 : vector<8x64xf32>
      %cst_94 = arith.constant dense<0.000000e+00> : vector<8x64xf32>
      %334 = tpu.matmul %333, %41, %cst_94 {dimension_numbers = #tpu.dot_dimension_numbers<[1], [0], [0], [1], [0, 0, 1, 1], [], []>} : vector<8x64xf32>, vector<64x64xf32>, vector<8x64xf32> -> vector<8x64xf32>
      %335 = arith.addf %334, %47 : vector<8x64xf32>
      %336 = vector.broadcast %300 : vector<1x64xf32> to vector<8x64xf32>
      %337 = arith.addf %335, %336 : vector<8x64xf32>
      %338 = math.tanh %337 : vector<8x64xf32>
      %cst_95 = arith.constant dense<0.000000e+00> : vector<8x64xf32>
      %339 = tpu.matmul %338, %42, %cst_95 {dimension_numbers = #tpu.dot_dimension_numbers<[1], [0], [0], [1], [0, 0, 1, 1], [], []>} : vector<8x64xf32>, vector<64x64xf32>, vector<8x64xf32> -> vector<8x64xf32>
      %340 = vector.broadcast %302 : vector<1x64xf32> to vector<8x64xf32>
      %341 = arith.addf %339, %340 : vector<8x64xf32>
      %342 = vector.broadcast %105 : f32 to vector<8x64xf32>
      %343 = arith.mulf %342, %341 : vector<8x64xf32>
      %344 = arith.addf %330, %343 : vector<8x64xf32>
      %345 = vector.broadcast %103 : f32 to vector<8x64xf32>
      %346 = arith.mulf %345, %341 : vector<8x64xf32>
      %347 = arith.addf %283, %346 : vector<8x64xf32>
      %cst_96 = arith.constant dense<0.000000e+00> : vector<8x64xf32>
      %348 = tpu.matmul %347, %41, %cst_96 {dimension_numbers = #tpu.dot_dimension_numbers<[1], [0], [0], [1], [0, 0, 1, 1], [], []>} : vector<8x64xf32>, vector<64x64xf32>, vector<8x64xf32> -> vector<8x64xf32>
      %349 = arith.addf %348, %47 : vector<8x64xf32>
      %350 = vector.broadcast %300 : vector<1x64xf32> to vector<8x64xf32>
      %351 = arith.addf %349, %350 : vector<8x64xf32>
      %352 = math.tanh %351 : vector<8x64xf32>
      %cst_97 = arith.constant dense<0.000000e+00> : vector<8x64xf32>
      %353 = tpu.matmul %352, %42, %cst_97 {dimension_numbers = #tpu.dot_dimension_numbers<[1], [0], [0], [1], [0, 0, 1, 1], [], []>} : vector<8x64xf32>, vector<64x64xf32>, vector<8x64xf32> -> vector<8x64xf32>
      %354 = vector.broadcast %302 : vector<1x64xf32> to vector<8x64xf32>
      %355 = arith.addf %353, %354 : vector<8x64xf32>
      %356 = vector.broadcast %105 : f32 to vector<8x64xf32>
      %357 = arith.mulf %356, %355 : vector<8x64xf32>
      %358 = arith.addf %344, %357 : vector<8x64xf32>
      %359 = vector.broadcast %102 : f32 to vector<8x64xf32>
      %360 = arith.mulf %359, %355 : vector<8x64xf32>
      %361 = arith.addf %283, %360 : vector<8x64xf32>
      %cst_98 = arith.constant dense<0.000000e+00> : vector<8x64xf32>
      %362 = tpu.matmul %361, %41, %cst_98 {dimension_numbers = #tpu.dot_dimension_numbers<[1], [0], [0], [1], [0, 0, 1, 1], [], []>} : vector<8x64xf32>, vector<64x64xf32>, vector<8x64xf32> -> vector<8x64xf32>
      %363 = arith.addf %362, %47 : vector<8x64xf32>
      %364 = vector.broadcast %317 : vector<1x64xf32> to vector<8x64xf32>
      %365 = arith.addf %363, %364 : vector<8x64xf32>
      %366 = math.tanh %365 : vector<8x64xf32>
      %cst_99 = arith.constant dense<0.000000e+00> : vector<8x64xf32>
      %367 = tpu.matmul %366, %42, %cst_99 {dimension_numbers = #tpu.dot_dimension_numbers<[1], [0], [0], [1], [0, 0, 1, 1], [], []>} : vector<8x64xf32>, vector<64x64xf32>, vector<8x64xf32> -> vector<8x64xf32>
      %368 = vector.broadcast %319 : vector<1x64xf32> to vector<8x64xf32>
      %369 = arith.addf %367, %368 : vector<8x64xf32>
      %370 = vector.broadcast %104 : f32 to vector<8x64xf32>
      %371 = arith.mulf %370, %369 : vector<8x64xf32>
      %372 = arith.addf %358, %371 : vector<8x64xf32>
      %cst_100 = arith.constant 3.000000e+00 : f32
      %373 = arith.mulf %102, %cst_100 : f32
      %374 = arith.addf %98, %373 : f32
      %375 = arith.addf %374, %103 : f32
      %376 = arith.mulf %375, %3 : f32
      %cst_101 = arith.constant 0.000000e+00 : f32
      %377 = arith.cmpf olt, %376, %cst_101 : f32
      %378 = math.ceil %376 : f32
      %379 = math.floor %376 : f32
      %380 = arith.select %377, %378, %379 : f32
      %381 = arith.mulf %380, %1 : f32
      %382 = arith.subf %375, %381 : f32
      %383 = arith.mulf %382, %382 : f32
      %cst_102 = arith.constant 0.000000e+00 : f32
      %384 = arith.subf %cst_102, %383 : f32
      %385 = arith.mulf %384, %cst_51 : f32
      %386 = math.exp %385 : f32
      %387 = arith.mulf %4, %386 : f32
      %388 = vector.broadcast %375 : f32 to vector<1x64xf32>
      %389 = arith.mulf %388, %48 : vector<1x64xf32>
      %390 = vector.broadcast %387 : f32 to vector<1x64xf32>
      %391 = arith.addf %49, %390 : vector<1x64xf32>
      %392 = arith.addf %374, %102 : f32
      %393 = arith.mulf %392, %3 : f32
      %cst_103 = arith.constant 0.000000e+00 : f32
      %394 = arith.cmpf olt, %393, %cst_103 : f32
      %395 = math.ceil %393 : f32
      %396 = math.floor %393 : f32
      %397 = arith.select %394, %395, %396 : f32
      %398 = arith.mulf %397, %1 : f32
      %399 = arith.subf %392, %398 : f32
      %400 = arith.mulf %399, %399 : f32
      %cst_104 = arith.constant 0.000000e+00 : f32
      %401 = arith.subf %cst_104, %400 : f32
      %402 = arith.mulf %401, %cst_51 : f32
      %403 = math.exp %402 : f32
      %404 = arith.mulf %4, %403 : f32
      %405 = vector.broadcast %392 : f32 to vector<1x64xf32>
      %406 = arith.mulf %405, %48 : vector<1x64xf32>
      %407 = vector.broadcast %404 : f32 to vector<1x64xf32>
      %408 = arith.addf %49, %407 : vector<1x64xf32>
      %cst_105 = arith.constant dense<0.000000e+00> : vector<8x64xf32>
      %409 = tpu.matmul %372, %41, %cst_105 {dimension_numbers = #tpu.dot_dimension_numbers<[1], [0], [0], [1], [0, 0, 1, 1], [], []>} : vector<8x64xf32>, vector<64x64xf32>, vector<8x64xf32> -> vector<8x64xf32>
      %410 = arith.addf %409, %47 : vector<8x64xf32>
      %411 = vector.broadcast %317 : vector<1x64xf32> to vector<8x64xf32>
      %412 = arith.addf %410, %411 : vector<8x64xf32>
      %413 = math.tanh %412 : vector<8x64xf32>
      %cst_106 = arith.constant dense<0.000000e+00> : vector<8x64xf32>
      %414 = tpu.matmul %413, %42, %cst_106 {dimension_numbers = #tpu.dot_dimension_numbers<[1], [0], [0], [1], [0, 0, 1, 1], [], []>} : vector<8x64xf32>, vector<64x64xf32>, vector<8x64xf32> -> vector<8x64xf32>
      %415 = vector.broadcast %319 : vector<1x64xf32> to vector<8x64xf32>
      %416 = arith.addf %414, %415 : vector<8x64xf32>
      %417 = vector.broadcast %104 : f32 to vector<8x64xf32>
      %418 = arith.mulf %417, %416 : vector<8x64xf32>
      %419 = arith.addf %372, %418 : vector<8x64xf32>
      %420 = vector.broadcast %103 : f32 to vector<8x64xf32>
      %421 = arith.mulf %420, %416 : vector<8x64xf32>
      %422 = arith.addf %372, %421 : vector<8x64xf32>
      %cst_107 = arith.constant dense<0.000000e+00> : vector<8x64xf32>
      %423 = tpu.matmul %422, %41, %cst_107 {dimension_numbers = #tpu.dot_dimension_numbers<[1], [0], [0], [1], [0, 0, 1, 1], [], []>} : vector<8x64xf32>, vector<64x64xf32>, vector<8x64xf32> -> vector<8x64xf32>
      %424 = arith.addf %423, %47 : vector<8x64xf32>
      %425 = vector.broadcast %389 : vector<1x64xf32> to vector<8x64xf32>
      %426 = arith.addf %424, %425 : vector<8x64xf32>
      %427 = math.tanh %426 : vector<8x64xf32>
      %cst_108 = arith.constant dense<0.000000e+00> : vector<8x64xf32>
      %428 = tpu.matmul %427, %42, %cst_108 {dimension_numbers = #tpu.dot_dimension_numbers<[1], [0], [0], [1], [0, 0, 1, 1], [], []>} : vector<8x64xf32>, vector<64x64xf32>, vector<8x64xf32> -> vector<8x64xf32>
      %429 = vector.broadcast %391 : vector<1x64xf32> to vector<8x64xf32>
      %430 = arith.addf %428, %429 : vector<8x64xf32>
      %431 = vector.broadcast %105 : f32 to vector<8x64xf32>
      %432 = arith.mulf %431, %430 : vector<8x64xf32>
      %433 = arith.addf %419, %432 : vector<8x64xf32>
      %434 = vector.broadcast %103 : f32 to vector<8x64xf32>
      %435 = arith.mulf %434, %430 : vector<8x64xf32>
      %436 = arith.addf %372, %435 : vector<8x64xf32>
      %cst_109 = arith.constant dense<0.000000e+00> : vector<8x64xf32>
      %437 = tpu.matmul %436, %41, %cst_109 {dimension_numbers = #tpu.dot_dimension_numbers<[1], [0], [0], [1], [0, 0, 1, 1], [], []>} : vector<8x64xf32>, vector<64x64xf32>, vector<8x64xf32> -> vector<8x64xf32>
      %438 = arith.addf %437, %47 : vector<8x64xf32>
      %439 = vector.broadcast %389 : vector<1x64xf32> to vector<8x64xf32>
      %440 = arith.addf %438, %439 : vector<8x64xf32>
      %441 = math.tanh %440 : vector<8x64xf32>
      %cst_110 = arith.constant dense<0.000000e+00> : vector<8x64xf32>
      %442 = tpu.matmul %441, %42, %cst_110 {dimension_numbers = #tpu.dot_dimension_numbers<[1], [0], [0], [1], [0, 0, 1, 1], [], []>} : vector<8x64xf32>, vector<64x64xf32>, vector<8x64xf32> -> vector<8x64xf32>
      %443 = vector.broadcast %391 : vector<1x64xf32> to vector<8x64xf32>
      %444 = arith.addf %442, %443 : vector<8x64xf32>
      %445 = vector.broadcast %105 : f32 to vector<8x64xf32>
      %446 = arith.mulf %445, %444 : vector<8x64xf32>
      %447 = arith.addf %433, %446 : vector<8x64xf32>
      %448 = vector.broadcast %102 : f32 to vector<8x64xf32>
      %449 = arith.mulf %448, %444 : vector<8x64xf32>
      %450 = arith.addf %372, %449 : vector<8x64xf32>
      %cst_111 = arith.constant dense<0.000000e+00> : vector<8x64xf32>
      %451 = tpu.matmul %450, %41, %cst_111 {dimension_numbers = #tpu.dot_dimension_numbers<[1], [0], [0], [1], [0, 0, 1, 1], [], []>} : vector<8x64xf32>, vector<64x64xf32>, vector<8x64xf32> -> vector<8x64xf32>
      %452 = arith.addf %451, %47 : vector<8x64xf32>
      %453 = vector.broadcast %406 : vector<1x64xf32> to vector<8x64xf32>
      %454 = arith.addf %452, %453 : vector<8x64xf32>
      %455 = math.tanh %454 : vector<8x64xf32>
      %cst_112 = arith.constant dense<0.000000e+00> : vector<8x64xf32>
      %456 = tpu.matmul %455, %42, %cst_112 {dimension_numbers = #tpu.dot_dimension_numbers<[1], [0], [0], [1], [0, 0, 1, 1], [], []>} : vector<8x64xf32>, vector<64x64xf32>, vector<8x64xf32> -> vector<8x64xf32>
      %457 = vector.broadcast %408 : vector<1x64xf32> to vector<8x64xf32>
      %458 = arith.addf %456, %457 : vector<8x64xf32>
      %459 = vector.broadcast %104 : f32 to vector<8x64xf32>
      %460 = arith.mulf %459, %458 : vector<8x64xf32>
      %461 = arith.addf %447, %460 : vector<8x64xf32>
      %cst_113 = arith.constant 4.000000e+00 : f32
      %462 = arith.mulf %102, %cst_113 : f32
      %463 = arith.addf %98, %462 : f32
      %464 = arith.addf %463, %103 : f32
      %465 = arith.mulf %464, %3 : f32
      %cst_114 = arith.constant 0.000000e+00 : f32
      %466 = arith.cmpf olt, %465, %cst_114 : f32
      %467 = math.ceil %465 : f32
      %468 = math.floor %465 : f32
      %469 = arith.select %466, %467, %468 : f32
      %470 = arith.mulf %469, %1 : f32
      %471 = arith.subf %464, %470 : f32
      %472 = arith.mulf %471, %471 : f32
      %cst_115 = arith.constant 0.000000e+00 : f32
      %473 = arith.subf %cst_115, %472 : f32
      %474 = arith.mulf %473, %cst_51 : f32
      %475 = math.exp %474 : f32
      %476 = arith.mulf %4, %475 : f32
      %477 = vector.broadcast %464 : f32 to vector<1x64xf32>
      %478 = arith.mulf %477, %48 : vector<1x64xf32>
      %479 = vector.broadcast %476 : f32 to vector<1x64xf32>
      %480 = arith.addf %49, %479 : vector<1x64xf32>
      %481 = arith.addf %463, %102 : f32
      %482 = arith.mulf %481, %3 : f32
      %cst_116 = arith.constant 0.000000e+00 : f32
      %483 = arith.cmpf olt, %482, %cst_116 : f32
      %484 = math.ceil %482 : f32
      %485 = math.floor %482 : f32
      %486 = arith.select %483, %484, %485 : f32
      %487 = arith.mulf %486, %1 : f32
      %488 = arith.subf %481, %487 : f32
      %489 = arith.mulf %488, %488 : f32
      %cst_117 = arith.constant 0.000000e+00 : f32
      %490 = arith.subf %cst_117, %489 : f32
      %491 = arith.mulf %490, %cst_51 : f32
      %492 = math.exp %491 : f32
      %493 = arith.mulf %4, %492 : f32
      %494 = vector.broadcast %481 : f32 to vector<1x64xf32>
      %495 = arith.mulf %494, %48 : vector<1x64xf32>
      %496 = vector.broadcast %493 : f32 to vector<1x64xf32>
      %497 = arith.addf %49, %496 : vector<1x64xf32>
      %cst_118 = arith.constant dense<0.000000e+00> : vector<8x64xf32>
      %498 = tpu.matmul %461, %41, %cst_118 {dimension_numbers = #tpu.dot_dimension_numbers<[1], [0], [0], [1], [0, 0, 1, 1], [], []>} : vector<8x64xf32>, vector<64x64xf32>, vector<8x64xf32> -> vector<8x64xf32>
      %499 = arith.addf %498, %47 : vector<8x64xf32>
      %500 = vector.broadcast %406 : vector<1x64xf32> to vector<8x64xf32>
      %501 = arith.addf %499, %500 : vector<8x64xf32>
      %502 = math.tanh %501 : vector<8x64xf32>
      %cst_119 = arith.constant dense<0.000000e+00> : vector<8x64xf32>
      %503 = tpu.matmul %502, %42, %cst_119 {dimension_numbers = #tpu.dot_dimension_numbers<[1], [0], [0], [1], [0, 0, 1, 1], [], []>} : vector<8x64xf32>, vector<64x64xf32>, vector<8x64xf32> -> vector<8x64xf32>
      %504 = vector.broadcast %408 : vector<1x64xf32> to vector<8x64xf32>
      %505 = arith.addf %503, %504 : vector<8x64xf32>
      %506 = vector.broadcast %104 : f32 to vector<8x64xf32>
      %507 = arith.mulf %506, %505 : vector<8x64xf32>
      %508 = arith.addf %461, %507 : vector<8x64xf32>
      %509 = vector.broadcast %103 : f32 to vector<8x64xf32>
      %510 = arith.mulf %509, %505 : vector<8x64xf32>
      %511 = arith.addf %461, %510 : vector<8x64xf32>
      %cst_120 = arith.constant dense<0.000000e+00> : vector<8x64xf32>
      %512 = tpu.matmul %511, %41, %cst_120 {dimension_numbers = #tpu.dot_dimension_numbers<[1], [0], [0], [1], [0, 0, 1, 1], [], []>} : vector<8x64xf32>, vector<64x64xf32>, vector<8x64xf32> -> vector<8x64xf32>
      %513 = arith.addf %512, %47 : vector<8x64xf32>
      %514 = vector.broadcast %478 : vector<1x64xf32> to vector<8x64xf32>
      %515 = arith.addf %513, %514 : vector<8x64xf32>
      %516 = math.tanh %515 : vector<8x64xf32>
      %cst_121 = arith.constant dense<0.000000e+00> : vector<8x64xf32>
      %517 = tpu.matmul %516, %42, %cst_121 {dimension_numbers = #tpu.dot_dimension_numbers<[1], [0], [0], [1], [0, 0, 1, 1], [], []>} : vector<8x64xf32>, vector<64x64xf32>, vector<8x64xf32> -> vector<8x64xf32>
      %518 = vector.broadcast %480 : vector<1x64xf32> to vector<8x64xf32>
      %519 = arith.addf %517, %518 : vector<8x64xf32>
      %520 = vector.broadcast %105 : f32 to vector<8x64xf32>
      %521 = arith.mulf %520, %519 : vector<8x64xf32>
      %522 = arith.addf %508, %521 : vector<8x64xf32>
      %523 = vector.broadcast %103 : f32 to vector<8x64xf32>
      %524 = arith.mulf %523, %519 : vector<8x64xf32>
      %525 = arith.addf %461, %524 : vector<8x64xf32>
      %cst_122 = arith.constant dense<0.000000e+00> : vector<8x64xf32>
      %526 = tpu.matmul %525, %41, %cst_122 {dimension_numbers = #tpu.dot_dimension_numbers<[1], [0], [0], [1], [0, 0, 1, 1], [], []>} : vector<8x64xf32>, vector<64x64xf32>, vector<8x64xf32> -> vector<8x64xf32>
      %527 = arith.addf %526, %47 : vector<8x64xf32>
      %528 = vector.broadcast %478 : vector<1x64xf32> to vector<8x64xf32>
      %529 = arith.addf %527, %528 : vector<8x64xf32>
      %530 = math.tanh %529 : vector<8x64xf32>
      %cst_123 = arith.constant dense<0.000000e+00> : vector<8x64xf32>
      %531 = tpu.matmul %530, %42, %cst_123 {dimension_numbers = #tpu.dot_dimension_numbers<[1], [0], [0], [1], [0, 0, 1, 1], [], []>} : vector<8x64xf32>, vector<64x64xf32>, vector<8x64xf32> -> vector<8x64xf32>
      %532 = vector.broadcast %480 : vector<1x64xf32> to vector<8x64xf32>
      %533 = arith.addf %531, %532 : vector<8x64xf32>
      %534 = vector.broadcast %105 : f32 to vector<8x64xf32>
      %535 = arith.mulf %534, %533 : vector<8x64xf32>
      %536 = arith.addf %522, %535 : vector<8x64xf32>
      %537 = vector.broadcast %102 : f32 to vector<8x64xf32>
      %538 = arith.mulf %537, %533 : vector<8x64xf32>
      %539 = arith.addf %461, %538 : vector<8x64xf32>
      %cst_124 = arith.constant dense<0.000000e+00> : vector<8x64xf32>
      %540 = tpu.matmul %539, %41, %cst_124 {dimension_numbers = #tpu.dot_dimension_numbers<[1], [0], [0], [1], [0, 0, 1, 1], [], []>} : vector<8x64xf32>, vector<64x64xf32>, vector<8x64xf32> -> vector<8x64xf32>
      %541 = arith.addf %540, %47 : vector<8x64xf32>
      %542 = vector.broadcast %495 : vector<1x64xf32> to vector<8x64xf32>
      %543 = arith.addf %541, %542 : vector<8x64xf32>
      %544 = math.tanh %543 : vector<8x64xf32>
      %cst_125 = arith.constant dense<0.000000e+00> : vector<8x64xf32>
      %545 = tpu.matmul %544, %42, %cst_125 {dimension_numbers = #tpu.dot_dimension_numbers<[1], [0], [0], [1], [0, 0, 1, 1], [], []>} : vector<8x64xf32>, vector<64x64xf32>, vector<8x64xf32> -> vector<8x64xf32>
      %546 = vector.broadcast %497 : vector<1x64xf32> to vector<8x64xf32>
      %547 = arith.addf %545, %546 : vector<8x64xf32>
      %548 = vector.broadcast %104 : f32 to vector<8x64xf32>
      %549 = arith.mulf %548, %547 : vector<8x64xf32>
      %550 = arith.addf %536, %549 : vector<8x64xf32>
      %cst_126 = arith.constant 5.000000e+00 : f32
      %551 = arith.mulf %102, %cst_126 : f32
      %552 = arith.addf %98, %551 : f32
      %553 = arith.addf %552, %103 : f32
      %554 = arith.mulf %553, %3 : f32
      %cst_127 = arith.constant 0.000000e+00 : f32
      %555 = arith.cmpf olt, %554, %cst_127 : f32
      %556 = math.ceil %554 : f32
      %557 = math.floor %554 : f32
      %558 = arith.select %555, %556, %557 : f32
      %559 = arith.mulf %558, %1 : f32
      %560 = arith.subf %553, %559 : f32
      %561 = arith.mulf %560, %560 : f32
      %cst_128 = arith.constant 0.000000e+00 : f32
      %562 = arith.subf %cst_128, %561 : f32
      %563 = arith.mulf %562, %cst_51 : f32
      %564 = math.exp %563 : f32
      %565 = arith.mulf %4, %564 : f32
      %566 = vector.broadcast %553 : f32 to vector<1x64xf32>
      %567 = arith.mulf %566, %48 : vector<1x64xf32>
      %568 = vector.broadcast %565 : f32 to vector<1x64xf32>
      %569 = arith.addf %49, %568 : vector<1x64xf32>
      %570 = arith.addf %552, %102 : f32
      %571 = arith.mulf %570, %3 : f32
      %cst_129 = arith.constant 0.000000e+00 : f32
      %572 = arith.cmpf olt, %571, %cst_129 : f32
      %573 = math.ceil %571 : f32
      %574 = math.floor %571 : f32
      %575 = arith.select %572, %573, %574 : f32
      %576 = arith.mulf %575, %1 : f32
      %577 = arith.subf %570, %576 : f32
      %578 = arith.mulf %577, %577 : f32
      %cst_130 = arith.constant 0.000000e+00 : f32
      %579 = arith.subf %cst_130, %578 : f32
      %580 = arith.mulf %579, %cst_51 : f32
      %581 = math.exp %580 : f32
      %582 = arith.mulf %4, %581 : f32
      %583 = vector.broadcast %570 : f32 to vector<1x64xf32>
      %584 = arith.mulf %583, %48 : vector<1x64xf32>
      %585 = vector.broadcast %582 : f32 to vector<1x64xf32>
      %586 = arith.addf %49, %585 : vector<1x64xf32>
      %cst_131 = arith.constant dense<0.000000e+00> : vector<8x64xf32>
      %587 = tpu.matmul %550, %41, %cst_131 {dimension_numbers = #tpu.dot_dimension_numbers<[1], [0], [0], [1], [0, 0, 1, 1], [], []>} : vector<8x64xf32>, vector<64x64xf32>, vector<8x64xf32> -> vector<8x64xf32>
      %588 = arith.addf %587, %47 : vector<8x64xf32>
      %589 = vector.broadcast %495 : vector<1x64xf32> to vector<8x64xf32>
      %590 = arith.addf %588, %589 : vector<8x64xf32>
      %591 = math.tanh %590 : vector<8x64xf32>
      %cst_132 = arith.constant dense<0.000000e+00> : vector<8x64xf32>
      %592 = tpu.matmul %591, %42, %cst_132 {dimension_numbers = #tpu.dot_dimension_numbers<[1], [0], [0], [1], [0, 0, 1, 1], [], []>} : vector<8x64xf32>, vector<64x64xf32>, vector<8x64xf32> -> vector<8x64xf32>
      %593 = vector.broadcast %497 : vector<1x64xf32> to vector<8x64xf32>
      %594 = arith.addf %592, %593 : vector<8x64xf32>
      %595 = vector.broadcast %104 : f32 to vector<8x64xf32>
      %596 = arith.mulf %595, %594 : vector<8x64xf32>
      %597 = arith.addf %550, %596 : vector<8x64xf32>
      %598 = vector.broadcast %103 : f32 to vector<8x64xf32>
      %599 = arith.mulf %598, %594 : vector<8x64xf32>
      %600 = arith.addf %550, %599 : vector<8x64xf32>
      %cst_133 = arith.constant dense<0.000000e+00> : vector<8x64xf32>
      %601 = tpu.matmul %600, %41, %cst_133 {dimension_numbers = #tpu.dot_dimension_numbers<[1], [0], [0], [1], [0, 0, 1, 1], [], []>} : vector<8x64xf32>, vector<64x64xf32>, vector<8x64xf32> -> vector<8x64xf32>
      %602 = arith.addf %601, %47 : vector<8x64xf32>
      %603 = vector.broadcast %567 : vector<1x64xf32> to vector<8x64xf32>
      %604 = arith.addf %602, %603 : vector<8x64xf32>
      %605 = math.tanh %604 : vector<8x64xf32>
      %cst_134 = arith.constant dense<0.000000e+00> : vector<8x64xf32>
      %606 = tpu.matmul %605, %42, %cst_134 {dimension_numbers = #tpu.dot_dimension_numbers<[1], [0], [0], [1], [0, 0, 1, 1], [], []>} : vector<8x64xf32>, vector<64x64xf32>, vector<8x64xf32> -> vector<8x64xf32>
      %607 = vector.broadcast %569 : vector<1x64xf32> to vector<8x64xf32>
      %608 = arith.addf %606, %607 : vector<8x64xf32>
      %609 = vector.broadcast %105 : f32 to vector<8x64xf32>
      %610 = arith.mulf %609, %608 : vector<8x64xf32>
      %611 = arith.addf %597, %610 : vector<8x64xf32>
      %612 = vector.broadcast %103 : f32 to vector<8x64xf32>
      %613 = arith.mulf %612, %608 : vector<8x64xf32>
      %614 = arith.addf %550, %613 : vector<8x64xf32>
      %cst_135 = arith.constant dense<0.000000e+00> : vector<8x64xf32>
      %615 = tpu.matmul %614, %41, %cst_135 {dimension_numbers = #tpu.dot_dimension_numbers<[1], [0], [0], [1], [0, 0, 1, 1], [], []>} : vector<8x64xf32>, vector<64x64xf32>, vector<8x64xf32> -> vector<8x64xf32>
      %616 = arith.addf %615, %47 : vector<8x64xf32>
      %617 = vector.broadcast %567 : vector<1x64xf32> to vector<8x64xf32>
      %618 = arith.addf %616, %617 : vector<8x64xf32>
      %619 = math.tanh %618 : vector<8x64xf32>
      %cst_136 = arith.constant dense<0.000000e+00> : vector<8x64xf32>
      %620 = tpu.matmul %619, %42, %cst_136 {dimension_numbers = #tpu.dot_dimension_numbers<[1], [0], [0], [1], [0, 0, 1, 1], [], []>} : vector<8x64xf32>, vector<64x64xf32>, vector<8x64xf32> -> vector<8x64xf32>
      %621 = vector.broadcast %569 : vector<1x64xf32> to vector<8x64xf32>
      %622 = arith.addf %620, %621 : vector<8x64xf32>
      %623 = vector.broadcast %105 : f32 to vector<8x64xf32>
      %624 = arith.mulf %623, %622 : vector<8x64xf32>
      %625 = arith.addf %611, %624 : vector<8x64xf32>
      %626 = vector.broadcast %102 : f32 to vector<8x64xf32>
      %627 = arith.mulf %626, %622 : vector<8x64xf32>
      %628 = arith.addf %550, %627 : vector<8x64xf32>
      %cst_137 = arith.constant dense<0.000000e+00> : vector<8x64xf32>
      %629 = tpu.matmul %628, %41, %cst_137 {dimension_numbers = #tpu.dot_dimension_numbers<[1], [0], [0], [1], [0, 0, 1, 1], [], []>} : vector<8x64xf32>, vector<64x64xf32>, vector<8x64xf32> -> vector<8x64xf32>
      %630 = arith.addf %629, %47 : vector<8x64xf32>
      %631 = vector.broadcast %584 : vector<1x64xf32> to vector<8x64xf32>
      %632 = arith.addf %630, %631 : vector<8x64xf32>
      %633 = math.tanh %632 : vector<8x64xf32>
      %cst_138 = arith.constant dense<0.000000e+00> : vector<8x64xf32>
      %634 = tpu.matmul %633, %42, %cst_138 {dimension_numbers = #tpu.dot_dimension_numbers<[1], [0], [0], [1], [0, 0, 1, 1], [], []>} : vector<8x64xf32>, vector<64x64xf32>, vector<8x64xf32> -> vector<8x64xf32>
      %635 = vector.broadcast %586 : vector<1x64xf32> to vector<8x64xf32>
      %636 = arith.addf %634, %635 : vector<8x64xf32>
      %637 = vector.broadcast %104 : f32 to vector<8x64xf32>
      %638 = arith.mulf %637, %636 : vector<8x64xf32>
      %639 = arith.addf %625, %638 : vector<8x64xf32>
      %cst_139 = arith.constant 6.000000e+00 : f32
      %640 = arith.mulf %102, %cst_139 : f32
      %641 = arith.addf %98, %640 : f32
      %642 = arith.addf %641, %103 : f32
      %643 = arith.mulf %642, %3 : f32
      %cst_140 = arith.constant 0.000000e+00 : f32
      %644 = arith.cmpf olt, %643, %cst_140 : f32
      %645 = math.ceil %643 : f32
      %646 = math.floor %643 : f32
      %647 = arith.select %644, %645, %646 : f32
      %648 = arith.mulf %647, %1 : f32
      %649 = arith.subf %642, %648 : f32
      %650 = arith.mulf %649, %649 : f32
      %cst_141 = arith.constant 0.000000e+00 : f32
      %651 = arith.subf %cst_141, %650 : f32
      %652 = arith.mulf %651, %cst_51 : f32
      %653 = math.exp %652 : f32
      %654 = arith.mulf %4, %653 : f32
      %655 = vector.broadcast %642 : f32 to vector<1x64xf32>
      %656 = arith.mulf %655, %48 : vector<1x64xf32>
      %657 = vector.broadcast %654 : f32 to vector<1x64xf32>
      %658 = arith.addf %49, %657 : vector<1x64xf32>
      %659 = arith.addf %641, %102 : f32
      %660 = arith.mulf %659, %3 : f32
      %cst_142 = arith.constant 0.000000e+00 : f32
      %661 = arith.cmpf olt, %660, %cst_142 : f32
      %662 = math.ceil %660 : f32
      %663 = math.floor %660 : f32
      %664 = arith.select %661, %662, %663 : f32
      %665 = arith.mulf %664, %1 : f32
      %666 = arith.subf %659, %665 : f32
      %667 = arith.mulf %666, %666 : f32
      %cst_143 = arith.constant 0.000000e+00 : f32
      %668 = arith.subf %cst_143, %667 : f32
      %669 = arith.mulf %668, %cst_51 : f32
      %670 = math.exp %669 : f32
      %671 = arith.mulf %4, %670 : f32
      %672 = vector.broadcast %659 : f32 to vector<1x64xf32>
      %673 = arith.mulf %672, %48 : vector<1x64xf32>
      %674 = vector.broadcast %671 : f32 to vector<1x64xf32>
      %675 = arith.addf %49, %674 : vector<1x64xf32>
      %cst_144 = arith.constant dense<0.000000e+00> : vector<8x64xf32>
      %676 = tpu.matmul %639, %41, %cst_144 {dimension_numbers = #tpu.dot_dimension_numbers<[1], [0], [0], [1], [0, 0, 1, 1], [], []>} : vector<8x64xf32>, vector<64x64xf32>, vector<8x64xf32> -> vector<8x64xf32>
      %677 = arith.addf %676, %47 : vector<8x64xf32>
      %678 = vector.broadcast %584 : vector<1x64xf32> to vector<8x64xf32>
      %679 = arith.addf %677, %678 : vector<8x64xf32>
      %680 = math.tanh %679 : vector<8x64xf32>
      %cst_145 = arith.constant dense<0.000000e+00> : vector<8x64xf32>
      %681 = tpu.matmul %680, %42, %cst_145 {dimension_numbers = #tpu.dot_dimension_numbers<[1], [0], [0], [1], [0, 0, 1, 1], [], []>} : vector<8x64xf32>, vector<64x64xf32>, vector<8x64xf32> -> vector<8x64xf32>
      %682 = vector.broadcast %586 : vector<1x64xf32> to vector<8x64xf32>
      %683 = arith.addf %681, %682 : vector<8x64xf32>
      %684 = vector.broadcast %104 : f32 to vector<8x64xf32>
      %685 = arith.mulf %684, %683 : vector<8x64xf32>
      %686 = arith.addf %639, %685 : vector<8x64xf32>
      %687 = vector.broadcast %103 : f32 to vector<8x64xf32>
      %688 = arith.mulf %687, %683 : vector<8x64xf32>
      %689 = arith.addf %639, %688 : vector<8x64xf32>
      %cst_146 = arith.constant dense<0.000000e+00> : vector<8x64xf32>
      %690 = tpu.matmul %689, %41, %cst_146 {dimension_numbers = #tpu.dot_dimension_numbers<[1], [0], [0], [1], [0, 0, 1, 1], [], []>} : vector<8x64xf32>, vector<64x64xf32>, vector<8x64xf32> -> vector<8x64xf32>
      %691 = arith.addf %690, %47 : vector<8x64xf32>
      %692 = vector.broadcast %656 : vector<1x64xf32> to vector<8x64xf32>
      %693 = arith.addf %691, %692 : vector<8x64xf32>
      %694 = math.tanh %693 : vector<8x64xf32>
      %cst_147 = arith.constant dense<0.000000e+00> : vector<8x64xf32>
      %695 = tpu.matmul %694, %42, %cst_147 {dimension_numbers = #tpu.dot_dimension_numbers<[1], [0], [0], [1], [0, 0, 1, 1], [], []>} : vector<8x64xf32>, vector<64x64xf32>, vector<8x64xf32> -> vector<8x64xf32>
      %696 = vector.broadcast %658 : vector<1x64xf32> to vector<8x64xf32>
      %697 = arith.addf %695, %696 : vector<8x64xf32>
      %698 = vector.broadcast %105 : f32 to vector<8x64xf32>
      %699 = arith.mulf %698, %697 : vector<8x64xf32>
      %700 = arith.addf %686, %699 : vector<8x64xf32>
      %701 = vector.broadcast %103 : f32 to vector<8x64xf32>
      %702 = arith.mulf %701, %697 : vector<8x64xf32>
      %703 = arith.addf %639, %702 : vector<8x64xf32>
      %cst_148 = arith.constant dense<0.000000e+00> : vector<8x64xf32>
      %704 = tpu.matmul %703, %41, %cst_148 {dimension_numbers = #tpu.dot_dimension_numbers<[1], [0], [0], [1], [0, 0, 1, 1], [], []>} : vector<8x64xf32>, vector<64x64xf32>, vector<8x64xf32> -> vector<8x64xf32>
      %705 = arith.addf %704, %47 : vector<8x64xf32>
      %706 = vector.broadcast %656 : vector<1x64xf32> to vector<8x64xf32>
      %707 = arith.addf %705, %706 : vector<8x64xf32>
      %708 = math.tanh %707 : vector<8x64xf32>
      %cst_149 = arith.constant dense<0.000000e+00> : vector<8x64xf32>
      %709 = tpu.matmul %708, %42, %cst_149 {dimension_numbers = #tpu.dot_dimension_numbers<[1], [0], [0], [1], [0, 0, 1, 1], [], []>} : vector<8x64xf32>, vector<64x64xf32>, vector<8x64xf32> -> vector<8x64xf32>
      %710 = vector.broadcast %658 : vector<1x64xf32> to vector<8x64xf32>
      %711 = arith.addf %709, %710 : vector<8x64xf32>
      %712 = vector.broadcast %105 : f32 to vector<8x64xf32>
      %713 = arith.mulf %712, %711 : vector<8x64xf32>
      %714 = arith.addf %700, %713 : vector<8x64xf32>
      %715 = vector.broadcast %102 : f32 to vector<8x64xf32>
      %716 = arith.mulf %715, %711 : vector<8x64xf32>
      %717 = arith.addf %639, %716 : vector<8x64xf32>
      %cst_150 = arith.constant dense<0.000000e+00> : vector<8x64xf32>
      %718 = tpu.matmul %717, %41, %cst_150 {dimension_numbers = #tpu.dot_dimension_numbers<[1], [0], [0], [1], [0, 0, 1, 1], [], []>} : vector<8x64xf32>, vector<64x64xf32>, vector<8x64xf32> -> vector<8x64xf32>
      %719 = arith.addf %718, %47 : vector<8x64xf32>
      %720 = vector.broadcast %673 : vector<1x64xf32> to vector<8x64xf32>
      %721 = arith.addf %719, %720 : vector<8x64xf32>
      %722 = math.tanh %721 : vector<8x64xf32>
      %cst_151 = arith.constant dense<0.000000e+00> : vector<8x64xf32>
      %723 = tpu.matmul %722, %42, %cst_151 {dimension_numbers = #tpu.dot_dimension_numbers<[1], [0], [0], [1], [0, 0, 1, 1], [], []>} : vector<8x64xf32>, vector<64x64xf32>, vector<8x64xf32> -> vector<8x64xf32>
      %724 = vector.broadcast %675 : vector<1x64xf32> to vector<8x64xf32>
      %725 = arith.addf %723, %724 : vector<8x64xf32>
      %726 = vector.broadcast %104 : f32 to vector<8x64xf32>
      %727 = arith.mulf %726, %725 : vector<8x64xf32>
      %728 = arith.addf %714, %727 : vector<8x64xf32>
      %cst_152 = arith.constant 7.000000e+00 : f32
      %729 = arith.mulf %102, %cst_152 : f32
      %730 = arith.addf %98, %729 : f32
      %731 = arith.addf %730, %103 : f32
      %732 = arith.mulf %731, %3 : f32
      %cst_153 = arith.constant 0.000000e+00 : f32
      %733 = arith.cmpf olt, %732, %cst_153 : f32
      %734 = math.ceil %732 : f32
      %735 = math.floor %732 : f32
      %736 = arith.select %733, %734, %735 : f32
      %737 = arith.mulf %736, %1 : f32
      %738 = arith.subf %731, %737 : f32
      %739 = arith.mulf %738, %738 : f32
      %cst_154 = arith.constant 0.000000e+00 : f32
      %740 = arith.subf %cst_154, %739 : f32
      %741 = arith.mulf %740, %cst_51 : f32
      %742 = math.exp %741 : f32
      %743 = arith.mulf %4, %742 : f32
      %744 = vector.broadcast %731 : f32 to vector<1x64xf32>
      %745 = arith.mulf %744, %48 : vector<1x64xf32>
      %746 = vector.broadcast %743 : f32 to vector<1x64xf32>
      %747 = arith.addf %49, %746 : vector<1x64xf32>
      %748 = arith.addf %730, %102 : f32
      %749 = arith.mulf %748, %3 : f32
      %cst_155 = arith.constant 0.000000e+00 : f32
      %750 = arith.cmpf olt, %749, %cst_155 : f32
      %751 = math.ceil %749 : f32
      %752 = math.floor %749 : f32
      %753 = arith.select %750, %751, %752 : f32
      %754 = arith.mulf %753, %1 : f32
      %755 = arith.subf %748, %754 : f32
      %756 = arith.mulf %755, %755 : f32
      %cst_156 = arith.constant 0.000000e+00 : f32
      %757 = arith.subf %cst_156, %756 : f32
      %758 = arith.mulf %757, %cst_51 : f32
      %759 = math.exp %758 : f32
      %760 = arith.mulf %4, %759 : f32
      %761 = vector.broadcast %748 : f32 to vector<1x64xf32>
      %762 = arith.mulf %761, %48 : vector<1x64xf32>
      %763 = vector.broadcast %760 : f32 to vector<1x64xf32>
      %764 = arith.addf %49, %763 : vector<1x64xf32>
      %cst_157 = arith.constant dense<0.000000e+00> : vector<8x64xf32>
      %765 = tpu.matmul %728, %41, %cst_157 {dimension_numbers = #tpu.dot_dimension_numbers<[1], [0], [0], [1], [0, 0, 1, 1], [], []>} : vector<8x64xf32>, vector<64x64xf32>, vector<8x64xf32> -> vector<8x64xf32>
      %766 = arith.addf %765, %47 : vector<8x64xf32>
      %767 = vector.broadcast %673 : vector<1x64xf32> to vector<8x64xf32>
      %768 = arith.addf %766, %767 : vector<8x64xf32>
      %769 = math.tanh %768 : vector<8x64xf32>
      %cst_158 = arith.constant dense<0.000000e+00> : vector<8x64xf32>
      %770 = tpu.matmul %769, %42, %cst_158 {dimension_numbers = #tpu.dot_dimension_numbers<[1], [0], [0], [1], [0, 0, 1, 1], [], []>} : vector<8x64xf32>, vector<64x64xf32>, vector<8x64xf32> -> vector<8x64xf32>
      %771 = vector.broadcast %675 : vector<1x64xf32> to vector<8x64xf32>
      %772 = arith.addf %770, %771 : vector<8x64xf32>
      %773 = vector.broadcast %104 : f32 to vector<8x64xf32>
      %774 = arith.mulf %773, %772 : vector<8x64xf32>
      %775 = arith.addf %728, %774 : vector<8x64xf32>
      %776 = vector.broadcast %103 : f32 to vector<8x64xf32>
      %777 = arith.mulf %776, %772 : vector<8x64xf32>
      %778 = arith.addf %728, %777 : vector<8x64xf32>
      %cst_159 = arith.constant dense<0.000000e+00> : vector<8x64xf32>
      %779 = tpu.matmul %778, %41, %cst_159 {dimension_numbers = #tpu.dot_dimension_numbers<[1], [0], [0], [1], [0, 0, 1, 1], [], []>} : vector<8x64xf32>, vector<64x64xf32>, vector<8x64xf32> -> vector<8x64xf32>
      %780 = arith.addf %779, %47 : vector<8x64xf32>
      %781 = vector.broadcast %745 : vector<1x64xf32> to vector<8x64xf32>
      %782 = arith.addf %780, %781 : vector<8x64xf32>
      %783 = math.tanh %782 : vector<8x64xf32>
      %cst_160 = arith.constant dense<0.000000e+00> : vector<8x64xf32>
      %784 = tpu.matmul %783, %42, %cst_160 {dimension_numbers = #tpu.dot_dimension_numbers<[1], [0], [0], [1], [0, 0, 1, 1], [], []>} : vector<8x64xf32>, vector<64x64xf32>, vector<8x64xf32> -> vector<8x64xf32>
      %785 = vector.broadcast %747 : vector<1x64xf32> to vector<8x64xf32>
      %786 = arith.addf %784, %785 : vector<8x64xf32>
      %787 = vector.broadcast %105 : f32 to vector<8x64xf32>
      %788 = arith.mulf %787, %786 : vector<8x64xf32>
      %789 = arith.addf %775, %788 : vector<8x64xf32>
      %790 = vector.broadcast %103 : f32 to vector<8x64xf32>
      %791 = arith.mulf %790, %786 : vector<8x64xf32>
      %792 = arith.addf %728, %791 : vector<8x64xf32>
      %cst_161 = arith.constant dense<0.000000e+00> : vector<8x64xf32>
      %793 = tpu.matmul %792, %41, %cst_161 {dimension_numbers = #tpu.dot_dimension_numbers<[1], [0], [0], [1], [0, 0, 1, 1], [], []>} : vector<8x64xf32>, vector<64x64xf32>, vector<8x64xf32> -> vector<8x64xf32>
      %794 = arith.addf %793, %47 : vector<8x64xf32>
      %795 = vector.broadcast %745 : vector<1x64xf32> to vector<8x64xf32>
      %796 = arith.addf %794, %795 : vector<8x64xf32>
      %797 = math.tanh %796 : vector<8x64xf32>
      %cst_162 = arith.constant dense<0.000000e+00> : vector<8x64xf32>
      %798 = tpu.matmul %797, %42, %cst_162 {dimension_numbers = #tpu.dot_dimension_numbers<[1], [0], [0], [1], [0, 0, 1, 1], [], []>} : vector<8x64xf32>, vector<64x64xf32>, vector<8x64xf32> -> vector<8x64xf32>
      %799 = vector.broadcast %747 : vector<1x64xf32> to vector<8x64xf32>
      %800 = arith.addf %798, %799 : vector<8x64xf32>
      %801 = vector.broadcast %105 : f32 to vector<8x64xf32>
      %802 = arith.mulf %801, %800 : vector<8x64xf32>
      %803 = arith.addf %789, %802 : vector<8x64xf32>
      %804 = vector.broadcast %102 : f32 to vector<8x64xf32>
      %805 = arith.mulf %804, %800 : vector<8x64xf32>
      %806 = arith.addf %728, %805 : vector<8x64xf32>
      %cst_163 = arith.constant dense<0.000000e+00> : vector<8x64xf32>
      %807 = tpu.matmul %806, %41, %cst_163 {dimension_numbers = #tpu.dot_dimension_numbers<[1], [0], [0], [1], [0, 0, 1, 1], [], []>} : vector<8x64xf32>, vector<64x64xf32>, vector<8x64xf32> -> vector<8x64xf32>
      %808 = arith.addf %807, %47 : vector<8x64xf32>
      %809 = vector.broadcast %762 : vector<1x64xf32> to vector<8x64xf32>
      %810 = arith.addf %808, %809 : vector<8x64xf32>
      %811 = math.tanh %810 : vector<8x64xf32>
      %cst_164 = arith.constant dense<0.000000e+00> : vector<8x64xf32>
      %812 = tpu.matmul %811, %42, %cst_164 {dimension_numbers = #tpu.dot_dimension_numbers<[1], [0], [0], [1], [0, 0, 1, 1], [], []>} : vector<8x64xf32>, vector<64x64xf32>, vector<8x64xf32> -> vector<8x64xf32>
      %813 = vector.broadcast %764 : vector<1x64xf32> to vector<8x64xf32>
      %814 = arith.addf %812, %813 : vector<8x64xf32>
      %815 = vector.broadcast %104 : f32 to vector<8x64xf32>
      %816 = arith.mulf %815, %814 : vector<8x64xf32>
      %817 = arith.addf %803, %816 : vector<8x64xf32>
      %818 = vector.broadcast %arg21 : i32 to vector<1x8xi32>
      %819 = arith.cmpi eq, %52, %818 : vector<1x8xi32>
      %820 = vector.broadcast %50 : vector<1x64xf32> to vector<8x64xf32>
      %821 = arith.mulf %817, %820 : vector<8x64xf32>
      %cst_165 = arith.constant dense<0.000000e+00> : vector<8xf32>
      %822 = vector.multi_reduction <add>, %821, %cst_165 [1] : vector<8x64xf32> to vector<8xf32>
      %823 = vector.shape_cast %822 : vector<8xf32> to vector<8x1xf32>
      %824 = vector.broadcast %51 : vector<1x1xf32> to vector<8x1xf32>
      %825 = arith.addf %823, %824 : vector<8x1xf32>
      %cst_166 = arith.constant 0.000000e+00 : f32
      %826 = vector.broadcast %cst_166 : f32 to vector<8x1xf32>
      %827 = arith.maximumf %825, %826 : vector<8x1xf32>
      %828 = math.absf %825 : vector<8x1xf32>
      %cst_167 = arith.constant 0.000000e+00 : f32
      %829 = vector.broadcast %cst_167 : f32 to vector<8x1xf32>
      %830 = arith.subf %829, %828 : vector<8x1xf32>
      %831 = math.exp %830 : vector<8x1xf32>
      %832 = math.log1p %831 : vector<8x1xf32>
      %833 = arith.addf %827, %832 : vector<8x1xf32>
      %834 = arith.addf %833, %35 : vector<8x1xf32>
      %835 = vector.shape_cast %819 : vector<1x8xi1> to vector<1x8xi1>
      %836 = vector.broadcast %835 : vector<1x8xi1> to vector<8x8xi1>
      %837 = vector.shape_cast %834 : vector<8x1xf32> to vector<8x1xf32>
      %838 = vector.broadcast %837 : vector<8x1xf32> to vector<8x8xf32>
      %839 = arith.select %836, %838, %arg23 : vector<8x8xi1>, vector<8x8xf32>
      scf.yield %817, %839, %762, %764 : vector<8x64xf32>, vector<8x8xf32>, vector<1x64xf32>, vector<1x64xf32>
    }
    %c7_i32_53 = arith.constant 7 : i32
    %c0_54 = arith.constant 0 : index
    %c0_55 = arith.constant 0 : index
    %95 = vector.load %arg20[%c0_54, %c0_55] : memref<8x8xf32, #tpu.memory_space<vmem>>, vector<8x8xf32>
    tpu.vector_store %arg20[%c0_54, %c0_55], %94#1 {strides = array<i32>} : memref<8x8xf32, #tpu.memory_space<vmem>>, vector<8x8xf32>,
    return
  }
  func.func @transform_0(%arg0: i32) -> i32 {
    %c0_i32 = arith.constant 0 : i32
    %c0_i32_0 = arith.constant 0 : i32
    return %c0_i32 : i32
  }
  func.func @transform_1(%arg0: i32) -> i32 {
    %c0_i32 = arith.constant 0 : i32
    %c0_i32_0 = arith.constant 0 : i32
    return %c0_i32 : i32
  }
  func.func @transform_2(%arg0: i32) -> (i32, i32) {
    %c0_i32 = arith.constant 0 : i32
    %c0_i32_0 = arith.constant 0 : i32
    return %arg0, %c0_i32 : i32, i32
  }
  func.func @transform_3(%arg0: i32) -> (i32, i32) {
    %c0_i32 = arith.constant 0 : i32
    %c0_i32_0 = arith.constant 0 : i32
    %c0_i32_1 = arith.constant 0 : i32
    return %c0_i32, %c0_i32_0 : i32, i32
  }
  func.func @transform_4(%arg0: i32) -> (i32, i32) {
    %c0_i32 = arith.constant 0 : i32
    %c0_i32_0 = arith.constant 0 : i32
    %c0_i32_1 = arith.constant 0 : i32
    return %c0_i32, %c0_i32_0 : i32, i32
  }
  func.func @transform_5(%arg0: i32) -> (i32, i32) {
    %c0_i32 = arith.constant 0 : i32
    %c0_i32_0 = arith.constant 0 : i32
    %c0_i32_1 = arith.constant 0 : i32
    return %c0_i32, %c0_i32_0 : i32, i32
  }
  func.func @transform_6(%arg0: i32) -> (i32, i32) {
    %c0_i32 = arith.constant 0 : i32
    %c0_i32_0 = arith.constant 0 : i32
    %c0_i32_1 = arith.constant 0 : i32
    return %c0_i32, %c0_i32_0 : i32, i32
  }
  func.func @transform_7(%arg0: i32) -> (i32, i32) {
    %c0_i32 = arith.constant 0 : i32
    %c0_i32_0 = arith.constant 0 : i32
    %c0_i32_1 = arith.constant 0 : i32
    return %c0_i32, %c0_i32_0 : i32, i32
  }
  func.func @transform_8(%arg0: i32) -> (i32, i32) {
    %c0_i32 = arith.constant 0 : i32
    %c0_i32_0 = arith.constant 0 : i32
    %c0_i32_1 = arith.constant 0 : i32
    return %c0_i32, %c0_i32_0 : i32, i32
  }
  func.func @transform_9(%arg0: i32) -> (i32, i32) {
    %c0_i32 = arith.constant 0 : i32
    %c0_i32_0 = arith.constant 0 : i32
    %c0_i32_1 = arith.constant 0 : i32
    return %c0_i32, %c0_i32_0 : i32, i32
  }
  func.func @transform_10(%arg0: i32) -> (i32, i32) {
    %c0_i32 = arith.constant 0 : i32
    %c0_i32_0 = arith.constant 0 : i32
    %c0_i32_1 = arith.constant 0 : i32
    return %c0_i32, %c0_i32_0 : i32, i32
  }
  func.func @transform_11(%arg0: i32) -> (i32, i32) {
    %c0_i32 = arith.constant 0 : i32
    %c0_i32_0 = arith.constant 0 : i32
    %c0_i32_1 = arith.constant 0 : i32
    return %c0_i32, %c0_i32_0 : i32, i32
  }
  func.func @transform_12(%arg0: i32) -> (i32, i32) {
    %c0_i32 = arith.constant 0 : i32
    %c0_i32_0 = arith.constant 0 : i32
    %c0_i32_1 = arith.constant 0 : i32
    return %c0_i32, %c0_i32_0 : i32, i32
  }
  func.func @transform_13(%arg0: i32) -> (i32, i32) {
    %c0_i32 = arith.constant 0 : i32
    %c0_i32_0 = arith.constant 0 : i32
    %c0_i32_1 = arith.constant 0 : i32
    return %c0_i32, %c0_i32_0 : i32, i32
  }
  func.func @transform_14(%arg0: i32) -> (i32, i32) {
    %c0_i32 = arith.constant 0 : i32
    %c0_i32_0 = arith.constant 0 : i32
    %c0_i32_1 = arith.constant 0 : i32
    return %c0_i32, %c0_i32_0 : i32, i32
  }
  func.func @transform_15(%arg0: i32) -> (i32, i32) {
    %c0_i32 = arith.constant 0 : i32
    %c0_i32_0 = arith.constant 0 : i32
    %c0_i32_1 = arith.constant 0 : i32
    return %c0_i32, %c0_i32_0 : i32, i32
  }
  func.func @transform_16(%arg0: i32) -> (i32, i32) {
    %c0_i32 = arith.constant 0 : i32
    %c0_i32_0 = arith.constant 0 : i32
    %c0_i32_1 = arith.constant 0 : i32
    return %c0_i32, %c0_i32_0 : i32, i32
  }
  func.func @transform_17(%arg0: i32) -> (i32, i32) {
    %c0_i32 = arith.constant 0 : i32
    %c0_i32_0 = arith.constant 0 : i32
    %c0_i32_1 = arith.constant 0 : i32
    return %c0_i32, %c0_i32_0 : i32, i32
  }
  func.func @transform_18(%arg0: i32) -> (i32, i32) {
    %c0_i32 = arith.constant 0 : i32
    %c0_i32_0 = arith.constant 0 : i32
    %c0_i32_1 = arith.constant 0 : i32
    return %c0_i32, %c0_i32_0 : i32, i32
  }
  func.func @transform_19(%arg0: i32) -> (i32, i32) {
    %c0_i32 = arith.constant 0 : i32
    %c0_i32_0 = arith.constant 0 : i32
    return %arg0, %c0_i32 : i32, i32
  }
}

</mosaic_0001>

<bundles_post_ra>
// kernel: tpu_custom_call.1
= control target key start
LH: loop header
LB: loop body
LE: loop exit
PB: predicated region body
PF: predicated region fallthrough
CT: control target
= control target key end

     0   :  { %s10703_s0 = inlined_call_operand.vmem [shape: f32[3], index: 0, kind: input, shape index: {}]   ;;  %s10704_s1 = inlined_call_operand.vmem [shape: f32[8], index: 1, kind: input, shape index: {}]   ;;  %s10705_s2 = inlined_call_operand.vmem [shape: f32[8,8], index: 2, kind: input, shape index: {}]   ;;  %s10706_s3 = inlined_call_operand.vmem [shape: f32[8,128], index: 3, kind: input, shape index: {}]   ;;  %s10707_s4 = inlined_call_operand.vmem [shape: f32[1,128], index: 4, kind: input, shape index: {}]   ;;  %s10708_s5 = inlined_call_operand.vmem [shape: f32[128,64], index: 5, kind: input, shape index: {}]   ;;  %s10709_s6 = inlined_call_operand.vmem [shape: f32[1,64], index: 6, kind: input, shape index: {}]   ;;  %s10710_s7 = inlined_call_operand.vmem [shape: f32[64,64], index: 7, kind: input, shape index: {}]   ;;  %s10711_s8 = inlined_call_operand.vmem [shape: f32[1,64], index: 8, kind: input, shape index: {}]   ;;  %s10712_s9 = inlined_call_operand.vmem [shape: f32[64,64], index: 9, kind: input, shape index: {}]   ;;  %s10713_s10 = inlined_call_operand.vmem [shape: f32[64,64], index: 10, kind: input, shape index: {}]   ;;  %s10714_s11 = inlined_call_operand.vmem [shape: f32[1,64], index: 11, kind: input, shape index: {}]   ;;  %s10715_s12 = inlined_call_operand.vmem [shape: f32[1,64], index: 12, kind: input, shape index: {}]   ;;  %s10716_s13 = inlined_call_operand.hbm [shape: f32[64,64], index: 13, kind: input, shape index: {}]   ;;  %s10717_s14 = inlined_call_operand.vmem [shape: f32[1,64], index: 14, kind: input, shape index: {}]   ;;  %s10718_s15 = inlined_call_operand.vmem [shape: f32[1,64], index: 15, kind: input, shape index: {}]   ;;  %s10719_s16 = inlined_call_operand.<no memory space> [shape: f32[1,1], index: 16, kind: input, shape index: {}]   ;;  %s10720_s17 = inlined_call_operand.vmem [shape: f32[1,64], index: 17, kind: input, shape index: {}]   ;;  %s10721_s19 = inlined_call_operand.hbm [shape: f32[8,8], index: 19, kind: output, shape index: {}]   ;;  %s10722_s18 = inlined_call_operand.<no memory space> [shape: f32[1,1], index: 18, kind: input, shape index: {}]  }
   0x1   :  { %10723 = sst [smem:[#allocation16_spill]] %s10703_s0  ;;  %v24_v0 = vstv %s10719_s16  ;;  %v26_v1 = vstv %s10722_s18 }
   0x2   :  { %10724 = sst [smem:[#allocation17_spill]] %s10704_s1  ;;  %25 = vst [vmem:[#allocation2] sm:$0x1] %v24_v0  ;;  %27 = vst [vmem:[#allocation3] sm:$0x1] %v26_v1 }
   0x3   :  { %10725 = sst [smem:[#allocation18_spill]] %s10705_s2 }
   0x4   :  { %10726 = sst [smem:[#allocation19_spill]] %s10706_s3 }
   0x5   :  { %28 = vsyncpa [#allocation7], 0 }
   0x6   :  { %29 = vsyncpa [#allocation9], 0 }
   0x7   :  { %30 = vsyncpa [#allocation5], 0 }
   0x8   :  { %31 = vsyncpa [#allocation6], 0  ;;  %s10727_s2 = sld [smem:[#allocation16_spill]]  ;;  %s10728_s3 = sld [smem:[#allocation17_spill]] }
   0xe   :  { %s38_s23 = sshll.u32 %s10727_s2, 4  ;;  %s48_s26 = sshll.u32 %s10728_s3, 4  ;;  %s39_s23 = int_to_ptr.vmem [resolvable:$true] %s38_s23  ;;  %s49_s26 = int_to_ptr.vmem [resolvable:$true] %s48_s26 }
   0xf   :  { %s9064_s16 = scalar_lea.vmem %s39_s23, 16  ;;  %p9069_p1 = scmp.lt.s32.totalorder %s39_s23, %s39_s23 }
  0x10   :  { %p9065_p0 = scmp.ne.s32.totalorder %s39_s23, %s9064_s16  ;;  %p9070_p2 = scmp.lt.s32.totalorder %s9064_s16, %s9064_s16 }
  0x12   :  { %p9071_p3 = por %p9070_p2, %p9069_p1 }
  0x14   :  { %p9072_p4 = pnand %p9071_p3, %p9065_p0 }
  0x16   :  { %9075 = shalt.err (!%p9072_p4)
}
  0x17   :  { %s9180_s18 = smov [#allocation4]   ;;  %s9076_s27 = scalar_lea.vmem %s49_s26, 16 }
  0x18   :  { %41 = dma.vmem_to_smem %s39_s23, 16, %s9180_s18, [#allocation7]  }
  0x19   :  { %p9077_p5 = scmp.ne.s32.totalorder %s49_s26, %s9076_s27  ;;  %p9081_p6 = scmp.lt.s32.totalorder %s49_s26, %s49_s26 }
  0x1a   :  { %p9082_p7 = scmp.lt.s32.totalorder %s9076_s27, %s9076_s27 }
  0x1c   :  { %p9083_p8 = por %p9082_p7, %p9081_p6 }
  0x1e   :  { %p9084_p9 = pnand %p9083_p8, %p9077_p5 }
  0x20   :  { %9087 = shalt.err (!%p9084_p9)
}
  0x21   :  { %s9181_s28 = smov [#allocation8]   ;;  %s9182_s29 = smov [#allocation10]  }
  0x22   :  { %51 = dma.vmem_to_smem %s49_s26, 16, %s9181_s28, [#allocation9]  }
  0x23   :  { %s79_s0 = sshll.u32 %s9182_s29, 4  ;;  %s9088_s21 = scalar_lea.hbm %s10716_s13, 1024  ;;  %s80_s0 = int_to_ptr.vmem [resolvable:$true] %s79_s0 }
  0x24   :  { %p9089_p10 = scmp.ne.s32.totalorder %s10716_s13, %s9088_s21  ;;  %p9092_p11 = scmp.lt.u32.totalorder %s9088_s21, %s10716_s13 }
  0x26   :  { %p9094_p12 = pnand %p9092_p11, %p9089_p10 }
  0x28   :  { %9097 = shalt.err (!%p9094_p12)
}
  0x29   :  { %s9098_s24 = scalar_lea.vmem %s80_s0, 1024  ;;  %p9103_p0 = scmp.lt.s32.totalorder %s80_s0, %s80_s0 }
  0x2a   :  { %p9099_p13 = scmp.ne.s32.totalorder %s80_s0, %s9098_s24  ;;  %p9104_p1 = scmp.lt.s32.totalorder %s9098_s24, %s9098_s24 }
  0x2c   :  { %p9105_p2 = por %p9104_p1, %p9103_p0 }
  0x2e   :  { %p9106_p3 = pnand %p9105_p2, %p9099_p13 }
  0x30   :  { %9109 = shalt.err (!%p9106_p3)
}
  0x31   :  { %s9183_s25 = smov 128   ;;  %s9184_s3 = smov 8  }
  0x32   :  { %85 = dma.hbm_to_vmem [thread:$0]  %s10716_s13, 1024, %s80_s0, [#allocation5], %s9183_s25, %s9183_s25, %s9184_s3  }
  0x33   :  { %9152 = dma.done.wait [#allocation7], 16  }
  0x34   :  { %9153 = vsyncadd [#allocation7], 4294967280 }
  0x35   :  { %9154 = dma.done.wait [#allocation9], 16  }
  0x36   :  { %9155 = vsyncadd [#allocation9], 4294967280 }
  0x37   :  { %9156 = dma.done.wait [#allocation5], 1024  }
  0x38   :  { %9157 = vsyncadd [#allocation5], 4294966272 }
  0x39   :  { %105 = sfence }
  0x3a   :  { %s10729_s28 = sld [smem:[#allocation19_spill]]  ;;  %s10730_s20 = sld [smem:[#allocation18_spill]]  ;;  %vm122_vm0 = vcmask 64512   ;;  %v9185_v4 = vmov 0.0   ;;  %vm9186_vm1 = vmmov 0   ;;  %v197_v5 = vld [vmem:[%s10708_s5] sm:$0xff] }
  0x3b   :  { %6749 = vmatprep.subr.mxu0 %v9185_v4  ;;  %6751 = vmatprep.mubr.msk.f32.mxu0 %vm9186_vm1, %v9185_v4  ;;  %v198_v6 = vld [vmem:[%s10708_s5 + $0x8] sm:$0xff]  ;;  %v199_v7 = vld [vmem:[%s10708_s5 + $0x10] sm:$0xff]  ;;  %v9187_v8 = vmov 0.0|0.0   ;;  %v200_v10 = vld [vmem:[%s10708_s5 + $0x18] sm:$0xff]  ;;  %vm299_vm2 = vcmask 523264   ;;  %s6059_s30 = sld [smem:[#allocation4 + $0x2]] }
  0x3c   :  { %8043 = vmatprep.subr.bf16.mxu1 %v9187_v8  ;;  %v8044_v9 = vpack.c.bf16 %v198_v6, %v197_v5  ;;  %6786 = vmatprep.mubr.msk.f32.mxu1 %vm9186_vm1, %v9185_v4  ;;  %v8047_v11 = vpack.c.bf16 %v200_v10, %v199_v7  ;;  %v201_v12 = vld [vmem:[%s10708_s5 + $0x20] sm:$0xff]  ;;  %v202_v13 = vld [vmem:[%s10708_s5 + $0x28] sm:$0xff]  ;;  %v203_v15 = vld [vmem:[%s10708_s5 + $0x30] sm:$0xff] }
  0x3d   :  { %v8050_v14 = vpack.c.bf16 %v202_v13, %v201_v12  ;;  %v204_v16 = vld [vmem:[%s10708_s5 + $0x38] sm:$0xff]  ;;  %v205_v18 = vld [vmem:[%s10708_s5 + $0x40] sm:$0xff]  ;;  %v206_v19 = vld [vmem:[%s10708_s5 + $0x48] sm:$0xff] }
  0x3e   :  { %8045 = vmatpush3.bf16.msra.mxu1 %v8044_v9  ;;  %v8053_v17 = vpack.c.bf16 %v204_v16, %v203_v15  ;;  %v8056_v20 = vpack.c.bf16 %v206_v19, %v205_v18  ;;  %v207_v21 = vld [vmem:[%s10708_s5 + $0x50] sm:$0xff]  ;;  %v208_v22 = vld [vmem:[%s10708_s5 + $0x58] sm:$0xff]  ;;  %v209_v24 = vld [vmem:[%s10708_s5 + $0x60] sm:$0xff] }
  0x3f   :  { %8046 = vmatprep.subr.bf16.mxu1 %v9187_v8  ;;  %v8059_v23 = vpack.c.bf16 %v208_v22, %v207_v21  ;;  %v210_v25 = vld [vmem:[%s10708_s5 + $0x68] sm:$0xff]  ;;  %v211_v27 = vld [vmem:[%s10708_s5 + $0x70] sm:$0xff]  ;;  %v212_v28 = vld [vmem:[%s10708_s5 + $0x78] sm:$0xff] }
  0x40   :  { %v114_v2 = vld [vmem:[%s10729_s28] sm:$0xff]  ;;  %v8062_v26 = vpack.c.bf16 %v210_v25, %v209_v24  ;;  %v8065_v29 = vpack.c.bf16 %v212_v28, %v211_v27  ;;  %v327_v31 = vld [vmem:[%s10710_s7 + $0x8] sm:$0xff]  ;;  %v328_v32 = vld [vmem:[%s10710_s7 + $0x10] sm:$0xff] }
  0x41   :  { %v113_v3 = vld [vmem:[%s10730_s20] sm:$0xff]  ;;  %6750 = vmatpush3.msra.mxu0 %v114_v2  ;;  %v329_v34 = vld [vmem:[%s10710_s7 + $0x18] sm:$0xff]  ;;  %v331_v37 = vld [vmem:[%s10710_s7 + $0x28] sm:$0xff] }
  0x42   :  { %6752 = vmatmul.mubr.msk.f32.vlgmr.msra.gmra.mrb[0].mxu0 %vm122_vm0, %v113_v3  ;;  %8067 = vmatprep.subr.bf16.mxu0 %v9187_v8  ;;  %v326_v30 = vld [vmem:[%s10710_s7] sm:$0xff]  ;;  %v8071_v35 = vpack.c.bf16 %v329_v34, %v328_v32  ;;  %v332_v44 = vld [vmem:[%s10710_s7 + $0x30] sm:$0xff]  ;;  %v333_v45 = vld [vmem:[%s10710_s7 + $0x38] sm:$0xff] }
  0x43   :  { %6805 = vmatprep.mubr.msk.f32.mxu0 %vm9186_vm1, %v9185_v4  ;;  %8048 = vmatpush3.bf16.msra.mxu1 %v8047_v11  ;;  %v8068_v33 = vpack.c.bf16 %v327_v31, %v326_v30  ;;  %v330_v36 = vld [vmem:[%s10710_s7 + $0x20] sm:$0xff]  ;;  %v8077_v46 = vpack.c.bf16 %v333_v45, %v332_v44  ;;  %v9428_v48 = vld [vmem:[%s10712_s9 + $0x8] sm:$0xff]  ;;  %v9433_v49 = vld [vmem:[%s10712_s9 + $0x10] sm:$0xff]  ;;  %v9188_v30 = vmov 0  }
  0x44   :  { %8049 = vmatprep.subr.bf16.mxu1 %v9187_v8  ;;  %v8074_v38 = vpack.c.bf16 %v331_v37, %v330_v36  ;;  %v6060_v39 = vld [vmem:[%s10707_s4] ss:$0 sm:$0xff]  ;;  %v9438_v50 = vld [vmem:[%s10712_s9 + $0x18] sm:$0xff]  ;;  %v9448_v52 = vld [vmem:[%s10712_s9 + $0x28] sm:$0xff]  ;;  %8949 = vset.pattern.permute.xlu1 %v9188_v30 }
  0x45   :  { %8069 = vmatpush3.bf16.msra.mxu0 %v8068_v33  ;;  %v9423_v47 = vld [vmem:[%s10712_s9] sm:$0xff]  ;;  %v9453_v53 = vld [vmem:[%s10712_s9 + $0x30] sm:$0xff]  ;;  %v9458_v54 = vld [vmem:[%s10712_s9 + $0x38] sm:$0xff]  ;;  %8950 = vset.pattern.permute.xlu0 %v9188_v30 }
  0x46   :  { %8070 = vmatprep.subr.bf16.mxu0 %v9187_v8  ;;  %v9443_v51 = vld [vmem:[%s10712_s9 + $0x20] sm:$0xff]  ;;  %v9462_v56 = vld [vmem:[#allocation10 + $0x8] sm:$0xff]  ;;  %v9464_v57 = vld [vmem:[#allocation10 + $0x10] sm:$0xff] }
  0x47   :  { %8051 = vmatpush3.bf16.msra.mxu1 %v8050_v14  ;;  %v9460_v55 = vld [vmem:[#allocation10] sm:$0xff]  ;;  %v9466_v58 = vld [vmem:[#allocation10 + $0x18] sm:$0xff]  ;;  %v9470_v60 = vld [vmem:[#allocation10 + $0x28] sm:$0xff] }
  0x48   :  { %8052 = vmatprep.subr.bf16.mxu1 %v9187_v8  ;;  %v9468_v59 = vld [vmem:[#allocation10 + $0x20] sm:$0xff]  ;;  %v9472_v61 = vld [vmem:[#allocation10 + $0x30] sm:$0xff]  ;;  %v9474_v62 = vld [vmem:[#allocation10 + $0x38] sm:$0xff] }
  0x49   :  { %8072 = vmatpush3.bf16.msra.mxu0 %v8071_v35  ;;  %v6062_v63 = vld [vmem:[%s10709_s6] ss:$0 sm:$0xff]  ;;  %v431_v1 = vld [vmem:[%s10713_s10 + $0x8] sm:$0xff]  ;;  %v432_v10 = vld [vmem:[%s10713_s10 + $0x10] sm:$0xff] }
  0x4a   :  { %8073 = vmatprep.subr.bf16.mxu0 %v9187_v8  ;;  %v430_v0 = vld [vmem:[%s10713_s10] sm:$0xff]  ;;  %v433_v11 = vld [vmem:[%s10713_s10 + $0x18] sm:$0xff]  ;;  %v435_v16 = vld [vmem:[%s10713_s10 + $0x28] sm:$0xff] }
  0x4b   :  { %8054 = vmatpush3.bf16.msra.mxu1 %v8053_v17  ;;  %v8080_v6 = vpack.c.bf16 %v431_v1, %v430_v0  ;;  %v6063_v7 = vld [vmem:[%s10720_s17] ss:$0 sm:$0xff]  ;;  %v8083_v13 = vpack.c.bf16 %v433_v11, %v432_v10  ;;  %v437_v18 = vld [vmem:[%s10713_s10 + $0x38] sm:$0xff] }
  0x4c   :  { %8055 = vmatprep.subr.bf16.mxu1 %v9187_v8  ;;  %v434_v15 = vld [vmem:[%s10713_s10 + $0x20] sm:$0xff] }
  0x4d   :  { %8075 = vmatpush3.bf16.msra.mxu0 %v8074_v38  ;;  %v8086_v17 = vpack.c.bf16 %v435_v16, %v434_v15  ;;  %v9520_v22 = vld [vmem:[%s10718_s15] ss:$0 sm:$0xff]  ;;  %s563_s15 = sld [smem:[#allocation8]] }
  0x4e   :  { %8076 = vmatprep.subr.bf16.mxu0 %v9187_v8  ;;  %v9538_v33 = vld [vmem:[%s10714_s11] sm:$0x1]  ;;  %s106_s11 = sld [smem:[#allocation4]] }
  0x4f   :  { %8057 = vmatpush3.bf16.msra.mxu1 %v8056_v20  ;;  %v6065_v20 = vld [vmem:[%s10711_s8] ss:$0 sm:$0xff]  ;;  %s9532_s8 = sld [smem:[#allocation4 + $0x1]] }
  0x50   :  { %8058 = vmatprep.subr.bf16.mxu1 %v9187_v8  ;;  %v9547_v45 = vld [vmem:[#allocation2] ss:$0 sm:$0xff] }
  0x51   :  { %8078 = vmatpush3.bf16.msra.mxu0 %v8077_v46  ;;  %v9555_v16 = vld [vmem:[%s10717_s14] sm:$0x1]  ;;  %s9576_s14 = smov 1  }
  0x52   :  { %8079 = vmatprep.subr.bf16.mxu0 %v9187_v8 }
  0x53   :  { %8060 = vmatpush3.bf16.msra.mxu1 %v8059_v23  ;;  %v579_v34 = vstv %s563_s15 }
  0x54   :  { %8061 = vmatprep.subr.bf16.mxu1 %v9187_v8  ;;  %v9541_v35 = vmul.f32 %v579_v34, %v9538_v33   ;;  %s9550_s17 = smul.f32 %s6059_s30, %s106_s11 }
  0x55   :  { %v109_v31 = vstv %s9532_s8 }
  0x56   :  { %8951 = vrcp.f32 %v109_v31 }
  0x57   :  { %8063 = vmatpush3.bf16.msra.mxu1 %v8062_v26  ;;  %v6067_v26 = vld [vmem:[%s10715_s12] ss:$0 sm:$0xff] }
  0x58   :  { %8064 = vmatprep.subr.bf16.mxu1 %v9187_v8 }
  0x5b   :  { %8066 = vmatpush3.bf16.msra.mxu1 %v8065_v29 }
  0x60   :  { %v8952_v32 = vpop.eup %8951 }
  0x61   :  { %8859 = vpush %v8952_v32  ;;  %v519_v32 = vlaneseq }
  0x63   :  { %v9563_v34 = vand.u32 127, %v519_v32 }
  0x65   :  { %vm521_vm5 = vcmp.eq.s32.totalorder %v9563_v34, 0 }
  0x92   :  { %s9543_s12 = spop %8859 }
  0x93   :  { %s564_s26 = smul.f32 %s9543_s12, %s563_s15 }
  0x95   :  { %p565_p4 = scmp.lt.f32.partialorder %s564_s26, 0.0  ;;  %s566_s16 = sceil.f32 %s564_s26 }
  0x96   :  { %s567_s18 = sfloor.f32 %s564_s26 }
  0x97   :  { %s10734_s16 = smov (!%p565_p4, %s566_s16), %s567_s18 }
  0x98   :  { %s569_s27 = smul.f32 %s9532_s8, %s10734_s16 }
  0x9a   :  { %s570_s28 = ssub.f32 %s563_s15, %s569_s27 }
  0x9c   :  { %s571_s4 = smul.f32 %s570_s28, %s570_s28 }
  0x9e   :  { %s572_s6 = ssub.f32 0.0, %s571_s4 }
  0xa0   :  { %s573_s29 = smul.f32 500000.0, %s572_s6 }
  0xa2   :  { %v574_v36 = vstv %s573_s29 }
  0xa3   :  { %v575_v37 = vmul.f32 1.442695, %v574_v36 }
  0xa5   :  { %8953 = vpow2.f32 %v575_v37 }
  0xaf   :  { %v8954_v38 = vpop.eup %8953 }
  0xb0   :  { %8861 = vpush %v8954_v38 }
  0xe1   :  { %s8862_s20 = spop %8861 }
  0xe2   :  { %s578_s0 = smul.f32 %s8862_s20, %s9550_s17 }
 0x115   :  { %v192_v40 = vpop.f32.mrb[0].mxu0 }
 0x116   :  { %v193_v41 = vadd.f32 %v6060_v39, %v192_v40  ;;  %v6753_v42 = vpop.f32.mrb[1].mxu0  ;;  %v6064_v39 = vld [vmem:[#allocation3] ss:$0 sm:$0xff] }
 0x118   :  { %v196_v43 = vmax.f32 %v193_v41, 0.0 }
 0x11a   :  { %6787 = vmatmul.mubr.f32.vlgmr.msra.gmra.mrb[0].mxu1 %v196_v43 }
 0x1ed   :  { %v286_v2 = vpop.f32.mrb[0].mxu1 }
 0x1ee   :  { %v287_v3 = vadd.f32 %v6062_v63, %v286_v2  ;;  %v6788_v5 = vpop.f32.mrb[1].mxu1 }
 0x1f0   :  { %v290_v9 = vmax.f32 %v287_v3, 0.0 }
 0x1f2   :  { %6806 = vmatmul.mubr.msk.f32.vlgmr.msra.gmra.mrb[2].mxu0 %vm299_vm2, %v290_v9  ;;  %v298_v12 = vmul.f32 %v6063_v7, %v290_v9 }
 0x1f3   :  { %8081 = vmatpush3.bf16.msra.mxu0 %v8080_v6  ;;  %6824 = vmatprep.mubr.msk.f32.mxu0 %vm9186_vm1, %v9185_v4  ;;  %v436_v4 = vld [vmem:[%s10713_s10 + $0x30] sm:$0xff] }
 0x1f4   :  { %8082 = vmatprep.subr.bf16.mxu0 %v9187_v8  ;;  %v300_v14 = vsel %vm299_vm2, %v298_v12, 0.0  ;;  %v8089_v19 = vpack.c.bf16 %v437_v18, %v436_v4  ;;  %v581_v18 = vstv %s578_s0 }
 0x1f5   :  { %301 = vadd.xlane.f32.xlu0 %v300_v14 }
 0x1f7   :  { %8084 = vmatpush3.bf16.msra.mxu0 %v8083_v13 }
 0x1f8   :  { %8085 = vmatprep.subr.bf16.mxu0 %v9187_v8 }
 0x1fb   :  { %8087 = vmatpush3.bf16.msra.mxu0 %v8086_v17 }
 0x1fc   :  { %8088 = vmatprep.subr.bf16.mxu0 %v9187_v8 }
 0x1ff   :  { %8090 = vmatpush3.bf16.msra.mxu0 %v8089_v19 }
 0x202   :  { %6825 = vmatmul.mubr.msk.f32.vlgmr.msra.gmra.mrb[4].mxu0 %vm299_vm2, %v290_v9 }
 0x282   :  { %v302_v40 = vpop.xlane.xlu0 %301 }
 0x283   :  { %v310_v41 = vadd.f32 %v6064_v39, %v302_v40 }
 0x285   :  { %v312_v42 = vand.u32 2147483647, %v310_v41 }
 0x287   :  { %v313_v43 = vsub.f32 0.0, %v312_v42 }
 0x289   :  { %v314_v44 = vmul.f32 1.442695, %v313_v43 }
 0x28b   :  { %8955 = vpow2.f32 %v314_v44 }
 0x295   :  { %v8956_v3 = vpop.eup %8955 }
 0x296   :  { %v316_v5 = vadd.f32 1.0, %v8956_v3  ;;  %v319_v9 = vmul.f32 -0.5, %v8956_v3  ;;  %v322_v13 = vand.u32 2147483647, %v8956_v3 }
 0x298   :  { %v320_v12 = vadd.f32 1.0, %v319_v9  ;;  %vm323_vm3 = vcmp.lt.f32.partialorder %v322_v13, 0.0004427343 }
 0x29a   :  { %v321_v4 = vmul.f32 %v8956_v3, %v320_v12 }
 0x2c5   :  { %v410_v21 = vpop.f32.mrb[2].mxu0 }
 0x2c6   :  { %v9522_v23 = vadd.f32 %v6065_v20, %v410_v21   ;;  %v6807_v24 = vpop.f32.mrb[3].mxu0  ;;  %v582_v20 = vadd.f32 %v581_v18, %v9555_v16  }
 0x2c8   :  { %v528_v25 = vmul.f32 %v9520_v22, %v9522_v23 }
 0x2ca   :  { %v529_v8 = vsel %vm299_vm2, %v528_v25, 0.0 }
 0x2cb   :  { %530 = vadd.xlane.f32.xlu0 %v529_v8  ;;  %v311_v8 = vmax.f32 %v310_v41, 0.0 }
 0x2d5   :  { %v511_v27 = vpop.f32.mrb[4].mxu0 }
 0x2d6   :  { %v9530_v28 = vadd.f32 %v6067_v26, %v511_v27  ;;  %v6826_v29 = vpop.f32.mrb[5].mxu0 }
 0x358   :  { %v531_v46 = vpop.xlane.xlu0 %530 }
 0x359   :  { %v538_v63 = vadd.f32 %v9547_v45, %v531_v46 }
 0x35b   :  { %v540_v0 = vand.u32 2147483647, %v538_v63  ;;  %v539_v26 = vmax.f32 %v538_v63, 0.0 }
 0x35d   :  { %v541_v1 = vsub.f32 0.0, %v540_v0 }
 0x35f   :  { %v542_v2 = vmul.f32 1.442695, %v541_v1 }
 0x361   :  { %8957 = vpow2.f32 %v542_v2 }
 0x362   :  { %8959 = vlog2.f32 %v316_v5 }
 0x36b   :  { %v8958_v6 = vpop.eup %8957 }
 0x36c   :  { %v544_v7 = vadd.f32 1.0, %v8958_v6  ;;  %v547_v10 = vmul.f32 -0.5, %v8958_v6  ;;  %v8960_v11 = vpop.eup %8959  ;;  %v550_v17 = vand.u32 2147483647, %v8958_v6 }
 0x36d   :  { %v318_v14 = vmul.f32 0.6931472, %v8960_v11 }
 0x36e   :  { %8961 = vlog2.f32 %v544_v7  ;;  %v548_v15 = vadd.f32 1.0, %v547_v10  ;;  %vm551_vm4 = vcmp.lt.f32.partialorder %v550_v17, 0.0004427343 }
 0x36f   :  { %v324_v21 = vsel %vm323_vm3, %v321_v4, %v318_v14 }
 0x370   :  { %v549_v25 = vmul.f32 %v8958_v6, %v548_v15  ;;  %v9559_v29 = vadd.f32 %v324_v21, %v311_v8 }
 0x378   :  { %v8962_v19 = vpop.eup %8961 }
 0x379   :  { %v546_v24 = vmul.f32 0.6931472, %v8962_v19 }
 0x37b   :  { %v552_v27 = vsel %vm551_vm4, %v549_v25, %v546_v24 }
 0x37c   :  { %v553_v30 = vadd.f32 %v552_v27, %v539_v26 }
 0x37e   :  { %v554_v31 = vadd.f32 %v553_v30, %v9559_v29 }
 0x380   :  { %559 = vperm.xlu1 %8949, %v554_v31  }
 0x3ff   :  { %v560_v36 = vpop.permute.xlu1 %559 }
 0x400   :  { %v562_v37 = vsel %vm521_vm5, %v560_v36, 0.0  }
 0x401 LB: > { %v9593_v38 = vpack.c.bf16 %v9428_v48, %v9423_v47  ;;  %v9189_v39 = vmov 0.0|0.0   ;;  %v9600_v40 = vpack.c.bf16 %v9438_v50, %v9433_v49  ;;  %vm9190_vm6 = vmmov 0   ;;  %s6071_s21 = sadd.s32 4294967295, %s9178_s14  ;;  %s595_s5 = sld [smem:[#allocation8 + %s9178_s14]]  ;;  %s9178_s14 = sphi %s9576_s14, %s588_s14   ;;  %v9174_v23 = vphi %v9522_v23, %v5991_v23   ;;  %v9170_v37 = vphi %v562_v37, %v10732_v37   ;;  %v9166_v35 = vphi %v9541_v35, %v5359_v35   ;;  %v9162_v20 = vphi %v582_v20, %v10731_v20  }
 0x402   : > { %8091 = vmatprep.subr.bf16.mxu0 %v9189_v39  ;;  %8103 = vmatprep.subr.bf16.mxu1 %v9189_v39  ;;  %v9191_v41 = vmov 0.0   ;;  %v9610_v42 = vpack.c.bf16 %v9448_v52, %v9443_v51  ;;  %v9616_v43 = vpack.c.bf16 %v9458_v54, %v9453_v53  ;;  %v9635_v44 = vpack.c.bf16 %v9462_v56, %v9460_v55  ;;  %s9674_s1 = sld [smem:[#allocation8 + %s6071_s21]] }
 0x403   : > { %8093 = vmatpush3.bf16.msra.mxu0 %v9593_v38  ;;  %6843 = vmatprep.mubr.msk.f32.mxu0 %vm9190_vm6, %v9191_v41  ;;  %v9641_v46 = vpack.c.bf16 %v9466_v58, %v9464_v57  ;;  %v9646_v63 = vpack.c.bf16 %v9470_v60, %v9468_v59  ;;  %v9652_v0 = vpack.c.bf16 %v9474_v62, %v9472_v61  ;;  %v718_v1 = vshrl.u32 %v519_v32, 7 }
 0x404   : > { %8094 = vmatprep.subr.bf16.mxu0 %v9189_v39  ;;  %6862 = vmatprep.mubr.msk.f32.mxu1 %vm9190_vm6, %v9191_v41 }
 0x405   : > { %8105 = vmatpush3.bf16.msra.mxu1 %v9635_v44  ;;  %v9658_v2 = vsub.s32 0, %v718_v1 }
 0x406   : > { %8106 = vmatprep.subr.bf16.mxu1 %v9189_v39 }
 0x407   : > { %8096 = vmatpush3.bf16.msra.mxu0 %v9600_v40  ;;  %v720_v3 = vrot.slane %v9166_v35, %v9658_v2  ;;  %v728_v35 = vrot.slane %v9162_v20, %v9658_v2 }
 0x408   : > { %8097 = vmatprep.subr.bf16.mxu0 %v9189_v39  ;;  %s596_s22 = ssub.f32 %s595_s5, %s9674_s1 }
 0x409   : > { %8108 = vmatpush3.bf16.msra.mxu1 %v9641_v46 }
 0x40a   : > { %8109 = vmatprep.subr.bf16.mxu1 %v9189_v39  ;;  %s9678_s2 = smul.f32 0.125, %s596_s22 }
 0x40b   : > { %8099 = vmatpush3.bf16.msra.mxu0 %v9610_v42 }
 0x40c   : > { %8100 = vmatprep.subr.bf16.mxu0 %v9189_v39  ;;  %s9681_s23 = smul.f32 0.5, %s9678_s2 }
 0x40d   : > { %8111 = vmatpush3.bf16.msra.mxu1 %v9646_v63  ;;  %s601_s24 = smul.f32 0.0, %s9678_s2 }
 0x40e   : > { %8112 = vmatprep.subr.bf16.mxu1 %v9189_v39  ;;  %v9686_v12 = vstv %s9681_s23  ;;  %s599_s29 = smul.f32 0.16666667, %s9678_s2 }
 0x40f   : > { %8102 = vmatpush3.bf16.msra.mxu0 %v9616_v43  ;;  %s9703_s10 = sadd.f32 %s601_s24, %s9674_s1 }
 0x410   : > { %8115 = vmatprep.subr.bf16.mxu0 %v9189_v39  ;;  %v9726_v1 = vstv %s599_s29  ;;  %s600_s11 = smul.f32 2.0, %s599_s29 }
 0x411   : > { %8114 = vmatpush3.bf16.msra.mxu1 %v9652_v0  ;;  %s603_s25 = sadd.f32 %s9703_s10, %s9681_s23 }
 0x412   : > { %6844 = vmatmul.mubr.msk.f32.vlgmr.msra.gmra.mrb[0].mxu0 %vm299_vm2, %v9174_v23  ;;  %8127 = vmatprep.subr.bf16.mxu1 %v9189_v39  ;;  %s623_s30 = sadd.f32 %s9703_s10, %s9678_s2 }
 0x413   : > { %8117 = vmatpush3.bf16.msra.mxu0 %v9593_v38  ;;  %6881 = vmatprep.mubr.msk.f32.mxu0 %vm9190_vm6, %v9191_v41  ;;  %s604_s15 = smul.f32 %s9543_s12, %s603_s25  ;;  %v619_v20 = vstv %s603_s25 }
 0x414   : > { %8118 = vmatprep.subr.bf16.mxu0 %v9189_v39  ;;  %v620_v21 = vmul.f32 %v619_v20, %v9538_v33  ;;  %s624_s20 = smul.f32 %s9543_s12, %s623_s30 }
 0x415   : > { %p605_p5 = scmp.lt.f32.partialorder %s604_s15, 0.0  ;;  %s606_s3 = sceil.f32 %s604_s15 }
 0x416   : > { %s607_s9 = sfloor.f32 %s604_s15  ;;  %v886_v24 = vrot.slane %v620_v21, %v9658_v2  ;;  %p625_p6 = scmp.lt.f32.partialorder %s624_s20, 0.0 }
 0x417   : > { %8120 = vmatpush3.bf16.msra.mxu0 %v9600_v40  ;;  %s10736_s3 = smov (!%p605_p5, %s606_s3), %s607_s9  ;;  %s626_s7 = sceil.f32 %s624_s20 }
 0x418   : > { %8121 = vmatprep.subr.bf16.mxu0 %v9189_v39  ;;  %s609_s26 = smul.f32 %s9532_s8, %s10736_s3  ;;  %s627_s13 = sfloor.f32 %s624_s20 }
 0x419   : > { %s10738_s7 = smov (!%p625_p6, %s626_s7), %s627_s13  ;;  %s9839_s15 = sadd.f32 %s9678_s2, %s9674_s1 }
 0x41a   : > { %s610_s16 = ssub.f32 %s603_s25, %s609_s26  ;;  %s629_s0 = smul.f32 %s9532_s8, %s10738_s7 }
 0x41b   : > { %8123 = vmatpush3.bf16.msra.mxu0 %v9610_v42  ;;  %s1290_s3 = sadd.f32 %s9839_s15, %s9681_s23 }
 0x41c   : > { %8124 = vmatprep.subr.bf16.mxu0 %v9189_v39  ;;  %s611_s18 = smul.f32 %s610_s16, %s610_s16  ;;  %s630_s21 = ssub.f32 %s623_s30, %s629_s0 }
 0x41d   : > { %s1291_s9 = smul.f32 %s9543_s12, %s1290_s3 }
 0x41e   : > { %s612_s27 = ssub.f32 0.0, %s611_s18  ;;  %s631_s5 = smul.f32 %s630_s21, %s630_s21 }
 0x41f   : > { %8126 = vmatpush3.bf16.msra.mxu0 %v9616_v43  ;;  %p1292_p7 = scmp.lt.f32.partialorder %s1291_s9, 0.0  ;;  %s1293_s26 = sceil.f32 %s1291_s9 }
 0x420   : > { %8139 = vmatprep.subr.bf16.mxu0 %v9189_v39  ;;  %s613_s28 = smul.f32 500000.0, %s612_s27  ;;  %s632_s22 = ssub.f32 0.0, %s631_s5 }
 0x421   : > { %s1294_s16 = sfloor.f32 %s1291_s9 }
 0x422   : > { %v614_v4 = vstv %s613_s28  ;;  %s633_s24 = smul.f32 500000.0, %s632_s22  ;;  %s10740_s26 = smov (!%p1292_p7, %s1293_s26), %s1294_s16 }
 0x423   : > { %v615_v18 = vmul.f32 1.442695, %v614_v4  ;;  %s1296_s18 = smul.f32 %s9532_s8, %s10740_s26 }
 0x425   : > { %s1297_s27 = ssub.f32 %s1290_s3, %s1296_s18 }
 0x427   : > { %s1298_s28 = smul.f32 %s1297_s27, %s1297_s27 }
 0x4e5   : > { %v712_v5 = vpop.f32.mrb[0].mxu0 }
 0x4e6   : > { %v713_v6 = vadd.f32 %v712_v5, %v9530_v28  ;;  %v6845_v7 = vpop.f32.mrb[1].mxu0 }
 0x4e7   : > { %v9730_v7 = vstv %s600_s11 }
 0x4e8   : > { %v722_v9 = vadd.f32 %v720_v3, %v713_v6 }
 0x4ea   : > { %8964 = vtanh.f32 %v722_v9 }
 0x4eb   : > { %8966 = vpow2.f32 %v615_v18 }
 0x4f4   : > { %v8965_v10 = vpop.eup %8964 }
 0x4f5   : > { %6863 = vmatmul.mubr.msk.f32.vlgmr.msra.gmra.mrb[0].mxu1 %vm299_vm2, %v8965_v10  ;;  %v8967_v19 = vpop.eup %8966 }
 0x4f6   : > { %8129 = vmatpush3.bf16.msra.mxu1 %v9635_v44  ;;  %6900 = vmatprep.mubr.msk.f32.mxu1 %vm9190_vm6, %v9191_v41  ;;  %8863 = vpush %v8967_v19 }
 0x4f7   : > { %8130 = vmatprep.subr.bf16.mxu1 %v9189_v39 }
 0x4fa   : > { %8132 = vmatpush3.bf16.msra.mxu1 %v9641_v46 }
 0x4fb   : > { %8133 = vmatprep.subr.bf16.mxu1 %v9189_v39 }
 0x4fe   : > { %8135 = vmatpush3.bf16.msra.mxu1 %v9646_v63 }
 0x4ff   : > { %8136 = vmatprep.subr.bf16.mxu1 %v9189_v39 }
 0x502   : > { %8138 = vmatpush3.bf16.msra.mxu1 %v9652_v0 }
 0x503   : > { %8151 = vmatprep.subr.bf16.mxu1 %v9189_v39 }
 0x527   : > { %s8864_s4 = spop %8863 }
 0x528   : > { %s618_s6 = smul.f32 %s8864_s4, %s9550_s17  ;;  %s1299_s4 = ssub.f32 0.0, %s1298_s28 }
 0x52a   : > { %v621_v31 = vstv %s618_s6  ;;  %s1300_s6 = smul.f32 500000.0, %s1299_s4 }
 0x52b   : > { %v622_v36 = vadd.f32 %v621_v31, %v9555_v16 }
 0x52d   : > { %v894_v3 = vrot.slane %v622_v36, %v9658_v2 }
 0x5c8   : > { %v799_v11 = vpop.f32.mrb[0].mxu1 }
 0x5c9   : > { %v800_v13 = vadd.f32 %v799_v11, %v728_v35  ;;  %v6864_v14 = vpop.f32.mrb[1].mxu1 }
 0x5cb   : > { %v807_v15 = vmul.f32 %v9686_v12, %v800_v13  ;;  %v804_v5 = vmul.f32 %v9726_v1, %v800_v13 }
 0x5cd   : > { %v808_v17 = vadd.f32 %v9174_v23, %v807_v15  ;;  %v805_v35 = vadd.f32 %v9174_v23, %v804_v5  ;;  %v639_v5 = vstv %s623_s30  ;;  %s1310_s30 = sadd.f32 %s9839_s15, %s9678_s2  ;;  %s1960_s15 = smul.f32 2.0, %s9678_s2 }
 0x5cf   : > { %6882 = vmatmul.mubr.msk.f32.vlgmr.msra.gmra.mrb[2].mxu0 %vm299_vm2, %v808_v17  ;;  %s1311_s20 = smul.f32 %s9543_s12, %s1310_s30 }
 0x5d0   : > { %8141 = vmatpush3.bf16.msra.mxu0 %v9593_v38  ;;  %6919 = vmatprep.mubr.msk.f32.mxu0 %vm9190_vm6, %v9191_v41 }
 0x5d1   : > { %8142 = vmatprep.subr.bf16.mxu0 %v9189_v39  ;;  %p1312_p8 = scmp.lt.f32.partialorder %s1311_s20, 0.0  ;;  %s1313_s7 = sceil.f32 %s1311_s20 }
 0x5d2   : > { %s1314_s13 = sfloor.f32 %s1311_s20 }
 0x5d3   : > { %s10742_s7 = smov (!%p1312_p8, %s1313_s7), %s1314_s13 }
 0x5d4   : > { %8144 = vmatpush3.bf16.msra.mxu0 %v9600_v40  ;;  %s1316_s0 = smul.f32 %s9532_s8, %s10742_s7 }
 0x5d5   : > { %8145 = vmatprep.subr.bf16.mxu0 %v9189_v39 }
 0x5d6   : > { %s1317_s21 = ssub.f32 %s1310_s30, %s1316_s0 }
 0x5d8   : > { %8147 = vmatpush3.bf16.msra.mxu0 %v9610_v42  ;;  %s1318_s5 = smul.f32 %s1317_s21, %s1317_s21 }
 0x5d9   : > { %8148 = vmatprep.subr.bf16.mxu0 %v9189_v39 }
 0x5da   : > { %s1319_s22 = ssub.f32 0.0, %s1318_s5 }
 0x5dc   : > { %8150 = vmatpush3.bf16.msra.mxu0 %v9616_v43 }
 0x5dd   : > { %8163 = vmatprep.subr.bf16.mxu0 %v9189_v39 }
 0x6a2   : > { %v878_v25 = vpop.f32.mrb[2].mxu0 }
 0x6a3   : > { %v879_v8 = vadd.f32 %v878_v25, %v9530_v28  ;;  %v6883_v26 = vpop.f32.mrb[3].mxu0 }
 0x6a5   : > { %v888_v27 = vadd.f32 %v886_v24, %v879_v8 }
 0x6a7   : > { %8968 = vtanh.f32 %v888_v27 }
 0x6b1   : > { %v8969_v30 = vpop.eup %8968 }
 0x6b2   : > { %6901 = vmatmul.mubr.msk.f32.vlgmr.msra.gmra.mrb[2].mxu1 %vm299_vm2, %v8969_v30 }
 0x6b3   : > { %8153 = vmatpush3.bf16.msra.mxu1 %v9635_v44  ;;  %6938 = vmatprep.mubr.msk.f32.mxu1 %vm9190_vm6, %v9191_v41 }
 0x6b4   : > { %8154 = vmatprep.subr.bf16.mxu1 %v9189_v39 }
 0x6b7   : > { %8156 = vmatpush3.bf16.msra.mxu1 %v9641_v46 }
 0x6b8   : > { %8157 = vmatprep.subr.bf16.mxu1 %v9189_v39 }
 0x6bb   : > { %8159 = vmatpush3.bf16.msra.mxu1 %v9646_v63 }
 0x6bc   : > { %8160 = vmatprep.subr.bf16.mxu1 %v9189_v39 }
 0x6bf   : > { %8162 = vmatpush3.bf16.msra.mxu1 %v9652_v0 }
 0x6c0   : > { %8175 = vmatprep.subr.bf16.mxu1 %v9189_v39 }
 0x785   : > { %v965_v6 = vpop.f32.mrb[2].mxu1 }
 0x786   : > { %v966_v9 = vadd.f32 %v965_v6, %v894_v3  ;;  %v6902_v10 = vpop.f32.mrb[3].mxu1  ;;  %v640_v6 = vmul.f32 %v639_v5, %v9538_v33 }
 0x788   : > { %v970_v11 = vmul.f32 %v9730_v7, %v966_v9  ;;  %v972_v14 = vmul.f32 %v966_v9, %v9686_v12  ;;  %v1204_v9 = vrot.slane %v640_v6, %v9658_v2 }
 0x78a   : > { %v971_v15 = vadd.f32 %v970_v11, %v805_v35  ;;  %v973_v17 = vadd.f32 %v9174_v23, %v972_v14 }
 0x78c   : > { %6920 = vmatmul.mubr.msk.f32.vlgmr.msra.gmra.mrb[4].mxu0 %vm299_vm2, %v973_v17 }
 0x78d   : > { %8165 = vmatpush3.bf16.msra.mxu0 %v9593_v38  ;;  %6957 = vmatprep.mubr.msk.f32.mxu0 %vm9190_vm6, %v9191_v41 }
 0x78e   : > { %8166 = vmatprep.subr.bf16.mxu0 %v9189_v39 }
 0x791   : > { %8168 = vmatpush3.bf16.msra.mxu0 %v9600_v40 }
 0x792   : > { %8169 = vmatprep.subr.bf16.mxu0 %v9189_v39 }
 0x795   : > { %8171 = vmatpush3.bf16.msra.mxu0 %v9610_v42 }
 0x796   : > { %8172 = vmatprep.subr.bf16.mxu0 %v9189_v39 }
 0x799   : > { %8174 = vmatpush3.bf16.msra.mxu0 %v9616_v43 }
 0x79a   : > { %8187 = vmatprep.subr.bf16.mxu0 %v9189_v39 }
 0x85f   : > { %v1043_v13 = vpop.f32.mrb[4].mxu0 }
 0x860   : > { %v1044_v4 = vadd.f32 %v1043_v13, %v9530_v28  ;;  %v6921_v18 = vpop.f32.mrb[5].mxu0 }
 0x862   : > { %v1047_v19 = vadd.f32 %v1044_v4, %v886_v24  ;;  %v9760_v24 = vstv %s9678_s2 }
 0x864   : > { %8970 = vtanh.f32 %v1047_v19 }
 0x86e   : > { %v8971_v20 = vpop.eup %8970 }
 0x86f   : > { %6939 = vmatmul.mubr.msk.f32.vlgmr.msra.gmra.mrb[4].mxu1 %vm299_vm2, %v8971_v20 }
 0x870   : > { %8177 = vmatpush3.bf16.msra.mxu1 %v9635_v44  ;;  %6976 = vmatprep.mubr.msk.f32.mxu1 %vm9190_vm6, %v9191_v41 }
 0x871   : > { %8178 = vmatprep.subr.bf16.mxu1 %v9189_v39 }
 0x874   : > { %8180 = vmatpush3.bf16.msra.mxu1 %v9641_v46 }
 0x875   : > { %8181 = vmatprep.subr.bf16.mxu1 %v9189_v39 }
 0x878   : > { %8183 = vmatpush3.bf16.msra.mxu1 %v9646_v63 }
 0x879   : > { %8184 = vmatprep.subr.bf16.mxu1 %v9189_v39 }
 0x87c   : > { %8186 = vmatpush3.bf16.msra.mxu1 %v9652_v0 }
 0x87d   : > { %8199 = vmatprep.subr.bf16.mxu1 %v9189_v39 }
 0x942   : > { %v1118_v21 = vpop.f32.mrb[4].mxu1 }
 0x943   : > { %v1119_v25 = vadd.f32 %v1118_v21, %v894_v3  ;;  %v6940_v8 = vpop.f32.mrb[5].mxu1 }
 0x945   : > { %v1122_v26 = vmul.f32 %v1119_v25, %v9730_v7  ;;  %v1125_v27 = vmul.f32 %v9760_v24, %v1119_v25 }
 0x947   : > { %v1123_v30 = vadd.f32 %v1122_v26, %v971_v15  ;;  %v1126_v31 = vadd.f32 %v9174_v23, %v1125_v27  ;;  %v634_v23 = vstv %s633_s24  ;;  %s1320_s24 = smul.f32 500000.0, %s1319_s22 }
 0x948   : > { %v635_v36 = vmul.f32 1.442695, %v634_v23 }
 0x949   : > { %6958 = vmatmul.mubr.msk.f32.vlgmr.msra.gmra.mrb[6].mxu0 %vm299_vm2, %v1126_v31 }
 0x94a   : > { %8189 = vmatpush3.bf16.msra.mxu0 %v9593_v38  ;;  %6995 = vmatprep.mubr.msk.f32.mxu0 %vm9190_vm6, %v9191_v41  ;;  %8972 = vpow2.f32 %v635_v36 }
 0x94b   : > { %8190 = vmatprep.subr.bf16.mxu0 %v9189_v39 }
 0x94e   : > { %8192 = vmatpush3.bf16.msra.mxu0 %v9600_v40 }
 0x94f   : > { %8193 = vmatprep.subr.bf16.mxu0 %v9189_v39 }
 0x952   : > { %8195 = vmatpush3.bf16.msra.mxu0 %v9610_v42 }
 0x953   : > { %8196 = vmatprep.subr.bf16.mxu0 %v9189_v39 }
 0x954   : > { %v8973_v3 = vpop.eup %8972 }
 0x955   : > { %8865 = vpush %v8973_v3 }
 0x956   : > { %8198 = vmatpush3.bf16.msra.mxu0 %v9616_v43 }
 0x957   : > { %8211 = vmatprep.subr.bf16.mxu0 %v9189_v39 }
 0x986   : > { %s8866_s10 = spop %8865 }
 0x987   : > { %s638_s25 = smul.f32 %s8866_s10, %s9550_s17 }
 0x989   : > { %v641_v17 = vstv %s638_s25 }
 0x98a   : > { %v642_v13 = vadd.f32 %v641_v17, %v9555_v16 }
 0x98c   : > { %v1212_v4 = vrot.slane %v642_v13, %v9658_v2 }
 0xa1c   : > { %v1196_v10 = vpop.f32.mrb[6].mxu0 }
 0xa1d   : > { %v1197_v35 = vadd.f32 %v1196_v10, %v9530_v28  ;;  %v6959_v11 = vpop.f32.mrb[7].mxu0 }
 0xa1e   : > { %v1306_v11 = vstv %s1290_s3  ;;  %s9967_s3 = sadd.f32 %s1960_s15, %s9674_s1 }
 0xa1f   : > { %v1206_v14 = vadd.f32 %v1204_v9, %v1197_v35 }
 0xa20   : > { %s1962_s9 = sadd.f32 %s9967_s3, %s9681_s23 }
 0xa21   : > { %8974 = vtanh.f32 %v1206_v14  ;;  %v1307_v14 = vmul.f32 %v1306_v11, %v9538_v33  ;;  %s1982_s20 = sadd.f32 %s9967_s3, %s9678_s2  ;;  %s2632_s3 = smul.f32 3.0, %s9678_s2 }
 0xa22   : > { %s1963_s26 = smul.f32 %s9543_s12, %s1962_s9 }
 0xa23   : > { %s1983_s7 = smul.f32 %s9543_s12, %s1982_s20 }
 0xa24   : > { %p1964_p9 = scmp.lt.f32.partialorder %s1963_s26, 0.0  ;;  %s1965_s16 = sceil.f32 %s1963_s26 }
 0xa25   : > { %s1966_s18 = sfloor.f32 %s1963_s26  ;;  %p1984_p10 = scmp.lt.f32.partialorder %s1983_s7, 0.0 }
 0xa26   : > { %s10744_s16 = smov (!%p1964_p9, %s1965_s16), %s1966_s18  ;;  %s1985_s13 = sceil.f32 %s1983_s7 }
 0xa27   : > { %s1968_s27 = smul.f32 %s9532_s8, %s10744_s16  ;;  %s1986_s0 = sfloor.f32 %s1983_s7 }
 0xa28   : > { %s10746_s13 = smov (!%p1984_p10, %s1985_s13), %s1986_s0 }
 0xa29   : > { %s1969_s28 = ssub.f32 %s1962_s9, %s1968_s27  ;;  %s1988_s21 = smul.f32 %s9532_s8, %s10746_s13 }
 0xa2b   : > { %v8975_v15 = vpop.eup %8974  ;;  %s1970_s4 = smul.f32 %s1969_s28, %s1969_s28  ;;  %s1989_s5 = ssub.f32 %s1982_s20, %s1988_s21 }
 0xa2c   : > { %6977 = vmatmul.mubr.msk.f32.vlgmr.msra.gmra.mrb[6].mxu1 %vm299_vm2, %v8975_v15  ;;  %v1559_v15 = vrot.slane %v1307_v14, %v9658_v2 }
 0xa2d   : > { %8201 = vmatpush3.bf16.msra.mxu1 %v9635_v44  ;;  %7014 = vmatprep.mubr.msk.f32.mxu1 %vm9190_vm6, %v9191_v41  ;;  %s1990_s22 = smul.f32 %s1989_s5, %s1989_s5 }
 0xa2e   : > { %8202 = vmatprep.subr.bf16.mxu1 %v9189_v39 }
 0xa31   : > { %8204 = vmatpush3.bf16.msra.mxu1 %v9641_v46 }
 0xa32   : > { %8205 = vmatprep.subr.bf16.mxu1 %v9189_v39 }
 0xa35   : > { %8207 = vmatpush3.bf16.msra.mxu1 %v9646_v63 }
 0xa36   : > { %8208 = vmatprep.subr.bf16.mxu1 %v9189_v39 }
 0xa39   : > { %8210 = vmatpush3.bf16.msra.mxu1 %v9652_v0 }
 0xa3a   : > { %8223 = vmatprep.subr.bf16.mxu1 %v9189_v39 }
 0xaff   : > { %v1283_v18 = vpop.f32.mrb[6].mxu1 }
 0xb00   : > { %v1284_v19 = vadd.f32 %v1283_v18, %v1212_v4  ;;  %v6978_v20 = vpop.f32.mrb[7].mxu1 }
 0xb02   : > { %v1287_v21 = vmul.f32 %v1284_v19, %v9726_v1 }
 0xb04   : > { %v9798_v25 = vadd.f32 %v1287_v21, %v1123_v30 }
 0xb06   : > { %6996 = vmatmul.mubr.msk.f32.vlgmr.msra.gmra.mrb[8].mxu0 %vm299_vm2, %v9798_v25 }
 0xb07   : > { %8213 = vmatpush3.bf16.msra.mxu0 %v9593_v38  ;;  %7033 = vmatprep.mubr.msk.f32.mxu0 %vm9190_vm6, %v9191_v41 }
 0xb08   : > { %8214 = vmatprep.subr.bf16.mxu0 %v9189_v39 }
 0xb0b   : > { %8216 = vmatpush3.bf16.msra.mxu0 %v9600_v40 }
 0xb0c   : > { %8217 = vmatprep.subr.bf16.mxu0 %v9189_v39 }
 0xb0f   : > { %8219 = vmatpush3.bf16.msra.mxu0 %v9610_v42 }
 0xb10   : > { %8220 = vmatprep.subr.bf16.mxu0 %v9189_v39 }
 0xb13   : > { %8222 = vmatpush3.bf16.msra.mxu0 %v9616_v43 }
 0xb14   : > { %8235 = vmatprep.subr.bf16.mxu0 %v9189_v39 }
 0xbd9   : > { %v1399_v8 = vpop.f32.mrb[8].mxu0 }
 0xbda   : > { %v1400_v26 = vadd.f32 %v1399_v8, %v9530_v28  ;;  %v6997_v27 = vpop.f32.mrb[9].mxu0 }
 0xbdc   : > { %v1403_v30 = vadd.f32 %v1400_v26, %v1204_v9  ;;  %v1301_v9 = vstv %s1300_s6  ;;  %s1971_s6 = ssub.f32 0.0, %s1970_s4 }
 0xbdd   : > { %v1302_v10 = vmul.f32 1.442695, %v1301_v9 }
 0xbde   : > { %8976 = vtanh.f32 %v1403_v30 }
 0xbdf   : > { %8978 = vpow2.f32 %v1302_v10 }
 0xbe8   : > { %v8977_v31 = vpop.eup %8976 }
 0xbe9   : > { %7015 = vmatmul.mubr.msk.f32.vlgmr.msra.gmra.mrb[8].mxu1 %vm299_vm2, %v8977_v31  ;;  %v8979_v35 = vpop.eup %8978 }
 0xbea   : > { %8225 = vmatpush3.bf16.msra.mxu1 %v9635_v44  ;;  %7052 = vmatprep.mubr.msk.f32.mxu1 %vm9190_vm6, %v9191_v41  ;;  %8867 = vpush %v8979_v35 }
 0xbeb   : > { %8226 = vmatprep.subr.bf16.mxu1 %v9189_v39 }
 0xbee   : > { %8228 = vmatpush3.bf16.msra.mxu1 %v9641_v46 }
 0xbef   : > { %8229 = vmatprep.subr.bf16.mxu1 %v9189_v39 }
 0xbf2   : > { %8231 = vmatpush3.bf16.msra.mxu1 %v9646_v63 }
 0xbf3   : > { %8232 = vmatprep.subr.bf16.mxu1 %v9189_v39 }
 0xbf6   : > { %8234 = vmatpush3.bf16.msra.mxu1 %v9652_v0 }
 0xbf7   : > { %8247 = vmatprep.subr.bf16.mxu1 %v9189_v39 }
 0xc1b   : > { %s8868_s29 = spop %8867 }
 0xc1c   : > { %s1305_s11 = smul.f32 %s8868_s29, %s9550_s17 }
 0xc1d   : > { %s1972_s29 = smul.f32 500000.0, %s1971_s6 }
 0xc1e   : > { %v1308_v20 = vstv %s1305_s11 }
 0xc1f   : > { %v1309_v21 = vadd.f32 %v1308_v20, %v9555_v16 }
 0xc21   : > { %v1567_v8 = vrot.slane %v1309_v21, %v9658_v2 }
 0xcbc   : > { %v1474_v23 = vpop.f32.mrb[8].mxu1 }
 0xcbd   : > { %v1475_v36 = vadd.f32 %v1474_v23, %v1212_v4  ;;  %v7016_v3 = vpop.f32.mrb[9].mxu1 }
 0xcbf   : > { %v1480_v5 = vmul.f32 %v1475_v36, %v9686_v12  ;;  %v1478_v26 = vmul.f32 %v1475_v36, %v9726_v1 }
 0xcc1   : > { %v1481_v6 = vadd.f32 %v1480_v5, %v9798_v25  ;;  %v1479_v23 = vadd.f32 %v1478_v26, %v9798_v25  ;;  %v1326_v26 = vstv %s1310_s30 }
 0xcc3   : > { %7034 = vmatmul.mubr.msk.f32.vlgmr.msra.gmra.mrb[10].mxu0 %vm299_vm2, %v1481_v6 }
 0xcc4   : > { %8237 = vmatpush3.bf16.msra.mxu0 %v9593_v38  ;;  %7071 = vmatprep.mubr.msk.f32.mxu0 %vm9190_vm6, %v9191_v41 }
 0xcc5   : > { %8238 = vmatprep.subr.bf16.mxu0 %v9189_v39 }
 0xcc8   : > { %8240 = vmatpush3.bf16.msra.mxu0 %v9600_v40 }
 0xcc9   : > { %8241 = vmatprep.subr.bf16.mxu0 %v9189_v39 }
 0xccc   : > { %8243 = vmatpush3.bf16.msra.mxu0 %v9610_v42 }
 0xccd   : > { %8244 = vmatprep.subr.bf16.mxu0 %v9189_v39 }
 0xcd0   : > { %8246 = vmatpush3.bf16.msra.mxu0 %v9616_v43 }
 0xcd1   : > { %8259 = vmatprep.subr.bf16.mxu0 %v9189_v39 }
 0xd96   : > { %v1551_v17 = vpop.f32.mrb[10].mxu0 }
 0xd97   : > { %v1552_v13 = vadd.f32 %v1551_v17, %v9530_v28  ;;  %v7035_v4 = vpop.f32.mrb[11].mxu0 }
 0xd99   : > { %v1561_v18 = vadd.f32 %v1559_v15, %v1552_v13 }
 0xd9b   : > { %8980 = vtanh.f32 %v1561_v18 }
 0xda5   : > { %v8981_v19 = vpop.eup %8980 }
 0xda6   : > { %7053 = vmatmul.mubr.msk.f32.vlgmr.msra.gmra.mrb[10].mxu1 %vm299_vm2, %v8981_v19 }
 0xda7   : > { %8249 = vmatpush3.bf16.msra.mxu1 %v9635_v44  ;;  %7090 = vmatprep.mubr.msk.f32.mxu1 %vm9190_vm6, %v9191_v41 }
 0xda8   : > { %8250 = vmatprep.subr.bf16.mxu1 %v9189_v39 }
 0xdab   : > { %8252 = vmatpush3.bf16.msra.mxu1 %v9641_v46 }
 0xdac   : > { %8253 = vmatprep.subr.bf16.mxu1 %v9189_v39 }
 0xdaf   : > { %8255 = vmatpush3.bf16.msra.mxu1 %v9646_v63 }
 0xdb0   : > { %8256 = vmatprep.subr.bf16.mxu1 %v9189_v39 }
 0xdb3   : > { %8258 = vmatpush3.bf16.msra.mxu1 %v9652_v0 }
 0xdb4   : > { %8271 = vmatprep.subr.bf16.mxu1 %v9189_v39 }
 0xe79   : > { %v1638_v27 = vpop.f32.mrb[10].mxu1 }
 0xe7a   : > { %v1639_v30 = vadd.f32 %v1638_v27, %v1567_v8  ;;  %v7054_v31 = vpop.f32.mrb[11].mxu1  ;;  %v1327_v27 = vmul.f32 %v1326_v26, %v9538_v33 }
 0xe7c   : > { %v1642_v3 = vmul.f32 %v1639_v30, %v9730_v7  ;;  %v1644_v5 = vmul.f32 %v1639_v30, %v9686_v12  ;;  %v1875_v30 = vrot.slane %v1327_v27, %v9658_v2 }
 0xe7e   : > { %v1643_v6 = vadd.f32 %v1642_v3, %v1479_v23  ;;  %v1645_v9 = vadd.f32 %v1644_v5, %v9798_v25 }
 0xe80   : > { %7072 = vmatmul.mubr.msk.f32.vlgmr.msra.gmra.mrb[12].mxu0 %vm299_vm2, %v1645_v9 }
 0xe81   : > { %8261 = vmatpush3.bf16.msra.mxu0 %v9593_v38  ;;  %7109 = vmatprep.mubr.msk.f32.mxu0 %vm9190_vm6, %v9191_v41 }
 0xe82   : > { %8262 = vmatprep.subr.bf16.mxu0 %v9189_v39 }
 0xe85   : > { %8264 = vmatpush3.bf16.msra.mxu0 %v9600_v40 }
 0xe86   : > { %8265 = vmatprep.subr.bf16.mxu0 %v9189_v39 }
 0xe89   : > { %8267 = vmatpush3.bf16.msra.mxu0 %v9610_v42 }
 0xe8a   : > { %8268 = vmatprep.subr.bf16.mxu0 %v9189_v39 }
 0xe8d   : > { %8270 = vmatpush3.bf16.msra.mxu0 %v9616_v43 }
 0xe8e   : > { %8283 = vmatprep.subr.bf16.mxu0 %v9189_v39 }
 0xf53   : > { %v1715_v36 = vpop.f32.mrb[12].mxu0 }
 0xf54   : > { %v1716_v10 = vadd.f32 %v1715_v36, %v9530_v28  ;;  %v7073_v35 = vpop.f32.mrb[13].mxu0 }
 0xf56   : > { %v1719_v11 = vadd.f32 %v1716_v10, %v1559_v15 }
 0xf58   : > { %8982 = vtanh.f32 %v1719_v11 }
 0xf62   : > { %v8983_v14 = vpop.eup %8982 }
 0xf63   : > { %7091 = vmatmul.mubr.msk.f32.vlgmr.msra.gmra.mrb[12].mxu1 %vm299_vm2, %v8983_v14 }
 0xf64   : > { %8273 = vmatpush3.bf16.msra.mxu1 %v9635_v44  ;;  %7128 = vmatprep.mubr.msk.f32.mxu1 %vm9190_vm6, %v9191_v41 }
 0xf65   : > { %8274 = vmatprep.subr.bf16.mxu1 %v9189_v39 }
 0xf68   : > { %8276 = vmatpush3.bf16.msra.mxu1 %v9641_v46 }
 0xf69   : > { %8277 = vmatprep.subr.bf16.mxu1 %v9189_v39 }
 0xf6c   : > { %8279 = vmatpush3.bf16.msra.mxu1 %v9646_v63 }
 0xf6d   : > { %8280 = vmatprep.subr.bf16.mxu1 %v9189_v39 }
 0xf70   : > { %8282 = vmatpush3.bf16.msra.mxu1 %v9652_v0 }
 0xf71   : > { %8295 = vmatprep.subr.bf16.mxu1 %v9189_v39 }
0x1036   : > { %v1790_v15 = vpop.f32.mrb[12].mxu1 }
0x1037   : > { %v1791_v17 = vadd.f32 %v1790_v15, %v1567_v8  ;;  %v7092_v13 = vpop.f32.mrb[13].mxu1 }
0x1039   : > { %v1794_v4 = vmul.f32 %v1791_v17, %v9730_v7  ;;  %v1796_v18 = vmul.f32 %v1791_v17, %v9760_v24 }
0x103b   : > { %v1795_v19 = vadd.f32 %v1794_v4, %v1643_v6  ;;  %v1797_v20 = vadd.f32 %v1796_v18, %v9798_v25  ;;  %v1321_v25 = vstv %s1320_s24  ;;  %s1991_s24 = ssub.f32 0.0, %s1990_s22 }
0x103c   : > { %v1322_v21 = vmul.f32 1.442695, %v1321_v25 }
0x103d   : > { %7110 = vmatmul.mubr.msk.f32.vlgmr.msra.gmra.mrb[14].mxu0 %vm299_vm2, %v1797_v20 }
0x103e   : > { %8285 = vmatpush3.bf16.msra.mxu0 %v9593_v38  ;;  %7147 = vmatprep.mubr.msk.f32.mxu0 %vm9190_vm6, %v9191_v41  ;;  %8984 = vpow2.f32 %v1322_v21 }
0x103f   : > { %8286 = vmatprep.subr.bf16.mxu0 %v9189_v39 }
0x1042   : > { %8288 = vmatpush3.bf16.msra.mxu0 %v9600_v40 }
0x1043   : > { %8289 = vmatprep.subr.bf16.mxu0 %v9189_v39 }
0x1046   : > { %8291 = vmatpush3.bf16.msra.mxu0 %v9610_v42 }
0x1047   : > { %8292 = vmatprep.subr.bf16.mxu0 %v9189_v39 }
0x1048   : > { %v8985_v8 = vpop.eup %8984 }
0x1049   : > { %8869 = vpush %v8985_v8 }
0x104a   : > { %8294 = vmatpush3.bf16.msra.mxu0 %v9616_v43 }
0x104b   : > { %8307 = vmatprep.subr.bf16.mxu0 %v9189_v39 }
0x107a   : > { %s8870_s10 = spop %8869 }
0x107b   : > { %s1325_s25 = smul.f32 %s8870_s10, %s9550_s17 }
0x107c   : > { %s1992_s10 = smul.f32 500000.0, %s1991_s24 }
0x107d   : > { %v1328_v9 = vstv %s1325_s25 }
0x107e   : > { %v1329_v36 = vadd.f32 %v1328_v9, %v9555_v16 }
0x1080   : > { %v1883_v10 = vrot.slane %v1329_v36, %v9658_v2 }
0x1110   : > { %v1867_v31 = vpop.f32.mrb[14].mxu0 }
0x1111   : > { %v1868_v23 = vadd.f32 %v1867_v31, %v9530_v28  ;;  %v7111_v3 = vpop.f32.mrb[15].mxu0 }
0x1112   : > { %v1978_v3 = vstv %s1962_s9  ;;  %s10095_s9 = sadd.f32 %s2632_s3, %s9674_s1 }
0x1113   : > { %v1877_v5 = vadd.f32 %v1875_v30, %v1868_v23 }
0x1114   : > { %s2634_s26 = sadd.f32 %s10095_s9, %s9681_s23 }
0x1115   : > { %8986 = vtanh.f32 %v1877_v5  ;;  %v1979_v5 = vmul.f32 %v1978_v3, %v9538_v33  ;;  %s2654_s7 = sadd.f32 %s10095_s9, %s9678_s2  ;;  %s3304_s9 = smul.f32 4.0, %s9678_s2 }
0x1116   : > { %s2635_s16 = smul.f32 %s9543_s12, %s2634_s26 }
0x1117   : > { %s2655_s13 = smul.f32 %s9543_s12, %s2654_s7 }
0x1118   : > { %p2636_p11 = scmp.lt.f32.partialorder %s2635_s16, 0.0  ;;  %s2637_s18 = sceil.f32 %s2635_s16 }
0x1119   : > { %s2638_s27 = sfloor.f32 %s2635_s16  ;;  %p2656_p12 = scmp.lt.f32.partialorder %s2655_s13, 0.0 }
0x111a   : > { %s10748_s18 = smov (!%p2636_p11, %s2637_s18), %s2638_s27  ;;  %s2657_s0 = sceil.f32 %s2655_s13 }
0x111b   : > { %s2640_s28 = smul.f32 %s9532_s8, %s10748_s18  ;;  %s2658_s21 = sfloor.f32 %s2655_s13 }
0x111c   : > { %s10750_s0 = smov (!%p2656_p12, %s2657_s0), %s2658_s21 }
0x111d   : > { %s2641_s4 = ssub.f32 %s2634_s26, %s2640_s28  ;;  %s2660_s5 = smul.f32 %s9532_s8, %s10750_s0 }
0x111f   : > { %v8987_v6 = vpop.eup %8986  ;;  %s2642_s6 = smul.f32 %s2641_s4, %s2641_s4  ;;  %s2661_s22 = ssub.f32 %s2654_s7, %s2660_s5 }
0x1120   : > { %7129 = vmatmul.mubr.msk.f32.vlgmr.msra.gmra.mrb[14].mxu1 %vm299_vm2, %v8987_v6  ;;  %v2231_v6 = vrot.slane %v1979_v5, %v9658_v2 }
0x1121   : > { %8297 = vmatpush3.bf16.msra.mxu1 %v9635_v44  ;;  %7166 = vmatprep.mubr.msk.f32.mxu1 %vm9190_vm6, %v9191_v41  ;;  %s2662_s24 = smul.f32 %s2661_s22, %s2661_s22 }
0x1122   : > { %8298 = vmatprep.subr.bf16.mxu1 %v9189_v39 }
0x1125   : > { %8300 = vmatpush3.bf16.msra.mxu1 %v9641_v46 }
0x1126   : > { %8301 = vmatprep.subr.bf16.mxu1 %v9189_v39 }
0x1129   : > { %8303 = vmatpush3.bf16.msra.mxu1 %v9646_v63 }
0x112a   : > { %8304 = vmatprep.subr.bf16.mxu1 %v9189_v39 }
0x112d   : > { %8306 = vmatpush3.bf16.msra.mxu1 %v9652_v0 }
0x112e   : > { %8319 = vmatprep.subr.bf16.mxu1 %v9189_v39 }
0x11f3   : > { %v1954_v35 = vpop.f32.mrb[14].mxu1 }
0x11f4   : > { %v1955_v11 = vadd.f32 %v1954_v35, %v1883_v10  ;;  %v7130_v14 = vpop.f32.mrb[15].mxu1 }
0x11f6   : > { %v1958_v15 = vmul.f32 %v1955_v11, %v9726_v1 }
0x11f8   : > { %v9926_v17 = vadd.f32 %v1958_v15, %v1795_v19 }
0x11fa   : > { %7148 = vmatmul.mubr.msk.f32.vlgmr.msra.gmra.mrb[16].mxu0 %vm299_vm2, %v9926_v17 }
0x11fb   : > { %8309 = vmatpush3.bf16.msra.mxu0 %v9593_v38  ;;  %7185 = vmatprep.mubr.msk.f32.mxu0 %vm9190_vm6, %v9191_v41 }
0x11fc   : > { %8310 = vmatprep.subr.bf16.mxu0 %v9189_v39 }
0x11ff   : > { %8312 = vmatpush3.bf16.msra.mxu0 %v9600_v40 }
0x1200   : > { %8313 = vmatprep.subr.bf16.mxu0 %v9189_v39 }
0x1203   : > { %8315 = vmatpush3.bf16.msra.mxu0 %v9610_v42 }
0x1204   : > { %8316 = vmatprep.subr.bf16.mxu0 %v9189_v39 }
0x1207   : > { %8318 = vmatpush3.bf16.msra.mxu0 %v9616_v43 }
0x1208   : > { %8331 = vmatprep.subr.bf16.mxu0 %v9189_v39 }
0x12cd   : > { %v2071_v13 = vpop.f32.mrb[16].mxu0 }
0x12ce   : > { %v2072_v4 = vadd.f32 %v2071_v13, %v9530_v28  ;;  %v7149_v18 = vpop.f32.mrb[17].mxu0 }
0x12d0   : > { %v2075_v19 = vadd.f32 %v2072_v4, %v1875_v30  ;;  %v1973_v30 = vstv %s1972_s29  ;;  %s2643_s29 = ssub.f32 0.0, %s2642_s6 }
0x12d1   : > { %v1974_v31 = vmul.f32 1.442695, %v1973_v30 }
0x12d2   : > { %8988 = vtanh.f32 %v2075_v19 }
0x12d3   : > { %8990 = vpow2.f32 %v1974_v31 }
0x12dc   : > { %v8989_v20 = vpop.eup %8988 }
0x12dd   : > { %7167 = vmatmul.mubr.msk.f32.vlgmr.msra.gmra.mrb[16].mxu1 %vm299_vm2, %v8989_v20  ;;  %v8991_v23 = vpop.eup %8990 }
0x12de   : > { %8321 = vmatpush3.bf16.msra.mxu1 %v9635_v44  ;;  %7204 = vmatprep.mubr.msk.f32.mxu1 %vm9190_vm6, %v9191_v41  ;;  %8871 = vpush %v8991_v23 }
0x12df   : > { %8322 = vmatprep.subr.bf16.mxu1 %v9189_v39 }
0x12e2   : > { %8324 = vmatpush3.bf16.msra.mxu1 %v9641_v46 }
0x12e3   : > { %8325 = vmatprep.subr.bf16.mxu1 %v9189_v39 }
0x12e6   : > { %8327 = vmatpush3.bf16.msra.mxu1 %v9646_v63 }
0x12e7   : > { %8328 = vmatprep.subr.bf16.mxu1 %v9189_v39 }
0x12ea   : > { %8330 = vmatpush3.bf16.msra.mxu1 %v9652_v0 }
0x12eb   : > { %8343 = vmatprep.subr.bf16.mxu1 %v9189_v39 }
0x130f   : > { %s8872_s11 = spop %8871 }
0x1310   : > { %s1977_s30 = smul.f32 %s8872_s11, %s9550_s17 }
0x1311   : > { %s2644_s11 = smul.f32 500000.0, %s2643_s29 }
0x1312   : > { %v1980_v14 = vstv %s1977_s30 }
0x1313   : > { %v1981_v15 = vadd.f32 %v1980_v14, %v9555_v16 }
0x1315   : > { %v2239_v13 = vrot.slane %v1981_v15, %v9658_v2 }
0x13b0   : > { %v2146_v25 = vpop.f32.mrb[16].mxu1 }
0x13b1   : > { %v2147_v21 = vadd.f32 %v2146_v25, %v1883_v10  ;;  %v7168_v8 = vpop.f32.mrb[17].mxu1 }
0x13b3   : > { %v2152_v26 = vmul.f32 %v2147_v21, %v9686_v12  ;;  %v2150_v4 = vmul.f32 %v2147_v21, %v9726_v1 }
0x13b5   : > { %v2153_v27 = vadd.f32 %v2152_v26, %v9926_v17  ;;  %v2151_v25 = vadd.f32 %v2150_v4, %v9926_v17  ;;  %v1998_v4 = vstv %s1982_s20 }
0x13b7   : > { %7186 = vmatmul.mubr.msk.f32.vlgmr.msra.gmra.mrb[18].mxu0 %vm299_vm2, %v2153_v27 }
0x13b8   : > { %8333 = vmatpush3.bf16.msra.mxu0 %v9593_v38  ;;  %7223 = vmatprep.mubr.msk.f32.mxu0 %vm9190_vm6, %v9191_v41 }
0x13b9   : > { %8334 = vmatprep.subr.bf16.mxu0 %v9189_v39 }
0x13bc   : > { %8336 = vmatpush3.bf16.msra.mxu0 %v9600_v40 }
0x13bd   : > { %8337 = vmatprep.subr.bf16.mxu0 %v9189_v39 }
0x13c0   : > { %8339 = vmatpush3.bf16.msra.mxu0 %v9610_v42 }
0x13c1   : > { %8340 = vmatprep.subr.bf16.mxu0 %v9189_v39 }
0x13c4   : > { %8342 = vmatpush3.bf16.msra.mxu0 %v9616_v43 }
0x13c5   : > { %8355 = vmatprep.subr.bf16.mxu0 %v9189_v39 }
0x148a   : > { %v2223_v9 = vpop.f32.mrb[18].mxu0 }
0x148b   : > { %v2224_v36 = vadd.f32 %v2223_v9, %v9530_v28  ;;  %v7187_v10 = vpop.f32.mrb[19].mxu0 }
0x148d   : > { %v2233_v35 = vadd.f32 %v2231_v6, %v2224_v36 }
0x148f   : > { %8992 = vtanh.f32 %v2233_v35 }
0x1499   : > { %v8993_v11 = vpop.eup %8992 }
0x149a   : > { %7205 = vmatmul.mubr.msk.f32.vlgmr.msra.gmra.mrb[18].mxu1 %vm299_vm2, %v8993_v11 }
0x149b   : > { %8345 = vmatpush3.bf16.msra.mxu1 %v9635_v44  ;;  %7242 = vmatprep.mubr.msk.f32.mxu1 %vm9190_vm6, %v9191_v41 }
0x149c   : > { %8346 = vmatprep.subr.bf16.mxu1 %v9189_v39 }
0x149f   : > { %8348 = vmatpush3.bf16.msra.mxu1 %v9641_v46 }
0x14a0   : > { %8349 = vmatprep.subr.bf16.mxu1 %v9189_v39 }
0x14a3   : > { %8351 = vmatpush3.bf16.msra.mxu1 %v9646_v63 }
0x14a4   : > { %8352 = vmatprep.subr.bf16.mxu1 %v9189_v39 }
0x14a7   : > { %8354 = vmatpush3.bf16.msra.mxu1 %v9652_v0 }
0x14a8   : > { %8367 = vmatprep.subr.bf16.mxu1 %v9189_v39 }
0x156d   : > { %v2310_v18 = vpop.f32.mrb[18].mxu1 }
0x156e   : > { %v2311_v19 = vadd.f32 %v2310_v18, %v2239_v13  ;;  %v7206_v20 = vpop.f32.mrb[19].mxu1  ;;  %v1999_v18 = vmul.f32 %v1998_v4, %v9538_v33 }
0x1570   : > { %v2314_v8 = vmul.f32 %v2311_v19, %v9730_v7  ;;  %v2316_v26 = vmul.f32 %v2311_v19, %v9686_v12  ;;  %v2547_v19 = vrot.slane %v1999_v18, %v9658_v2 }
0x1572   : > { %v2315_v27 = vadd.f32 %v2314_v8, %v2151_v25  ;;  %v2317_v30 = vadd.f32 %v2316_v26, %v9926_v17 }
0x1574   : > { %7224 = vmatmul.mubr.msk.f32.vlgmr.msra.gmra.mrb[20].mxu0 %vm299_vm2, %v2317_v30 }
0x1575   : > { %8357 = vmatpush3.bf16.msra.mxu0 %v9593_v38  ;;  %7261 = vmatprep.mubr.msk.f32.mxu0 %vm9190_vm6, %v9191_v41 }
0x1576   : > { %8358 = vmatprep.subr.bf16.mxu0 %v9189_v39 }
0x1579   : > { %8360 = vmatpush3.bf16.msra.mxu0 %v9600_v40 }
0x157a   : > { %8361 = vmatprep.subr.bf16.mxu0 %v9189_v39 }
0x157d   : > { %8363 = vmatpush3.bf16.msra.mxu0 %v9610_v42 }
0x157e   : > { %8364 = vmatprep.subr.bf16.mxu0 %v9189_v39 }
0x1581   : > { %8366 = vmatpush3.bf16.msra.mxu0 %v9616_v43 }
0x1582   : > { %8379 = vmatprep.subr.bf16.mxu0 %v9189_v39 }
0x1647   : > { %v2387_v21 = vpop.f32.mrb[20].mxu0 }
0x1648   : > { %v2388_v31 = vadd.f32 %v2387_v21, %v9530_v28  ;;  %v7225_v23 = vpop.f32.mrb[21].mxu0 }
0x164a   : > { %v2391_v3 = vadd.f32 %v2388_v31, %v2231_v6 }
0x164c   : > { %8994 = vtanh.f32 %v2391_v3 }
0x1656   : > { %v8995_v5 = vpop.eup %8994 }
0x1657   : > { %7243 = vmatmul.mubr.msk.f32.vlgmr.msra.gmra.mrb[20].mxu1 %vm299_vm2, %v8995_v5 }
0x1658   : > { %8369 = vmatpush3.bf16.msra.mxu1 %v9635_v44  ;;  %7280 = vmatprep.mubr.msk.f32.mxu1 %vm9190_vm6, %v9191_v41 }
0x1659   : > { %8370 = vmatprep.subr.bf16.mxu1 %v9189_v39 }
0x165c   : > { %8372 = vmatpush3.bf16.msra.mxu1 %v9641_v46 }
0x165d   : > { %8373 = vmatprep.subr.bf16.mxu1 %v9189_v39 }
0x1660   : > { %8375 = vmatpush3.bf16.msra.mxu1 %v9646_v63 }
0x1661   : > { %8376 = vmatprep.subr.bf16.mxu1 %v9189_v39 }
0x1664   : > { %8378 = vmatpush3.bf16.msra.mxu1 %v9652_v0 }
0x1665   : > { %8391 = vmatprep.subr.bf16.mxu1 %v9189_v39 }
0x172a   : > { %v2462_v6 = vpop.f32.mrb[20].mxu1 }
0x172b   : > { %v2463_v9 = vadd.f32 %v2462_v6, %v2239_v13  ;;  %v7244_v36 = vpop.f32.mrb[21].mxu1 }
0x172d   : > { %v2466_v10 = vmul.f32 %v2463_v9, %v9730_v7  ;;  %v2468_v35 = vmul.f32 %v2463_v9, %v9760_v24 }
0x172f   : > { %v2467_v11 = vadd.f32 %v2466_v10, %v2315_v27  ;;  %v2469_v14 = vadd.f32 %v2468_v35, %v9926_v17  ;;  %v1993_v17 = vstv %s1992_s10  ;;  %s2663_s10 = ssub.f32 0.0, %s2662_s24 }
0x1730   : > { %v1994_v15 = vmul.f32 1.442695, %v1993_v17 }
0x1731   : > { %7262 = vmatmul.mubr.msk.f32.vlgmr.msra.gmra.mrb[22].mxu0 %vm299_vm2, %v2469_v14 }
0x1732   : > { %8381 = vmatpush3.bf16.msra.mxu0 %v9593_v38  ;;  %7299 = vmatprep.mubr.msk.f32.mxu0 %vm9190_vm6, %v9191_v41  ;;  %8996 = vpow2.f32 %v1994_v15 }
0x1733   : > { %8382 = vmatprep.subr.bf16.mxu0 %v9189_v39 }
0x1736   : > { %8384 = vmatpush3.bf16.msra.mxu0 %v9600_v40 }
0x1737   : > { %8385 = vmatprep.subr.bf16.mxu0 %v9189_v39 }
0x173a   : > { %8387 = vmatpush3.bf16.msra.mxu0 %v9610_v42 }
0x173b   : > { %8388 = vmatprep.subr.bf16.mxu0 %v9189_v39 }
0x173c   : > { %v8997_v13 = vpop.eup %8996 }
0x173d   : > { %8873 = vpush %v8997_v13 }
0x173e   : > { %8390 = vmatpush3.bf16.msra.mxu0 %v9616_v43 }
0x173f   : > { %8403 = vmatprep.subr.bf16.mxu0 %v9189_v39 }
0x176e   : > { %s8874_s25 = spop %8873 }
0x176f   : > { %s1997_s15 = smul.f32 %s8874_s25, %s9550_s17 }
0x1770   : > { %s2664_s25 = smul.f32 500000.0, %s2663_s10 }
0x1771   : > { %v2000_v30 = vstv %s1997_s15 }
0x1772   : > { %v2001_v21 = vadd.f32 %v2000_v30, %v9555_v16 }
0x1774   : > { %v2555_v31 = vrot.slane %v2001_v21, %v9658_v2 }
0x1804   : > { %v2539_v20 = vpop.f32.mrb[22].mxu0 }
0x1805   : > { %v2540_v25 = vadd.f32 %v2539_v20, %v9530_v28  ;;  %v7263_v8 = vpop.f32.mrb[23].mxu0 }
0x1806   : > { %v2650_v8 = vstv %s2634_s26  ;;  %s10223_s26 = sadd.f32 %s3304_s9, %s9674_s1 }
0x1807   : > { %v2549_v26 = vadd.f32 %v2547_v19, %v2540_v25 }
0x1808   : > { %s3306_s16 = sadd.f32 %s10223_s26, %s9681_s23 }
0x1809   : > { %8998 = vtanh.f32 %v2549_v26  ;;  %v2651_v26 = vmul.f32 %v2650_v8, %v9538_v33  ;;  %s3326_s13 = sadd.f32 %s10223_s26, %s9678_s2  ;;  %s3976_s26 = smul.f32 5.0, %s9678_s2 }
0x180a   : > { %s3307_s18 = smul.f32 %s9543_s12, %s3306_s16 }
0x180b   : > { %s3327_s0 = smul.f32 %s9543_s12, %s3326_s13 }
0x180c   : > { %p3308_p13 = scmp.lt.f32.partialorder %s3307_s18, 0.0  ;;  %s3309_s27 = sceil.f32 %s3307_s18 }
0x180d   : > { %s3310_s28 = sfloor.f32 %s3307_s18  ;;  %p3328_p0 = scmp.lt.f32.partialorder %s3327_s0, 0.0 }
0x180e   : > { %s10752_s27 = smov (!%p3308_p13, %s3309_s27), %s3310_s28  ;;  %s3329_s21 = sceil.f32 %s3327_s0 }
0x180f   : > { %s3312_s4 = smul.f32 %s9532_s8, %s10752_s27  ;;  %s3330_s5 = sfloor.f32 %s3327_s0 }
0x1810   : > { %s10754_s21 = smov (!%p3328_p0, %s3329_s21), %s3330_s5 }
0x1811   : > { %s3313_s6 = ssub.f32 %s3306_s16, %s3312_s4  ;;  %s3332_s22 = smul.f32 %s9532_s8, %s10754_s21 }
0x1813   : > { %v8999_v27 = vpop.eup %8998  ;;  %s3314_s29 = smul.f32 %s3313_s6, %s3313_s6  ;;  %s3333_s24 = ssub.f32 %s3326_s13, %s3332_s22 }
0x1814   : > { %7281 = vmatmul.mubr.msk.f32.vlgmr.msra.gmra.mrb[22].mxu1 %vm299_vm2, %v8999_v27  ;;  %v2903_v27 = vrot.slane %v2651_v26, %v9658_v2 }
0x1815   : > { %8393 = vmatpush3.bf16.msra.mxu1 %v9635_v44  ;;  %7318 = vmatprep.mubr.msk.f32.mxu1 %vm9190_vm6, %v9191_v41  ;;  %s3334_s10 = smul.f32 %s3333_s24, %s3333_s24 }
0x1816   : > { %8394 = vmatprep.subr.bf16.mxu1 %v9189_v39 }
0x1819   : > { %8396 = vmatpush3.bf16.msra.mxu1 %v9641_v46 }
0x181a   : > { %8397 = vmatprep.subr.bf16.mxu1 %v9189_v39 }
0x181d   : > { %8399 = vmatpush3.bf16.msra.mxu1 %v9646_v63 }
0x181e   : > { %8400 = vmatprep.subr.bf16.mxu1 %v9189_v39 }
0x1821   : > { %8402 = vmatpush3.bf16.msra.mxu1 %v9652_v0 }
0x1822   : > { %8415 = vmatprep.subr.bf16.mxu1 %v9189_v39 }
0x18e7   : > { %v2626_v23 = vpop.f32.mrb[22].mxu1 }
0x18e8   : > { %v2627_v3 = vadd.f32 %v2626_v23, %v2555_v31  ;;  %v7282_v5 = vpop.f32.mrb[23].mxu1 }
0x18ea   : > { %v2630_v6 = vmul.f32 %v2627_v3, %v9726_v1 }
0x18ec   : > { %v10054_v9 = vadd.f32 %v2630_v6, %v2467_v11 }
0x18ee   : > { %7300 = vmatmul.mubr.msk.f32.vlgmr.msra.gmra.mrb[24].mxu0 %vm299_vm2, %v10054_v9 }
0x18ef   : > { %8405 = vmatpush3.bf16.msra.mxu0 %v9593_v38  ;;  %7337 = vmatprep.mubr.msk.f32.mxu0 %vm9190_vm6, %v9191_v41 }
0x18f0   : > { %8406 = vmatprep.subr.bf16.mxu0 %v9189_v39 }
0x18f3   : > { %8408 = vmatpush3.bf16.msra.mxu0 %v9600_v40 }
0x18f4   : > { %8409 = vmatprep.subr.bf16.mxu0 %v9189_v39 }
0x18f7   : > { %8411 = vmatpush3.bf16.msra.mxu0 %v9610_v42 }
0x18f8   : > { %8412 = vmatprep.subr.bf16.mxu0 %v9189_v39 }
0x18fb   : > { %8414 = vmatpush3.bf16.msra.mxu0 %v9616_v43 }
0x18fc   : > { %8427 = vmatprep.subr.bf16.mxu0 %v9189_v39 }
0x19c1   : > { %v2743_v36 = vpop.f32.mrb[24].mxu0 }
0x19c2   : > { %v2744_v10 = vadd.f32 %v2743_v36, %v9530_v28  ;;  %v7301_v35 = vpop.f32.mrb[25].mxu0 }
0x19c4   : > { %v2747_v11 = vadd.f32 %v2744_v10, %v2547_v19  ;;  %v2645_v19 = vstv %s2644_s11  ;;  %s3315_s11 = ssub.f32 0.0, %s3314_s29 }
0x19c5   : > { %v2646_v20 = vmul.f32 1.442695, %v2645_v19 }
0x19c6   : > { %9000 = vtanh.f32 %v2747_v11 }
0x19c7   : > { %9002 = vpow2.f32 %v2646_v20 }
0x19d0   : > { %v9001_v14 = vpop.eup %9000 }
0x19d1   : > { %7319 = vmatmul.mubr.msk.f32.vlgmr.msra.gmra.mrb[24].mxu1 %vm299_vm2, %v9001_v14  ;;  %v9003_v25 = vpop.eup %9002 }
0x19d2   : > { %8417 = vmatpush3.bf16.msra.mxu1 %v9635_v44  ;;  %7356 = vmatprep.mubr.msk.f32.mxu1 %vm9190_vm6, %v9191_v41  ;;  %8875 = vpush %v9003_v25 }
0x19d3   : > { %8418 = vmatprep.subr.bf16.mxu1 %v9189_v39 }
0x19d6   : > { %8420 = vmatpush3.bf16.msra.mxu1 %v9641_v46 }
0x19d7   : > { %8421 = vmatprep.subr.bf16.mxu1 %v9189_v39 }
0x19da   : > { %8423 = vmatpush3.bf16.msra.mxu1 %v9646_v63 }
0x19db   : > { %8424 = vmatprep.subr.bf16.mxu1 %v9189_v39 }
0x19de   : > { %8426 = vmatpush3.bf16.msra.mxu1 %v9652_v0 }
0x19df   : > { %8439 = vmatprep.subr.bf16.mxu1 %v9189_v39 }
0x1a03   : > { %s8876_s30 = spop %8875 }
0x1a04   : > { %s2649_s20 = smul.f32 %s8876_s30, %s9550_s17 }
0x1a05   : > { %s3316_s30 = smul.f32 500000.0, %s3315_s11 }
0x1a06   : > { %v2652_v5 = vstv %s2649_s20 }
0x1a07   : > { %v2653_v6 = vadd.f32 %v2652_v5, %v9555_v16 }
0x1a09   : > { %v2911_v36 = vrot.slane %v2653_v6, %v9658_v2 }
0x1aa4   : > { %v2818_v17 = vpop.f32.mrb[24].mxu1 }
0x1aa5   : > { %v2819_v15 = vadd.f32 %v2818_v17, %v2555_v31  ;;  %v7320_v13 = vpop.f32.mrb[25].mxu1 }
0x1aa7   : > { %v2824_v4 = vmul.f32 %v2819_v15, %v9686_v12  ;;  %v2822_v10 = vmul.f32 %v2819_v15, %v9726_v1 }
0x1aa9   : > { %v2825_v18 = vadd.f32 %v2824_v4, %v10054_v9  ;;  %v2823_v17 = vadd.f32 %v2822_v10, %v10054_v9  ;;  %v2670_v10 = vstv %s2654_s7 }
0x1aab   : > { %7338 = vmatmul.mubr.msk.f32.vlgmr.msra.gmra.mrb[26].mxu0 %vm299_vm2, %v2825_v18 }
0x1aac   : > { %8429 = vmatpush3.bf16.msra.mxu0 %v9593_v38  ;;  %7375 = vmatprep.mubr.msk.f32.mxu0 %vm9190_vm6, %v9191_v41 }
0x1aad   : > { %8430 = vmatprep.subr.bf16.mxu0 %v9189_v39 }
0x1ab0   : > { %8432 = vmatpush3.bf16.msra.mxu0 %v9600_v40 }
0x1ab1   : > { %8433 = vmatprep.subr.bf16.mxu0 %v9189_v39 }
0x1ab4   : > { %8435 = vmatpush3.bf16.msra.mxu0 %v9610_v42 }
0x1ab5   : > { %8436 = vmatprep.subr.bf16.mxu0 %v9189_v39 }
0x1ab8   : > { %8438 = vmatpush3.bf16.msra.mxu0 %v9616_v43 }
0x1ab9   : > { %8451 = vmatprep.subr.bf16.mxu0 %v9189_v39 }
0x1b7e   : > { %v2895_v30 = vpop.f32.mrb[26].mxu0 }
0x1b7f   : > { %v2896_v21 = vadd.f32 %v2895_v30, %v9530_v28  ;;  %v7339_v31 = vpop.f32.mrb[27].mxu0 }
0x1b81   : > { %v2905_v23 = vadd.f32 %v2903_v27, %v2896_v21 }
0x1b83   : > { %9004 = vtanh.f32 %v2905_v23 }
0x1b8d   : > { %v9005_v3 = vpop.eup %9004 }
0x1b8e   : > { %7357 = vmatmul.mubr.msk.f32.vlgmr.msra.gmra.mrb[26].mxu1 %vm299_vm2, %v9005_v3 }
0x1b8f   : > { %8441 = vmatpush3.bf16.msra.mxu1 %v9635_v44  ;;  %7394 = vmatprep.mubr.msk.f32.mxu1 %vm9190_vm6, %v9191_v41 }
0x1b90   : > { %8442 = vmatprep.subr.bf16.mxu1 %v9189_v39 }
0x1b93   : > { %8444 = vmatpush3.bf16.msra.mxu1 %v9641_v46 }
0x1b94   : > { %8445 = vmatprep.subr.bf16.mxu1 %v9189_v39 }
0x1b97   : > { %8447 = vmatpush3.bf16.msra.mxu1 %v9646_v63 }
0x1b98   : > { %8448 = vmatprep.subr.bf16.mxu1 %v9189_v39 }
0x1b9b   : > { %8450 = vmatpush3.bf16.msra.mxu1 %v9652_v0 }
0x1b9c   : > { %8463 = vmatprep.subr.bf16.mxu1 %v9189_v39 }
0x1c61   : > { %v2982_v35 = vpop.f32.mrb[26].mxu1 }
0x1c62   : > { %v2983_v11 = vadd.f32 %v2982_v35, %v2911_v36  ;;  %v7358_v14 = vpop.f32.mrb[27].mxu1  ;;  %v2671_v35 = vmul.f32 %v2670_v10, %v9538_v33 }
0x1c64   : > { %v2986_v13 = vmul.f32 %v2983_v11, %v9730_v7  ;;  %v2988_v4 = vmul.f32 %v2983_v11, %v9686_v12  ;;  %v3219_v11 = vrot.slane %v2671_v35, %v9658_v2 }
0x1c66   : > { %v2987_v18 = vadd.f32 %v2986_v13, %v2823_v17  ;;  %v2989_v19 = vadd.f32 %v2988_v4, %v10054_v9 }
0x1c68   : > { %7376 = vmatmul.mubr.msk.f32.vlgmr.msra.gmra.mrb[28].mxu0 %vm299_vm2, %v2989_v19 }
0x1c69   : > { %8453 = vmatpush3.bf16.msra.mxu0 %v9593_v38  ;;  %7413 = vmatprep.mubr.msk.f32.mxu0 %vm9190_vm6, %v9191_v41 }
0x1c6a   : > { %8454 = vmatprep.subr.bf16.mxu0 %v9189_v39 }
0x1c6d   : > { %8456 = vmatpush3.bf16.msra.mxu0 %v9600_v40 }
0x1c6e   : > { %8457 = vmatprep.subr.bf16.mxu0 %v9189_v39 }
0x1c71   : > { %8459 = vmatpush3.bf16.msra.mxu0 %v9610_v42 }
0x1c72   : > { %8460 = vmatprep.subr.bf16.mxu0 %v9189_v39 }
0x1c75   : > { %8462 = vmatpush3.bf16.msra.mxu0 %v9616_v43 }
0x1c76   : > { %8475 = vmatprep.subr.bf16.mxu0 %v9189_v39 }
0x1d3b   : > { %v3059_v15 = vpop.f32.mrb[28].mxu0 }
0x1d3c   : > { %v3060_v20 = vadd.f32 %v3059_v15, %v9530_v28  ;;  %v7377_v25 = vpop.f32.mrb[29].mxu0 }
0x1d3e   : > { %v3063_v8 = vadd.f32 %v3060_v20, %v2903_v27 }
0x1d40   : > { %9006 = vtanh.f32 %v3063_v8 }
0x1d4a   : > { %v9007_v26 = vpop.eup %9006 }
0x1d4b   : > { %7395 = vmatmul.mubr.msk.f32.vlgmr.msra.gmra.mrb[28].mxu1 %vm299_vm2, %v9007_v26 }
0x1d4c   : > { %8465 = vmatpush3.bf16.msra.mxu1 %v9635_v44  ;;  %7432 = vmatprep.mubr.msk.f32.mxu1 %vm9190_vm6, %v9191_v41 }
0x1d4d   : > { %8466 = vmatprep.subr.bf16.mxu1 %v9189_v39 }
0x1d50   : > { %8468 = vmatpush3.bf16.msra.mxu1 %v9641_v46 }
0x1d51   : > { %8469 = vmatprep.subr.bf16.mxu1 %v9189_v39 }
0x1d54   : > { %8471 = vmatpush3.bf16.msra.mxu1 %v9646_v63 }
0x1d55   : > { %8472 = vmatprep.subr.bf16.mxu1 %v9189_v39 }
0x1d58   : > { %8474 = vmatpush3.bf16.msra.mxu1 %v9652_v0 }
0x1d59   : > { %8487 = vmatprep.subr.bf16.mxu1 %v9189_v39 }
0x1e1e   : > { %v3134_v27 = vpop.f32.mrb[28].mxu1 }
0x1e1f   : > { %v3135_v30 = vadd.f32 %v3134_v27, %v2911_v36  ;;  %v7396_v21 = vpop.f32.mrb[29].mxu1 }
0x1e21   : > { %v3138_v31 = vmul.f32 %v3135_v30, %v9730_v7  ;;  %v3140_v23 = vmul.f32 %v3135_v30, %v9760_v24 }
0x1e23   : > { %v3139_v3 = vadd.f32 %v3138_v31, %v2987_v18  ;;  %v3141_v5 = vadd.f32 %v3140_v23, %v10054_v9  ;;  %v2665_v9 = vstv %s2664_s25  ;;  %s3335_s25 = ssub.f32 0.0, %s3334_s10 }
0x1e24   : > { %v2666_v6 = vmul.f32 1.442695, %v2665_v9 }
0x1e25   : > { %7414 = vmatmul.mubr.msk.f32.vlgmr.msra.gmra.mrb[30].mxu0 %vm299_vm2, %v3141_v5 }
0x1e26   : > { %8477 = vmatpush3.bf16.msra.mxu0 %v9593_v38  ;;  %7451 = vmatprep.mubr.msk.f32.mxu0 %vm9190_vm6, %v9191_v41  ;;  %9008 = vpow2.f32 %v2666_v6 }
0x1e27   : > { %8478 = vmatprep.subr.bf16.mxu0 %v9189_v39 }
0x1e2a   : > { %8480 = vmatpush3.bf16.msra.mxu0 %v9600_v40 }
0x1e2b   : > { %8481 = vmatprep.subr.bf16.mxu0 %v9189_v39 }
0x1e2e   : > { %8483 = vmatpush3.bf16.msra.mxu0 %v9610_v42 }
0x1e2f   : > { %8484 = vmatprep.subr.bf16.mxu0 %v9189_v39 }
0x1e30   : > { %v9009_v36 = vpop.eup %9008 }
0x1e31   : > { %8877 = vpush %v9009_v36 }
0x1e32   : > { %8486 = vmatpush3.bf16.msra.mxu0 %v9616_v43 }
0x1e33   : > { %8499 = vmatprep.subr.bf16.mxu0 %v9189_v39 }
0x1e62   : > { %s8878_s15 = spop %8877 }
0x1e63   : > { %s2669_s3 = smul.f32 %s8878_s15, %s9550_s17 }
0x1e64   : > { %s3336_s15 = smul.f32 500000.0, %s3335_s25 }
0x1e65   : > { %v2672_v19 = vstv %s2669_s3 }
0x1e66   : > { %v2673_v15 = vadd.f32 %v2672_v19, %v9555_v16 }
0x1e68   : > { %v3227_v20 = vrot.slane %v2673_v15, %v9658_v2 }
0x1ef8   : > { %v3211_v14 = vpop.f32.mrb[30].mxu0 }
0x1ef9   : > { %v3212_v17 = vadd.f32 %v3211_v14, %v9530_v28  ;;  %v7415_v13 = vpop.f32.mrb[31].mxu0 }
0x1efa   : > { %v3322_v13 = vstv %s3306_s16  ;;  %s10351_s16 = sadd.f32 %s3976_s26, %s9674_s1 }
0x1efb   : > { %v3221_v4 = vadd.f32 %v3219_v11, %v3212_v17 }
0x1efc   : > { %s3978_s18 = sadd.f32 %s10351_s16, %s9681_s23 }
0x1efd   : > { %9010 = vtanh.f32 %v3221_v4  ;;  %v3323_v4 = vmul.f32 %v3322_v13, %v9538_v33  ;;  %s3998_s0 = sadd.f32 %s10351_s16, %s9678_s2  ;;  %s4648_s16 = smul.f32 6.0, %s9678_s2 }
0x1efe   : > { %s3979_s27 = smul.f32 %s9543_s12, %s3978_s18 }
0x1eff   : > { %s3999_s21 = smul.f32 %s9543_s12, %s3998_s0 }
0x1f00   : > { %p3980_p1 = scmp.lt.f32.partialorder %s3979_s27, 0.0  ;;  %s3981_s28 = sceil.f32 %s3979_s27 }
0x1f01   : > { %s3982_s4 = sfloor.f32 %s3979_s27  ;;  %p4000_p2 = scmp.lt.f32.partialorder %s3999_s21, 0.0 }
0x1f02   : > { %s10756_s28 = smov (!%p3980_p1, %s3981_s28), %s3982_s4  ;;  %s4001_s5 = sceil.f32 %s3999_s21 }
0x1f03   : > { %s3984_s6 = smul.f32 %s9532_s8, %s10756_s28  ;;  %s4002_s22 = sfloor.f32 %s3999_s21 }
0x1f04   : > { %s10758_s5 = smov (!%p4000_p2, %s4001_s5), %s4002_s22 }
0x1f05   : > { %s3985_s29 = ssub.f32 %s3978_s18, %s3984_s6  ;;  %s4004_s24 = smul.f32 %s9532_s8, %s10758_s5 }
0x1f07   : > { %v9011_v18 = vpop.eup %9010  ;;  %s3986_s11 = smul.f32 %s3985_s29, %s3985_s29  ;;  %s4005_s10 = ssub.f32 %s3998_s0, %s4004_s24 }
0x1f08   : > { %7433 = vmatmul.mubr.msk.f32.vlgmr.msra.gmra.mrb[30].mxu1 %vm299_vm2, %v9011_v18  ;;  %v3575_v18 = vrot.slane %v3323_v4, %v9658_v2 }
0x1f09   : > { %8489 = vmatpush3.bf16.msra.mxu1 %v9635_v44  ;;  %7470 = vmatprep.mubr.msk.f32.mxu1 %vm9190_vm6, %v9191_v41  ;;  %s4006_s25 = smul.f32 %s4005_s10, %s4005_s10 }
0x1f0a   : > { %8490 = vmatprep.subr.bf16.mxu1 %v9189_v39 }
0x1f0d   : > { %8492 = vmatpush3.bf16.msra.mxu1 %v9641_v46 }
0x1f0e   : > { %8493 = vmatprep.subr.bf16.mxu1 %v9189_v39 }
0x1f11   : > { %8495 = vmatpush3.bf16.msra.mxu1 %v9646_v63 }
0x1f12   : > { %8496 = vmatprep.subr.bf16.mxu1 %v9189_v39 }
0x1f15   : > { %8498 = vmatpush3.bf16.msra.mxu1 %v9652_v0 }
0x1f16   : > { %8511 = vmatprep.subr.bf16.mxu1 %v9189_v39 }
0x1fdb   : > { %v3298_v25 = vpop.f32.mrb[30].mxu1 }
0x1fdc   : > { %v3299_v8 = vadd.f32 %v3298_v25, %v3227_v20  ;;  %v7434_v26 = vpop.f32.mrb[31].mxu1 }
0x1fde   : > { %v3302_v27 = vmul.f32 %v3299_v8, %v9726_v1 }
0x1fe0   : > { %v10182_v30 = vadd.f32 %v3302_v27, %v3139_v3 }
0x1fe2   : > { %7452 = vmatmul.mubr.msk.f32.vlgmr.msra.gmra.mrb[32].mxu0 %vm299_vm2, %v10182_v30 }
0x1fe3   : > { %8501 = vmatpush3.bf16.msra.mxu0 %v9593_v38  ;;  %7489 = vmatprep.mubr.msk.f32.mxu0 %vm9190_vm6, %v9191_v41 }
0x1fe4   : > { %8502 = vmatprep.subr.bf16.mxu0 %v9189_v39 }
0x1fe7   : > { %8504 = vmatpush3.bf16.msra.mxu0 %v9600_v40 }
0x1fe8   : > { %8505 = vmatprep.subr.bf16.mxu0 %v9189_v39 }
0x1feb   : > { %8507 = vmatpush3.bf16.msra.mxu0 %v9610_v42 }
0x1fec   : > { %8508 = vmatprep.subr.bf16.mxu0 %v9189_v39 }
0x1fef   : > { %8510 = vmatpush3.bf16.msra.mxu0 %v9616_v43 }
0x1ff0   : > { %8523 = vmatprep.subr.bf16.mxu0 %v9189_v39 }
0x20b5   : > { %v3415_v21 = vpop.f32.mrb[32].mxu0 }
0x20b6   : > { %v3416_v31 = vadd.f32 %v3415_v21, %v9530_v28  ;;  %v7453_v23 = vpop.f32.mrb[33].mxu0 }
0x20b8   : > { %v3419_v3 = vadd.f32 %v3416_v31, %v3219_v11  ;;  %v3317_v11 = vstv %s3316_s30  ;;  %s3987_s30 = ssub.f32 0.0, %s3986_s11 }
0x20b9   : > { %v3318_v14 = vmul.f32 1.442695, %v3317_v11 }
0x20ba   : > { %9012 = vtanh.f32 %v3419_v3 }
0x20bb   : > { %9014 = vpow2.f32 %v3318_v14 }
0x20c4   : > { %v9013_v5 = vpop.eup %9012 }
0x20c5   : > { %7471 = vmatmul.mubr.msk.f32.vlgmr.msra.gmra.mrb[32].mxu1 %vm299_vm2, %v9013_v5  ;;  %v9015_v17 = vpop.eup %9014 }
0x20c6   : > { %8513 = vmatpush3.bf16.msra.mxu1 %v9635_v44  ;;  %7508 = vmatprep.mubr.msk.f32.mxu1 %vm9190_vm6, %v9191_v41  ;;  %8879 = vpush %v9015_v17 }
0x20c7   : > { %8514 = vmatprep.subr.bf16.mxu1 %v9189_v39 }
0x20ca   : > { %8516 = vmatpush3.bf16.msra.mxu1 %v9641_v46 }
0x20cb   : > { %8517 = vmatprep.subr.bf16.mxu1 %v9189_v39 }
0x20ce   : > { %8519 = vmatpush3.bf16.msra.mxu1 %v9646_v63 }
0x20cf   : > { %8520 = vmatprep.subr.bf16.mxu1 %v9189_v39 }
0x20d2   : > { %8522 = vmatpush3.bf16.msra.mxu1 %v9652_v0 }
0x20d3   : > { %8535 = vmatprep.subr.bf16.mxu1 %v9189_v39 }
0x20f7   : > { %s8880_s20 = spop %8879 }
0x20f8   : > { %s3321_s7 = smul.f32 %s8880_s20, %s9550_s17 }
0x20f9   : > { %s3988_s20 = smul.f32 500000.0, %s3987_s30 }
0x20fa   : > { %v3324_v26 = vstv %s3321_s7 }
0x20fb   : > { %v3325_v27 = vadd.f32 %v3324_v26, %v9555_v16 }
0x20fd   : > { %v3583_v21 = vrot.slane %v3325_v27, %v9658_v2 }
0x2198   : > { %v3490_v9 = vpop.f32.mrb[32].mxu1 }
0x2199   : > { %v3491_v6 = vadd.f32 %v3490_v9, %v3227_v20  ;;  %v7472_v36 = vpop.f32.mrb[33].mxu1 }
0x219b   : > { %v3496_v10 = vmul.f32 %v3491_v6, %v9686_v12  ;;  %v3494_v31 = vmul.f32 %v3491_v6, %v9726_v1 }
0x219d   : > { %v3497_v35 = vadd.f32 %v3496_v10, %v10182_v30  ;;  %v3495_v9 = vadd.f32 %v3494_v31, %v10182_v30  ;;  %v3342_v31 = vstv %s3326_s13 }
0x219f   : > { %7490 = vmatmul.mubr.msk.f32.vlgmr.msra.gmra.mrb[34].mxu0 %vm299_vm2, %v3497_v35 }
0x21a0   : > { %8525 = vmatpush3.bf16.msra.mxu0 %v9593_v38  ;;  %7527 = vmatprep.mubr.msk.f32.mxu0 %vm9190_vm6, %v9191_v41 }
0x21a1   : > { %8526 = vmatprep.subr.bf16.mxu0 %v9189_v39 }
0x21a4   : > { %8528 = vmatpush3.bf16.msra.mxu0 %v9600_v40 }
0x21a5   : > { %8529 = vmatprep.subr.bf16.mxu0 %v9189_v39 }
0x21a8   : > { %8531 = vmatpush3.bf16.msra.mxu0 %v9610_v42 }
0x21a9   : > { %8532 = vmatprep.subr.bf16.mxu0 %v9189_v39 }
0x21ac   : > { %8534 = vmatpush3.bf16.msra.mxu0 %v9616_v43 }
0x21ad   : > { %8547 = vmatprep.subr.bf16.mxu0 %v9189_v39 }
0x2272   : > { %v3567_v19 = vpop.f32.mrb[34].mxu0 }
0x2273   : > { %v3568_v15 = vadd.f32 %v3567_v19, %v9530_v28  ;;  %v7491_v20 = vpop.f32.mrb[35].mxu0 }
0x2275   : > { %v3577_v25 = vadd.f32 %v3575_v18, %v3568_v15 }
0x2277   : > { %9016 = vtanh.f32 %v3577_v25 }
0x2281   : > { %v9017_v8 = vpop.eup %9016 }
0x2282   : > { %7509 = vmatmul.mubr.msk.f32.vlgmr.msra.gmra.mrb[34].mxu1 %vm299_vm2, %v9017_v8 }
0x2283   : > { %8537 = vmatpush3.bf16.msra.mxu1 %v9635_v44  ;;  %7546 = vmatprep.mubr.msk.f32.mxu1 %vm9190_vm6, %v9191_v41 }
0x2284   : > { %8538 = vmatprep.subr.bf16.mxu1 %v9189_v39 }
0x2287   : > { %8540 = vmatpush3.bf16.msra.mxu1 %v9641_v46 }
0x2288   : > { %8541 = vmatprep.subr.bf16.mxu1 %v9189_v39 }
0x228b   : > { %8543 = vmatpush3.bf16.msra.mxu1 %v9646_v63 }
0x228c   : > { %8544 = vmatprep.subr.bf16.mxu1 %v9189_v39 }
0x228f   : > { %8546 = vmatpush3.bf16.msra.mxu1 %v9652_v0 }
0x2290   : > { %8559 = vmatprep.subr.bf16.mxu1 %v9189_v39 }
0x2355   : > { %v3654_v23 = vpop.f32.mrb[34].mxu1 }
0x2356   : > { %v3655_v3 = vadd.f32 %v3654_v23, %v3583_v21  ;;  %v7510_v5 = vpop.f32.mrb[35].mxu1  ;;  %v3343_v23 = vmul.f32 %v3342_v31, %v9538_v33 }
0x2358   : > { %v3658_v36 = vmul.f32 %v3655_v3, %v9730_v7  ;;  %v3660_v10 = vmul.f32 %v3655_v3, %v9686_v12  ;;  %v3891_v3 = vrot.slane %v3343_v23, %v9658_v2 }
0x235a   : > { %v3659_v35 = vadd.f32 %v3658_v36, %v3495_v9  ;;  %v3661_v11 = vadd.f32 %v3660_v10, %v10182_v30 }
0x235c   : > { %7528 = vmatmul.mubr.msk.f32.vlgmr.msra.gmra.mrb[36].mxu0 %vm299_vm2, %v3661_v11 }
0x235d   : > { %8549 = vmatpush3.bf16.msra.mxu0 %v9593_v38  ;;  %7565 = vmatprep.mubr.msk.f32.mxu0 %vm9190_vm6, %v9191_v41 }
0x235e   : > { %8550 = vmatprep.subr.bf16.mxu0 %v9189_v39 }
0x2361   : > { %8552 = vmatpush3.bf16.msra.mxu0 %v9600_v40 }
0x2362   : > { %8553 = vmatprep.subr.bf16.mxu0 %v9189_v39 }
0x2365   : > { %8555 = vmatpush3.bf16.msra.mxu0 %v9610_v42 }
0x2366   : > { %8556 = vmatprep.subr.bf16.mxu0 %v9189_v39 }
0x2369   : > { %8558 = vmatpush3.bf16.msra.mxu0 %v9616_v43 }
0x236a   : > { %8571 = vmatprep.subr.bf16.mxu0 %v9189_v39 }
0x242f   : > { %v3731_v6 = vpop.f32.mrb[36].mxu0 }
0x2430   : > { %v3732_v14 = vadd.f32 %v3731_v6, %v9530_v28  ;;  %v7529_v17 = vpop.f32.mrb[37].mxu0 }
0x2432   : > { %v3735_v13 = vadd.f32 %v3732_v14, %v3575_v18 }
0x2434   : > { %9018 = vtanh.f32 %v3735_v13 }
0x243e   : > { %v9019_v4 = vpop.eup %9018 }
0x243f   : > { %7547 = vmatmul.mubr.msk.f32.vlgmr.msra.gmra.mrb[36].mxu1 %vm299_vm2, %v9019_v4 }
0x2440   : > { %8561 = vmatpush3.bf16.msra.mxu1 %v9635_v44  ;;  %7584 = vmatprep.mubr.msk.f32.mxu1 %vm9190_vm6, %v9191_v41 }
0x2441   : > { %8562 = vmatprep.subr.bf16.mxu1 %v9189_v39 }
0x2444   : > { %8564 = vmatpush3.bf16.msra.mxu1 %v9641_v46 }
0x2445   : > { %8565 = vmatprep.subr.bf16.mxu1 %v9189_v39 }
0x2448   : > { %8567 = vmatpush3.bf16.msra.mxu1 %v9646_v63 }
0x2449   : > { %8568 = vmatprep.subr.bf16.mxu1 %v9189_v39 }
0x244c   : > { %8570 = vmatpush3.bf16.msra.mxu1 %v9652_v0 }
0x244d   : > { %8583 = vmatprep.subr.bf16.mxu1 %v9189_v39 }
0x2512   : > { %v3806_v18 = vpop.f32.mrb[36].mxu1 }
0x2513   : > { %v3807_v19 = vadd.f32 %v3806_v18, %v3583_v21  ;;  %v7548_v15 = vpop.f32.mrb[37].mxu1 }
0x2515   : > { %v3810_v20 = vmul.f32 %v3807_v19, %v9730_v7  ;;  %v3812_v25 = vmul.f32 %v3807_v19, %v9760_v24 }
0x2517   : > { %v3811_v8 = vadd.f32 %v3810_v20, %v3659_v35  ;;  %v3813_v26 = vadd.f32 %v3812_v25, %v10182_v30  ;;  %v3337_v30 = vstv %s3336_s15  ;;  %s4007_s15 = ssub.f32 0.0, %s4006_s25 }
0x2518   : > { %v3338_v27 = vmul.f32 1.442695, %v3337_v30 }
0x2519   : > { %7566 = vmatmul.mubr.msk.f32.vlgmr.msra.gmra.mrb[38].mxu0 %vm299_vm2, %v3813_v26 }
0x251a   : > { %8573 = vmatpush3.bf16.msra.mxu0 %v9593_v38  ;;  %7603 = vmatprep.mubr.msk.f32.mxu0 %vm9190_vm6, %v9191_v41  ;;  %9020 = vpow2.f32 %v3338_v27 }
0x251b   : > { %8574 = vmatprep.subr.bf16.mxu0 %v9189_v39 }
0x251e   : > { %8576 = vmatpush3.bf16.msra.mxu0 %v9600_v40 }
0x251f   : > { %8577 = vmatprep.subr.bf16.mxu0 %v9189_v39 }
0x2522   : > { %8579 = vmatpush3.bf16.msra.mxu0 %v9610_v42 }
0x2523   : > { %8580 = vmatprep.subr.bf16.mxu0 %v9189_v39 }
0x2524   : > { %v9021_v21 = vpop.eup %9020 }
0x2525   : > { %8881 = vpush %v9021_v21 }
0x2526   : > { %8582 = vmatpush3.bf16.msra.mxu0 %v9616_v43 }
0x2527   : > { %8595 = vmatprep.subr.bf16.mxu0 %v9189_v39 }
0x2556   : > { %s8882_s3 = spop %8881 }
0x2557   : > { %s3341_s9 = smul.f32 %s8882_s3, %s9550_s17 }
0x2558   : > { %s4008_s3 = smul.f32 500000.0, %s4007_s15 }
0x2559   : > { %v3344_v11 = vstv %s3341_s9 }
0x255a   : > { %v3345_v6 = vadd.f32 %v3344_v11, %v9555_v16 }
0x255c   : > { %v3899_v14 = vrot.slane %v3345_v6, %v9658_v2 }
0x25ec   : > { %v3883_v5 = vpop.f32.mrb[38].mxu0 }
0x25ed   : > { %v3884_v9 = vadd.f32 %v3883_v5, %v9530_v28  ;;  %v7567_v36 = vpop.f32.mrb[39].mxu0 }
0x25ee   : > { %v3994_v36 = vstv %s3978_s18  ;;  %s10479_s18 = sadd.f32 %s4648_s16, %s9674_s1 }
0x25ef   : > { %v3893_v10 = vadd.f32 %v3891_v3, %v3884_v9 }
0x25f0   : > { %s4650_s27 = sadd.f32 %s10479_s18, %s9681_s23 }
0x25f1   : > { %9022 = vtanh.f32 %v3893_v10  ;;  %v3995_v10 = vmul.f32 %v3994_v36, %v9538_v33  ;;  %s4670_s21 = sadd.f32 %s10479_s18, %s9678_s2  ;;  %s5320_s18 = smul.f32 7.0, %s9678_s2 }
0x25f2   : > { %s4651_s28 = smul.f32 %s9543_s12, %s4650_s27 }
0x25f3   : > { %s4671_s5 = smul.f32 %s9543_s12, %s4670_s21 }
0x25f4   : > { %p4652_p3 = scmp.lt.f32.partialorder %s4651_s28, 0.0  ;;  %s4653_s4 = sceil.f32 %s4651_s28 }
0x25f5   : > { %s4654_s6 = sfloor.f32 %s4651_s28  ;;  %p4672_p4 = scmp.lt.f32.partialorder %s4671_s5, 0.0 }
0x25f6   : > { %s10760_s4 = smov (!%p4652_p3, %s4653_s4), %s4654_s6  ;;  %s4673_s22 = sceil.f32 %s4671_s5 }
0x25f7   : > { %s4656_s29 = smul.f32 %s9532_s8, %s10760_s4  ;;  %s4674_s24 = sfloor.f32 %s4671_s5 }
0x25f8   : > { %s10762_s22 = smov (!%p4672_p4, %s4673_s22), %s4674_s24 }
0x25f9   : > { %s4657_s11 = ssub.f32 %s4650_s27, %s4656_s29  ;;  %s4676_s10 = smul.f32 %s9532_s8, %s10762_s22 }
0x25fb   : > { %v9023_v35 = vpop.eup %9022  ;;  %s4658_s30 = smul.f32 %s4657_s11, %s4657_s11  ;;  %s4677_s25 = ssub.f32 %s4670_s21, %s4676_s10 }
0x25fc   : > { %7585 = vmatmul.mubr.msk.f32.vlgmr.msra.gmra.mrb[38].mxu1 %vm299_vm2, %v9023_v35  ;;  %v4247_v35 = vrot.slane %v3995_v10, %v9658_v2 }
0x25fd   : > { %8585 = vmatpush3.bf16.msra.mxu1 %v9635_v44  ;;  %7622 = vmatprep.mubr.msk.f32.mxu1 %vm9190_vm6, %v9191_v41  ;;  %s4678_s15 = smul.f32 %s4677_s25, %s4677_s25 }
0x25fe   : > { %8586 = vmatprep.subr.bf16.mxu1 %v9189_v39 }
0x2601   : > { %8588 = vmatpush3.bf16.msra.mxu1 %v9641_v46 }
0x2602   : > { %8589 = vmatprep.subr.bf16.mxu1 %v9189_v39 }
0x2605   : > { %8591 = vmatpush3.bf16.msra.mxu1 %v9646_v63 }
0x2606   : > { %8592 = vmatprep.subr.bf16.mxu1 %v9189_v39 }
0x2609   : > { %8594 = vmatpush3.bf16.msra.mxu1 %v9652_v0 }
0x260a   : > { %8607 = vmatprep.subr.bf16.mxu1 %v9189_v39 }
0x26cf   : > { %v3970_v17 = vpop.f32.mrb[38].mxu1 }
0x26d0   : > { %v3971_v13 = vadd.f32 %v3970_v17, %v3899_v14  ;;  %v7586_v4 = vpop.f32.mrb[39].mxu1 }
0x26d2   : > { %v3974_v18 = vmul.f32 %v3971_v13, %v9726_v1 }
0x26d4   : > { %v10310_v19 = vadd.f32 %v3974_v18, %v3811_v8 }
0x26d6   : > { %7604 = vmatmul.mubr.msk.f32.vlgmr.msra.gmra.mrb[40].mxu0 %vm299_vm2, %v10310_v19 }
0x26d7   : > { %8597 = vmatpush3.bf16.msra.mxu0 %v9593_v38  ;;  %7641 = vmatprep.mubr.msk.f32.mxu0 %vm9190_vm6, %v9191_v41 }
0x26d8   : > { %8598 = vmatprep.subr.bf16.mxu0 %v9189_v39 }
0x26db   : > { %8600 = vmatpush3.bf16.msra.mxu0 %v9600_v40 }
0x26dc   : > { %8601 = vmatprep.subr.bf16.mxu0 %v9189_v39 }
0x26df   : > { %8603 = vmatpush3.bf16.msra.mxu0 %v9610_v42 }
0x26e0   : > { %8604 = vmatprep.subr.bf16.mxu0 %v9189_v39 }
0x26e3   : > { %8606 = vmatpush3.bf16.msra.mxu0 %v9616_v43 }
0x26e4   : > { %8619 = vmatprep.subr.bf16.mxu0 %v9189_v39 }
0x27a9   : > { %v4087_v15 = vpop.f32.mrb[40].mxu0 }
0x27aa   : > { %v4088_v20 = vadd.f32 %v4087_v15, %v9530_v28  ;;  %v7605_v25 = vpop.f32.mrb[41].mxu0 }
0x27ac   : > { %v4091_v8 = vadd.f32 %v4088_v20, %v3891_v3  ;;  %v3989_v3 = vstv %s3988_s20  ;;  %s4659_s20 = ssub.f32 0.0, %s4658_s30 }
0x27ad   : > { %v3990_v5 = vmul.f32 1.442695, %v3989_v3 }
0x27ae   : > { %9024 = vtanh.f32 %v4091_v8 }
0x27af   : > { %9026 = vpow2.f32 %v3990_v5 }
0x27b8   : > { %v9025_v26 = vpop.eup %9024 }
0x27b9   : > { %7623 = vmatmul.mubr.msk.f32.vlgmr.msra.gmra.mrb[40].mxu1 %vm299_vm2, %v9025_v26  ;;  %v9027_v9 = vpop.eup %9026 }
0x27ba   : > { %8609 = vmatpush3.bf16.msra.mxu1 %v9635_v44  ;;  %7660 = vmatprep.mubr.msk.f32.mxu1 %vm9190_vm6, %v9191_v41  ;;  %8883 = vpush %v9027_v9 }
0x27bb   : > { %8610 = vmatprep.subr.bf16.mxu1 %v9189_v39 }
0x27be   : > { %8612 = vmatpush3.bf16.msra.mxu1 %v9641_v46 }
0x27bf   : > { %8613 = vmatprep.subr.bf16.mxu1 %v9189_v39 }
0x27c2   : > { %8615 = vmatpush3.bf16.msra.mxu1 %v9646_v63 }
0x27c3   : > { %8616 = vmatprep.subr.bf16.mxu1 %v9189_v39 }
0x27c6   : > { %8618 = vmatpush3.bf16.msra.mxu1 %v9652_v0 }
0x27c7   : > { %8631 = vmatprep.subr.bf16.mxu1 %v9189_v39 }
0x27eb   : > { %s8884_s7 = spop %8883 }
0x27ec   : > { %s3993_s13 = smul.f32 %s8884_s7, %s9550_s17 }
0x27ed   : > { %s4660_s7 = smul.f32 500000.0, %s4659_s20 }
0x27ee   : > { %v3996_v4 = vstv %s3993_s13 }
0x27ef   : > { %v3997_v18 = vadd.f32 %v3996_v4, %v9555_v16 }
0x27f1   : > { %v4255_v15 = vrot.slane %v3997_v18, %v9658_v2 }
0x288c   : > { %v4162_v30 = vpop.f32.mrb[40].mxu1 }
0x288d   : > { %v4163_v27 = vadd.f32 %v4162_v30, %v3899_v14  ;;  %v7624_v21 = vpop.f32.mrb[41].mxu1 }
0x288f   : > { %v4168_v31 = vmul.f32 %v4163_v27, %v9686_v12  ;;  %v4166_v20 = vmul.f32 %v4163_v27, %v9726_v1 }
0x2891   : > { %v4169_v23 = vadd.f32 %v4168_v31, %v10310_v19  ;;  %v4167_v30 = vadd.f32 %v4166_v20, %v10310_v19  ;;  %v4014_v20 = vstv %s3998_s0 }
0x2893   : > { %7642 = vmatmul.mubr.msk.f32.vlgmr.msra.gmra.mrb[42].mxu0 %vm299_vm2, %v4169_v23 }
0x2894   : > { %8621 = vmatpush3.bf16.msra.mxu0 %v9593_v38  ;;  %7679 = vmatprep.mubr.msk.f32.mxu0 %vm9190_vm6, %v9191_v41 }
0x2895   : > { %8622 = vmatprep.subr.bf16.mxu0 %v9189_v39 }
0x2898   : > { %8624 = vmatpush3.bf16.msra.mxu0 %v9600_v40 }
0x2899   : > { %8625 = vmatprep.subr.bf16.mxu0 %v9189_v39 }
0x289c   : > { %8627 = vmatpush3.bf16.msra.mxu0 %v9610_v42 }
0x289d   : > { %8628 = vmatprep.subr.bf16.mxu0 %v9189_v39 }
0x28a0   : > { %8630 = vmatpush3.bf16.msra.mxu0 %v9616_v43 }
0x28a1   : > { %8643 = vmatprep.subr.bf16.mxu0 %v9189_v39 }
0x2966   : > { %v4239_v11 = vpop.f32.mrb[42].mxu0 }
0x2967   : > { %v4240_v6 = vadd.f32 %v4239_v11, %v9530_v28  ;;  %v7643_v14 = vpop.f32.mrb[43].mxu0 }
0x2969   : > { %v4249_v17 = vadd.f32 %v4247_v35, %v4240_v6 }
0x296b   : > { %9028 = vtanh.f32 %v4249_v17 }
0x2975   : > { %v9029_v13 = vpop.eup %9028 }
0x2976   : > { %7661 = vmatmul.mubr.msk.f32.vlgmr.msra.gmra.mrb[42].mxu1 %vm299_vm2, %v9029_v13 }
0x2977   : > { %8633 = vmatpush3.bf16.msra.mxu1 %v9635_v44  ;;  %7698 = vmatprep.mubr.msk.f32.mxu1 %vm9190_vm6, %v9191_v41 }
0x2978   : > { %8634 = vmatprep.subr.bf16.mxu1 %v9189_v39 }
0x297b   : > { %8636 = vmatpush3.bf16.msra.mxu1 %v9641_v46 }
0x297c   : > { %8637 = vmatprep.subr.bf16.mxu1 %v9189_v39 }
0x297f   : > { %8639 = vmatpush3.bf16.msra.mxu1 %v9646_v63 }
0x2980   : > { %8640 = vmatprep.subr.bf16.mxu1 %v9189_v39 }
0x2983   : > { %8642 = vmatpush3.bf16.msra.mxu1 %v9652_v0 }
0x2984   : > { %8655 = vmatprep.subr.bf16.mxu1 %v9189_v39 }
0x2a49   : > { %v4326_v25 = vpop.f32.mrb[42].mxu1 }
0x2a4a   : > { %v4327_v8 = vadd.f32 %v4326_v25, %v4255_v15  ;;  %v7662_v26 = vpop.f32.mrb[43].mxu1  ;;  %v4015_v25 = vmul.f32 %v4014_v20, %v9538_v33 }
0x2a4c   : > { %v4330_v21 = vmul.f32 %v4327_v8, %v9730_v7  ;;  %v4332_v31 = vmul.f32 %v4327_v8, %v9686_v12  ;;  %v4563_v8 = vrot.slane %v4015_v25, %v9658_v2 }
0x2a4e   : > { %v4331_v23 = vadd.f32 %v4330_v21, %v4167_v30  ;;  %v4333_v3 = vadd.f32 %v4332_v31, %v10310_v19 }
0x2a50   : > { %7680 = vmatmul.mubr.msk.f32.vlgmr.msra.gmra.mrb[44].mxu0 %vm299_vm2, %v4333_v3 }
0x2a51   : > { %8645 = vmatpush3.bf16.msra.mxu0 %v9593_v38  ;;  %7717 = vmatprep.mubr.msk.f32.mxu0 %vm9190_vm6, %v9191_v41 }
0x2a52   : > { %8646 = vmatprep.subr.bf16.mxu0 %v9189_v39 }
0x2a55   : > { %8648 = vmatpush3.bf16.msra.mxu0 %v9600_v40 }
0x2a56   : > { %8649 = vmatprep.subr.bf16.mxu0 %v9189_v39 }
0x2a59   : > { %8651 = vmatpush3.bf16.msra.mxu0 %v9610_v42 }
0x2a5a   : > { %8652 = vmatprep.subr.bf16.mxu0 %v9189_v39 }
0x2a5d   : > { %8654 = vmatpush3.bf16.msra.mxu0 %v9616_v43 }
0x2a5e   : > { %8667 = vmatprep.subr.bf16.mxu0 %v9189_v39 }
0x2b23   : > { %v4403_v27 = vpop.f32.mrb[44].mxu0 }
0x2b24   : > { %v4404_v5 = vadd.f32 %v4403_v27, %v9530_v28  ;;  %v7681_v9 = vpop.f32.mrb[45].mxu0 }
0x2b26   : > { %v4407_v36 = vadd.f32 %v4404_v5, %v4247_v35 }
0x2b28   : > { %9030 = vtanh.f32 %v4407_v36 }
0x2b32   : > { %v9031_v10 = vpop.eup %9030 }
0x2b33   : > { %7699 = vmatmul.mubr.msk.f32.vlgmr.msra.gmra.mrb[44].mxu1 %vm299_vm2, %v9031_v10 }
0x2b34   : > { %8657 = vmatpush3.bf16.msra.mxu1 %v9635_v44  ;;  %7736 = vmatprep.mubr.msk.f32.mxu1 %vm9190_vm6, %v9191_v41 }
0x2b35   : > { %8658 = vmatprep.subr.bf16.mxu1 %v9189_v39 }
0x2b38   : > { %8660 = vmatpush3.bf16.msra.mxu1 %v9641_v46 }
0x2b39   : > { %8661 = vmatprep.subr.bf16.mxu1 %v9189_v39 }
0x2b3c   : > { %8663 = vmatpush3.bf16.msra.mxu1 %v9646_v63 }
0x2b3d   : > { %8664 = vmatprep.subr.bf16.mxu1 %v9189_v39 }
0x2b40   : > { %8666 = vmatpush3.bf16.msra.mxu1 %v9652_v0 }
0x2b41   : > { %8679 = vmatprep.subr.bf16.mxu1 %v9189_v39 }
0x2c06   : > { %v4478_v35 = vpop.f32.mrb[44].mxu1 }
0x2c07   : > { %v4479_v11 = vadd.f32 %v4478_v35, %v4255_v15  ;;  %v7700_v6 = vpop.f32.mrb[45].mxu1 }
0x2c09   : > { %v4482_v14 = vmul.f32 %v4479_v11, %v9730_v7  ;;  %v4484_v17 = vmul.f32 %v4479_v11, %v9760_v24 }
0x2c0b   : > { %v4483_v13 = vadd.f32 %v4482_v14, %v4331_v23  ;;  %v4485_v4 = vadd.f32 %v4484_v17, %v10310_v19  ;;  %v4009_v19 = vstv %s4008_s3  ;;  %s4679_s3 = ssub.f32 0.0, %s4678_s15 }
0x2c0c   : > { %v4010_v18 = vmul.f32 1.442695, %v4009_v19 }
0x2c0d   : > { %7718 = vmatmul.mubr.msk.f32.vlgmr.msra.gmra.mrb[46].mxu0 %vm299_vm2, %v4485_v4 }
0x2c0e   : > { %8669 = vmatpush3.bf16.msra.mxu0 %v9593_v38  ;;  %7755 = vmatprep.mubr.msk.f32.mxu0 %vm9190_vm6, %v9191_v41  ;;  %9032 = vpow2.f32 %v4010_v18 }
0x2c0f   : > { %8670 = vmatprep.subr.bf16.mxu0 %v9189_v39 }
0x2c12   : > { %8672 = vmatpush3.bf16.msra.mxu0 %v9600_v40 }
0x2c13   : > { %8673 = vmatprep.subr.bf16.mxu0 %v9189_v39 }
0x2c16   : > { %8675 = vmatpush3.bf16.msra.mxu0 %v9610_v42 }
0x2c17   : > { %8676 = vmatprep.subr.bf16.mxu0 %v9189_v39 }
0x2c18   : > { %v9033_v15 = vpop.eup %9032 }
0x2c19   : > { %8885 = vpush %v9033_v15 }
0x2c1a   : > { %8678 = vmatpush3.bf16.msra.mxu0 %v9616_v43 }
0x2c1b   : > { %8691 = vmatprep.subr.bf16.mxu0 %v9189_v39 }
0x2c4a   : > { %s8886_s9 = spop %8885 }
0x2c4b   : > { %s4013_s26 = smul.f32 %s8886_s9, %s9550_s17 }
0x2c4c   : > { %s4680_s9 = smul.f32 500000.0, %s4679_s3 }
0x2c4d   : > { %v4016_v3 = vstv %s4013_s26 }
0x2c4e   : > { %v4017_v27 = vadd.f32 %v4016_v3, %v9555_v16 }
0x2c50   : > { %v4571_v5 = vrot.slane %v4017_v27, %v9658_v2 }
0x2ce0   : > { %v4555_v26 = vpop.f32.mrb[46].mxu0 }
0x2ce1   : > { %v4556_v30 = vadd.f32 %v4555_v26, %v9530_v28  ;;  %v7719_v21 = vpop.f32.mrb[47].mxu0 }
0x2ce2   : > { %v4666_v21 = vstv %s4650_s27  ;;  %s10607_s27 = sadd.f32 %s5320_s18, %s9674_s1 }
0x2ce3   : > { %v4565_v31 = vadd.f32 %v4563_v8, %v4556_v30 }
0x2ce4   : > { %s5322_s28 = sadd.f32 %s10607_s27, %s9681_s23 }
0x2ce5   : > { %9034 = vtanh.f32 %v4565_v31  ;;  %v4667_v31 = vmul.f32 %v4666_v21, %v9538_v33 }
0x2ce6   : > { %s5323_s4 = smul.f32 %s9543_s12, %s5322_s28 }
0x2ce8   : > { %p5324_p5 = scmp.lt.f32.partialorder %s5323_s4, 0.0  ;;  %s5325_s6 = sceil.f32 %s5323_s4 }
0x2ce9   : > { %s5326_s29 = sfloor.f32 %s5323_s4 }
0x2cea   : > { %s10764_s6 = smov (!%p5324_p5, %s5325_s6), %s5326_s29 }
0x2ceb   : > { %s5328_s11 = smul.f32 %s9532_s8, %s10764_s6 }
0x2ced   : > { %s5329_s30 = ssub.f32 %s5322_s28, %s5328_s11 }
0x2cef   : > { %v9035_v23 = vpop.eup %9034  ;;  %s5330_s20 = smul.f32 %s5329_s30, %s5329_s30 }
0x2cf0   : > { %7737 = vmatmul.mubr.msk.f32.vlgmr.msra.gmra.mrb[46].mxu1 %vm299_vm2, %v9035_v23  ;;  %v4919_v23 = vrot.slane %v4667_v31, %v9658_v2 }
0x2cf1   : > { %8681 = vmatpush3.bf16.msra.mxu1 %v9635_v44  ;;  %7774 = vmatprep.mubr.msk.f32.mxu1 %vm9190_vm6, %v9191_v41 }
0x2cf2   : > { %8682 = vmatprep.subr.bf16.mxu1 %v9189_v39 }
0x2cf5   : > { %8684 = vmatpush3.bf16.msra.mxu1 %v9641_v46 }
0x2cf6   : > { %8685 = vmatprep.subr.bf16.mxu1 %v9189_v39 }
0x2cf9   : > { %8687 = vmatpush3.bf16.msra.mxu1 %v9646_v63 }
0x2cfa   : > { %8688 = vmatprep.subr.bf16.mxu1 %v9189_v39 }
0x2cfd   : > { %8690 = vmatpush3.bf16.msra.mxu1 %v9652_v0 }
0x2cfe   : > { %8703 = vmatprep.subr.bf16.mxu1 %v9189_v39 }
0x2dc3   : > { %v4642_v9 = vpop.f32.mrb[46].mxu1 }
0x2dc4   : > { %v4643_v36 = vadd.f32 %v4642_v9, %v4571_v5  ;;  %v7738_v10 = vpop.f32.mrb[47].mxu1 }
0x2dc6   : > { %v4646_v35 = vmul.f32 %v4643_v36, %v9726_v1 }
0x2dc8   : > { %v10438_v11 = vadd.f32 %v4646_v35, %v4483_v13 }
0x2dca   : > { %7756 = vmatmul.mubr.msk.f32.vlgmr.msra.gmra.mrb[48].mxu0 %vm299_vm2, %v10438_v11 }
0x2dcb   : > { %8693 = vmatpush3.bf16.msra.mxu0 %v9593_v38  ;;  %7793 = vmatprep.mubr.msk.f32.mxu0 %vm9190_vm6, %v9191_v41 }
0x2dcc   : > { %8694 = vmatprep.subr.bf16.mxu0 %v9189_v39 }
0x2dcf   : > { %8696 = vmatpush3.bf16.msra.mxu0 %v9600_v40 }
0x2dd0   : > { %8697 = vmatprep.subr.bf16.mxu0 %v9189_v39 }
0x2dd3   : > { %8699 = vmatpush3.bf16.msra.mxu0 %v9610_v42 }
0x2dd4   : > { %8700 = vmatprep.subr.bf16.mxu0 %v9189_v39 }
0x2dd7   : > { %8702 = vmatpush3.bf16.msra.mxu0 %v9616_v43 }
0x2dd8   : > { %8715 = vmatprep.subr.bf16.mxu0 %v9189_v39 }
0x2e9d   : > { %v4759_v6 = vpop.f32.mrb[48].mxu0 }
0x2e9e   : > { %v4760_v14 = vadd.f32 %v4759_v6, %v9530_v28  ;;  %v7757_v17 = vpop.f32.mrb[49].mxu0 }
0x2ea0   : > { %v4763_v13 = vadd.f32 %v4760_v14, %v4563_v8  ;;  %v4661_v8 = vstv %s4660_s7  ;;  %s5331_s7 = ssub.f32 0.0, %s5330_s20 }
0x2ea1   : > { %v4662_v26 = vmul.f32 1.442695, %v4661_v8 }
0x2ea2   : > { %9036 = vtanh.f32 %v4763_v13 }
0x2ea3   : > { %9038 = vpow2.f32 %v4662_v26 }
0x2eac   : > { %v9037_v4 = vpop.eup %9036 }
0x2ead   : > { %7775 = vmatmul.mubr.msk.f32.vlgmr.msra.gmra.mrb[48].mxu1 %vm299_vm2, %v9037_v4  ;;  %v9039_v30 = vpop.eup %9038 }
0x2eae   : > { %8705 = vmatpush3.bf16.msra.mxu1 %v9635_v44  ;;  %7812 = vmatprep.mubr.msk.f32.mxu1 %vm9190_vm6, %v9191_v41  ;;  %8887 = vpush %v9039_v30 }
0x2eaf   : > { %8706 = vmatprep.subr.bf16.mxu1 %v9189_v39 }
0x2eb2   : > { %8708 = vmatpush3.bf16.msra.mxu1 %v9641_v46 }
0x2eb3   : > { %8709 = vmatprep.subr.bf16.mxu1 %v9189_v39 }
0x2eb6   : > { %8711 = vmatpush3.bf16.msra.mxu1 %v9646_v63 }
0x2eb7   : > { %8712 = vmatprep.subr.bf16.mxu1 %v9189_v39 }
0x2eba   : > { %8714 = vmatpush3.bf16.msra.mxu1 %v9652_v0 }
0x2ebb   : > { %8727 = vmatprep.subr.bf16.mxu1 %v9189_v39 }
0x2edf   : > { %s8888_s13 = spop %8887 }
0x2ee0   : > { %s4665_s0 = smul.f32 %s8888_s13, %s9550_s17 }
0x2ee1   : > { %s5332_s13 = smul.f32 500000.0, %s5331_s7 }
0x2ee2   : > { %v4668_v10 = vstv %s4665_s0  ;;  %s5342_s0 = sadd.f32 %s10607_s27, %s9678_s2 }
0x2ee3   : > { %v4669_v35 = vadd.f32 %v4668_v10, %v9555_v16 }
0x2ee5   : > { %v4927_v6 = vrot.slane %v4669_v35, %v9658_v2 }
0x2f80   : > { %v4834_v19 = vpop.f32.mrb[48].mxu1 }
0x2f81   : > { %v4835_v18 = vadd.f32 %v4834_v19, %v4571_v5  ;;  %v7776_v15 = vpop.f32.mrb[49].mxu1 }
0x2f83   : > { %v4840_v20 = vmul.f32 %v4835_v18, %v9686_v12  ;;  %v4838_v14 = vmul.f32 %v4835_v18, %v9726_v1 }
0x2f85   : > { %v4841_v25 = vadd.f32 %v4840_v20, %v10438_v11  ;;  %v4839_v19 = vadd.f32 %v4838_v14, %v10438_v11  ;;  %v4686_v14 = vstv %s4670_s21  ;;  %s5343_s21 = smul.f32 %s9543_s12, %s5342_s0 }
0x2f87   : > { %7794 = vmatmul.mubr.msk.f32.vlgmr.msra.gmra.mrb[50].mxu0 %vm299_vm2, %v4841_v25  ;;  %p5344_p6 = scmp.lt.f32.partialorder %s5343_s21, 0.0  ;;  %s5345_s5 = sceil.f32 %s5343_s21 }
0x2f88   : > { %8717 = vmatpush3.bf16.msra.mxu0 %v9593_v38  ;;  %7831 = vmatprep.mubr.msk.f32.mxu0 %vm9190_vm6, %v9191_v41  ;;  %s5346_s22 = sfloor.f32 %s5343_s21 }
0x2f89   : > { %8718 = vmatprep.subr.bf16.mxu0 %v9189_v39  ;;  %s10766_s5 = smov (!%p5344_p6, %s5345_s5), %s5346_s22 }
0x2f8a   : > { %s5348_s24 = smul.f32 %s9532_s8, %s10766_s5 }
0x2f8c   : > { %8720 = vmatpush3.bf16.msra.mxu0 %v9600_v40  ;;  %s5349_s10 = ssub.f32 %s5342_s0, %s5348_s24 }
0x2f8d   : > { %8721 = vmatprep.subr.bf16.mxu0 %v9189_v39 }
0x2f8e   : > { %s5350_s25 = smul.f32 %s5349_s10, %s5349_s10 }
0x2f90   : > { %8723 = vmatpush3.bf16.msra.mxu0 %v9610_v42  ;;  %s5351_s15 = ssub.f32 0.0, %s5350_s25 }
0x2f91   : > { %8724 = vmatprep.subr.bf16.mxu0 %v9189_v39 }
0x2f92   : > { %s5352_s3 = smul.f32 500000.0, %s5351_s15 }
0x2f94   : > { %8726 = vmatpush3.bf16.msra.mxu0 %v9616_v43 }
0x2f95   : > { %8739 = vmatprep.subr.bf16.mxu0 %v9189_v39 }
0x305a   : > { %v4911_v3 = vpop.f32.mrb[50].mxu0 }
0x305b   : > { %v4912_v27 = vadd.f32 %v4911_v3, %v9530_v28  ;;  %v7795_v5 = vpop.f32.mrb[51].mxu0 }
0x305d   : > { %v4921_v9 = vadd.f32 %v4919_v23, %v4912_v27 }
0x305f   : > { %9040 = vtanh.f32 %v4921_v9 }
0x3069   : > { %v9041_v36 = vpop.eup %9040 }
0x306a   : > { %7813 = vmatmul.mubr.msk.f32.vlgmr.msra.gmra.mrb[50].mxu1 %vm299_vm2, %v9041_v36 }
0x306b   : > { %8729 = vmatpush3.bf16.msra.mxu1 %v9635_v44  ;;  %7850 = vmatprep.mubr.msk.f32.mxu1 %vm9190_vm6, %v9191_v41 }
0x306c   : > { %8730 = vmatprep.subr.bf16.mxu1 %v9189_v39 }
0x306f   : > { %8732 = vmatpush3.bf16.msra.mxu1 %v9641_v46 }
0x3070   : > { %8733 = vmatprep.subr.bf16.mxu1 %v9189_v39 }
0x3073   : > { %8735 = vmatpush3.bf16.msra.mxu1 %v9646_v63 }
0x3074   : > { %8736 = vmatprep.subr.bf16.mxu1 %v9189_v39 }
0x3077   : > { %8738 = vmatpush3.bf16.msra.mxu1 %v9652_v0 }
0x3078   : > { %8751 = vmatprep.subr.bf16.mxu1 %v9189_v39 }
0x313d   : > { %v4998_v17 = vpop.f32.mrb[50].mxu1 }
0x313e   : > { %v4999_v13 = vadd.f32 %v4998_v17, %v4927_v6  ;;  %v7814_v4 = vpop.f32.mrb[51].mxu1  ;;  %v4687_v17 = vmul.f32 %v4686_v14, %v9538_v33 }
0x3140   : > { %v5002_v15 = vmul.f32 %v4999_v13, %v9730_v7  ;;  %v5004_v20 = vmul.f32 %v4999_v13, %v9686_v12  ;;  %v5235_v13 = vrot.slane %v4687_v17, %v9658_v2 }
0x3142   : > { %v5003_v25 = vadd.f32 %v5002_v15, %v4839_v19  ;;  %v5005_v8 = vadd.f32 %v5004_v20, %v10438_v11 }
0x3144   : > { %7832 = vmatmul.mubr.msk.f32.vlgmr.msra.gmra.mrb[52].mxu0 %vm299_vm2, %v5005_v8 }
0x3145   : > { %8741 = vmatpush3.bf16.msra.mxu0 %v9593_v38  ;;  %7869 = vmatprep.mubr.msk.f32.mxu0 %vm9190_vm6, %v9191_v41 }
0x3146   : > { %8742 = vmatprep.subr.bf16.mxu0 %v9189_v39 }
0x3149   : > { %8744 = vmatpush3.bf16.msra.mxu0 %v9600_v40 }
0x314a   : > { %8745 = vmatprep.subr.bf16.mxu0 %v9189_v39 }
0x314d   : > { %8747 = vmatpush3.bf16.msra.mxu0 %v9610_v42 }
0x314e   : > { %8748 = vmatprep.subr.bf16.mxu0 %v9189_v39 }
0x3151   : > { %8750 = vmatpush3.bf16.msra.mxu0 %v9616_v43 }
0x3152   : > { %8763 = vmatprep.subr.bf16.mxu0 %v9189_v39 }
0x3217   : > { %v5075_v18 = vpop.f32.mrb[52].mxu0 }
0x3218   : > { %v5076_v26 = vadd.f32 %v5075_v18, %v9530_v28  ;;  %v7833_v30 = vpop.f32.mrb[53].mxu0 }
0x321a   : > { %v5079_v21 = vadd.f32 %v5076_v26, %v4919_v23 }
0x321c   : > { %9042 = vtanh.f32 %v5079_v21 }
0x3226   : > { %v9043_v31 = vpop.eup %9042 }
0x3227   : > { %7851 = vmatmul.mubr.msk.f32.vlgmr.msra.gmra.mrb[52].mxu1 %vm299_vm2, %v9043_v31 }
0x3228   : > { %8753 = vmatpush3.bf16.msra.mxu1 %v9635_v44  ;;  %7888 = vmatprep.mubr.msk.f32.mxu1 %vm9190_vm6, %v9191_v41 }
0x3229   : > { %8754 = vmatprep.subr.bf16.mxu1 %v9189_v39 }
0x322c   : > { %8756 = vmatpush3.bf16.msra.mxu1 %v9641_v46 }
0x322d   : > { %8757 = vmatprep.subr.bf16.mxu1 %v9189_v39 }
0x3230   : > { %8759 = vmatpush3.bf16.msra.mxu1 %v9646_v63 }
0x3231   : > { %8760 = vmatprep.subr.bf16.mxu1 %v9189_v39 }
0x3234   : > { %8762 = vmatpush3.bf16.msra.mxu1 %v9652_v0 }
0x3235   : > { %8775 = vmatprep.subr.bf16.mxu1 %v9189_v39 }
0x32fa   : > { %v5150_v23 = vpop.f32.mrb[52].mxu1 }
0x32fb   : > { %v5151_v3 = vadd.f32 %v5150_v23, %v4927_v6  ;;  %v7852_v27 = vpop.f32.mrb[53].mxu1 }
0x32fd   : > { %v5154_v5 = vmul.f32 %v5151_v3, %v9730_v7  ;;  %v5156_v9 = vmul.f32 %v5151_v3, %v9760_v24 }
0x32ff   : > { %v5155_v36 = vadd.f32 %v5154_v5, %v5003_v25  ;;  %v5157_v10 = vadd.f32 %v5156_v9, %v10438_v11  ;;  %v4681_v11 = vstv %s4680_s9 }
0x3300   : > { %v4682_v35 = vmul.f32 1.442695, %v4681_v11 }
0x3301   : > { %7870 = vmatmul.mubr.msk.f32.vlgmr.msra.gmra.mrb[54].mxu0 %vm299_vm2, %v5157_v10 }
0x3302   : > { %8765 = vmatpush3.bf16.msra.mxu0 %v9593_v38  ;;  %7907 = vmatprep.mubr.msk.f32.mxu0 %vm9190_vm6, %v9191_v41  ;;  %9044 = vpow2.f32 %v4682_v35 }
0x3303   : > { %8766 = vmatprep.subr.bf16.mxu0 %v9189_v39 }
0x3306   : > { %8768 = vmatpush3.bf16.msra.mxu0 %v9600_v40 }
0x3307   : > { %8769 = vmatprep.subr.bf16.mxu0 %v9189_v39 }
0x330a   : > { %8771 = vmatpush3.bf16.msra.mxu0 %v9610_v42 }
0x330b   : > { %8772 = vmatprep.subr.bf16.mxu0 %v9189_v39 }
0x330c   : > { %v9045_v6 = vpop.eup %9044 }
0x330d   : > { %8889 = vpush %v9045_v6 }
0x330e   : > { %8774 = vmatpush3.bf16.msra.mxu0 %v9616_v43 }
0x330f   : > { %8787 = vmatprep.subr.bf16.mxu0 %v9189_v39 }
0x333e   : > { %s8890_s26 = spop %8889 }
0x333f   : > { %s4685_s16 = smul.f32 %s8890_s26, %s9550_s17 }
0x3341   : > { %v4688_v8 = vstv %s4685_s16 }
0x3342   : > { %v4689_v18 = vadd.f32 %v4688_v8, %v9555_v16 }
0x3344   : > { %v5243_v26 = vrot.slane %v4689_v18, %v9658_v2 }
0x33d4   : > { %v5227_v4 = vpop.f32.mrb[54].mxu0 }
0x33d5   : > { %v5228_v19 = vadd.f32 %v5227_v4, %v9530_v28  ;;  %v7871_v15 = vpop.f32.mrb[55].mxu0 }
0x33d6   : > { %v5338_v15 = vstv %s5322_s28 }
0x33d7   : > { %v5237_v20 = vadd.f32 %v5235_v13, %v5228_v19 }
0x33d9   : > { %9046 = vtanh.f32 %v5237_v20  ;;  %v5339_v20 = vmul.f32 %v5338_v15, %v9538_v33 }
0x33e3   : > { %v9047_v25 = vpop.eup %9046 }
0x33e4   : > { %7889 = vmatmul.mubr.msk.f32.vlgmr.msra.gmra.mrb[54].mxu1 %vm299_vm2, %v9047_v25  ;;  %v5591_v25 = vrot.slane %v5339_v20, %v9658_v2 }
0x33e5   : > { %8777 = vmatpush3.bf16.msra.mxu1 %v9635_v44  ;;  %7926 = vmatprep.mubr.msk.f32.mxu1 %vm9190_vm6, %v9191_v41 }
0x33e6   : > { %8778 = vmatprep.subr.bf16.mxu1 %v9189_v39 }
0x33e9   : > { %8780 = vmatpush3.bf16.msra.mxu1 %v9641_v46 }
0x33ea   : > { %8781 = vmatprep.subr.bf16.mxu1 %v9189_v39 }
0x33ed   : > { %8783 = vmatpush3.bf16.msra.mxu1 %v9646_v63 }
0x33ee   : > { %8784 = vmatprep.subr.bf16.mxu1 %v9189_v39 }
0x33f1   : > { %8786 = vmatpush3.bf16.msra.mxu1 %v9652_v0 }
0x33f2   : > { %8799 = vmatprep.subr.bf16.mxu1 %v9189_v39 }
0x34b7   : > { %v5314_v30 = vpop.f32.mrb[54].mxu1 }
0x34b8   : > { %v5315_v21 = vadd.f32 %v5314_v30, %v5243_v26  ;;  %v7890_v31 = vpop.f32.mrb[55].mxu1 }
0x34ba   : > { %v5318_v23 = vmul.f32 %v5315_v21, %v9726_v1 }
0x34bc   : > { %v10566_v3 = vadd.f32 %v5318_v23, %v5155_v36 }
0x34be   : > { %7908 = vmatmul.mubr.msk.f32.vlgmr.msra.gmra.mrb[56].mxu0 %vm299_vm2, %v10566_v3 }
0x34bf   : > { %8789 = vmatpush3.bf16.msra.mxu0 %v9593_v38  ;;  %7945 = vmatprep.mubr.msk.f32.mxu0 %vm9190_vm6, %v9191_v41 }
0x34c0   : > { %8790 = vmatprep.subr.bf16.mxu0 %v9189_v39 }
0x34c3   : > { %8792 = vmatpush3.bf16.msra.mxu0 %v9600_v40 }
0x34c4   : > { %8793 = vmatprep.subr.bf16.mxu0 %v9189_v39 }
0x34c7   : > { %8795 = vmatpush3.bf16.msra.mxu0 %v9610_v42 }
0x34c8   : > { %8796 = vmatprep.subr.bf16.mxu0 %v9189_v39 }
0x34cb   : > { %8798 = vmatpush3.bf16.msra.mxu0 %v9616_v43 }
0x34cc   : > { %8811 = vmatprep.subr.bf16.mxu0 %v9189_v39 }
0x3591   : > { %v5431_v27 = vpop.f32.mrb[56].mxu0 }
0x3592   : > { %v5432_v5 = vadd.f32 %v5431_v27, %v9530_v28  ;;  %v7909_v9 = vpop.f32.mrb[57].mxu0 }
0x3594   : > { %v5435_v36 = vadd.f32 %v5432_v5, %v5235_v13  ;;  %v5333_v13 = vstv %s5332_s13 }
0x3595   : > { %v5334_v4 = vmul.f32 1.442695, %v5333_v13 }
0x3596   : > { %9048 = vtanh.f32 %v5435_v36 }
0x3597   : > { %9050 = vpow2.f32 %v5334_v4 }
0x35a0   : > { %v9049_v10 = vpop.eup %9048 }
0x35a1   : > { %7927 = vmatmul.mubr.msk.f32.vlgmr.msra.gmra.mrb[56].mxu1 %vm299_vm2, %v9049_v10  ;;  %v9051_v19 = vpop.eup %9050 }
0x35a2   : > { %8801 = vmatpush3.bf16.msra.mxu1 %v9635_v44  ;;  %7964 = vmatprep.mubr.msk.f32.mxu1 %vm9190_vm6, %v9191_v41  ;;  %8891 = vpush %v9051_v19 }
0x35a3   : > { %8802 = vmatprep.subr.bf16.mxu1 %v9189_v39 }
0x35a6   : > { %8804 = vmatpush3.bf16.msra.mxu1 %v9641_v46 }
0x35a7   : > { %8805 = vmatprep.subr.bf16.mxu1 %v9189_v39 }
0x35aa   : > { %8807 = vmatpush3.bf16.msra.mxu1 %v9646_v63 }
0x35ab   : > { %8808 = vmatprep.subr.bf16.mxu1 %v9189_v39 }
0x35ae   : > { %8810 = vmatpush3.bf16.msra.mxu1 %v9652_v0 }
0x35af   : > { %8823 = vmatprep.subr.bf16.mxu1 %v9189_v39 }
0x35d3   : > { %s8892_s1 = spop %8891 }
0x35d4   : > { %s5337_s23 = smul.f32 %s8892_s1, %s9550_s17 }
0x35d6   : > { %v5340_v31 = vstv %s5337_s23 }
0x35d7   : > { %v5341_v23 = vadd.f32 %v5340_v31, %v9555_v16 }
0x35d9   : > { %v5599_v27 = vrot.slane %v5341_v23, %v9658_v2 }
0x3674   : > { %v5506_v11 = vpop.f32.mrb[56].mxu1 }
0x3675   : > { %v5507_v35 = vadd.f32 %v5506_v11, %v5243_v26  ;;  %v7928_v6 = vpop.f32.mrb[57].mxu1 }
0x3677   : > { %v5512_v14 = vmul.f32 %v5507_v35, %v9686_v12  ;;  %v5510_v5 = vmul.f32 %v5507_v35, %v9726_v1 }
0x3679   : > { %v5513_v17 = vadd.f32 %v5512_v14, %v10566_v3  ;;  %v5511_v11 = vadd.f32 %v5510_v5, %v10566_v3 }
0x367b   : > { %7946 = vmatmul.mubr.msk.f32.vlgmr.msra.gmra.mrb[58].mxu0 %vm299_vm2, %v5513_v17 }
0x367c   : > { %8813 = vmatpush3.bf16.msra.mxu0 %v9593_v38  ;;  %7983 = vmatprep.mubr.msk.f32.mxu0 %vm9190_vm6, %v9191_v41 }
0x367d   : > { %8814 = vmatprep.subr.bf16.mxu0 %v9189_v39 }
0x3680   : > { %8816 = vmatpush3.bf16.msra.mxu0 %v9600_v40 }
0x3681   : > { %8817 = vmatprep.subr.bf16.mxu0 %v9189_v39 }
0x3684   : > { %8819 = vmatpush3.bf16.msra.mxu0 %v9610_v42 }
0x3685   : > { %8820 = vmatprep.subr.bf16.mxu0 %v9189_v39 }
0x3688   : > { %8822 = vmatpush3.bf16.msra.mxu0 %v9616_v43 }
0x3689   : > { %8835 = vmatprep.subr.bf16.mxu0 %v9189_v39 }
0x374e   : > { %v5583_v8 = vpop.f32.mrb[58].mxu0 }
0x374f   : > { %v5584_v18 = vadd.f32 %v5583_v8, %v9530_v28  ;;  %v7947_v26 = vpop.f32.mrb[59].mxu0 }
0x3751   : > { %v5593_v30 = vadd.f32 %v5591_v25, %v5584_v18 }
0x3753   : > { %9052 = vtanh.f32 %v5593_v30 }
0x375d   : > { %v9053_v21 = vpop.eup %9052 }
0x375e   : > { %7965 = vmatmul.mubr.msk.f32.vlgmr.msra.gmra.mrb[58].mxu1 %vm299_vm2, %v9053_v21 }
0x375f   : > { %8825 = vmatpush3.bf16.msra.mxu1 %v9635_v44  ;;  %8002 = vmatprep.mubr.msk.f32.mxu1 %vm9190_vm6, %v9191_v41 }
0x3760   : > { %8826 = vmatprep.subr.bf16.mxu1 %v9189_v39 }
0x3763   : > { %8828 = vmatpush3.bf16.msra.mxu1 %v9641_v46 }
0x3764   : > { %8829 = vmatprep.subr.bf16.mxu1 %v9189_v39 }
0x3767   : > { %8831 = vmatpush3.bf16.msra.mxu1 %v9646_v63 }
0x3768   : > { %8832 = vmatprep.subr.bf16.mxu1 %v9189_v39 }
0x376b   : > { %8834 = vmatpush3.bf16.msra.mxu1 %v9652_v0 }
0x376c   : > { %8847 = vmatprep.subr.bf16.mxu1 %v9189_v39 }
0x3831   : > { %v5670_v9 = vpop.f32.mrb[58].mxu1 }
0x3832   : > { %v5671_v36 = vadd.f32 %v5670_v9, %v5599_v27  ;;  %v7966_v10 = vpop.f32.mrb[59].mxu1 }
0x3833   : > { %v9192_v10 = vmov 0  }
0x3834   : > { %v5674_v6 = vmul.f32 %v5671_v36, %v9730_v7  ;;  %v5676_v14 = vmul.f32 %v5671_v36, %v9686_v12  ;;  %8963 = vset.pattern.permute.xlu0 %v9192_v10 }
0x3836   : > { %v5675_v17 = vadd.f32 %v5674_v6, %v5511_v11  ;;  %v5677_v13 = vadd.f32 %v5676_v14, %v10566_v3 }
0x3838   : > { %7984 = vmatmul.mubr.msk.f32.vlgmr.msra.gmra.mrb[60].mxu0 %vm299_vm2, %v5677_v13 }
0x3839   : > { %8837 = vmatpush3.bf16.msra.mxu0 %v9593_v38  ;;  %8021 = vmatprep.mubr.msk.f32.mxu0 %vm9190_vm6, %v9191_v41 }
0x383a   : > { %8838 = vmatprep.subr.bf16.mxu0 %v9189_v39 }
0x383d   : > { %8840 = vmatpush3.bf16.msra.mxu0 %v9600_v40 }
0x383e   : > { %8841 = vmatprep.subr.bf16.mxu0 %v9189_v39 }
0x3841   : > { %8843 = vmatpush3.bf16.msra.mxu0 %v9610_v42 }
0x3842   : > { %8844 = vmatprep.subr.bf16.mxu0 %v9189_v39 }
0x3845   : > { %8846 = vmatpush3.bf16.msra.mxu0 %v9616_v43 }
0x390b   : > { %v5747_v12 = vpop.f32.mrb[60].mxu0 }
0x390c   : > { %v5748_v35 = vadd.f32 %v5747_v12, %v9530_v28  ;;  %v7985_v4 = vpop.f32.mrb[61].mxu0 }
0x390e   : > { %v5751_v38 = vadd.f32 %v5748_v35, %v5591_v25 }
0x3910   : > { %9054 = vtanh.f32 %v5751_v38 }
0x391a   : > { %v9055_v19 = vpop.eup %9054 }
0x391b   : > { %8003 = vmatmul.mubr.msk.f32.vlgmr.msra.gmra.mrb[60].mxu1 %vm299_vm2, %v9055_v19 }
0x391c   : > { %8849 = vmatpush3.bf16.msra.mxu1 %v9635_v44  ;;  %8040 = vmatprep.mubr.msk.f32.mxu1 %vm9190_vm6, %v9191_v41 }
0x391d   : > { %8850 = vmatprep.subr.bf16.mxu1 %v9189_v39 }
0x3920   : > { %8852 = vmatpush3.bf16.msra.mxu1 %v9641_v46 }
0x3921   : > { %8853 = vmatprep.subr.bf16.mxu1 %v9189_v39 }
0x3924   : > { %8855 = vmatpush3.bf16.msra.mxu1 %v9646_v63 }
0x3925   : > { %8856 = vmatprep.subr.bf16.mxu1 %v9189_v39  ;;  %v5353_v39 = vstv %s5352_s3 }
0x3926   : > { %v5354_v46 = vmul.f32 1.442695, %v5353_v39 }
0x3928   : > { %8858 = vmatpush3.bf16.msra.mxu1 %v9652_v0  ;;  %9056 = vpow2.f32 %v5354_v46  ;;  %v5358_v0 = vstv %s5342_s0 }
0x3929   : > { %v5359_v35 = vmul.f32 %v5358_v0, %v9538_v33  }
0x3932   : > { %v9057_v63 = vpop.eup %9056 }
0x3933   : > { %8893 = vpush %v9057_v63 }
0x3964   : > { %s8894_s2 = spop %8893 }
0x3965   : > { %s5357_s9 = smul.f32 %s8894_s2, %s9550_s17 }
0x3967   : > { %v5360_v26 = vstv %s5357_s9 }
0x3968   : > { %v5361_v30 = vadd.f32 %v5360_v26, %v9555_v16  }
0x396a   : > { %v5915_v21 = vrot.slane %v5361_v30, %v9658_v2 }
0x39ee   : > { %v5822_v40 = vpop.f32.mrb[60].mxu1 }
0x39ef   : > { %v5823_v42 = vadd.f32 %v5822_v40, %v5599_v27  ;;  %v8004_v43 = vpop.f32.mrb[61].mxu1 }
0x39f1   : > { %v5826_v44 = vmul.f32 %v5823_v42, %v9730_v7  ;;  %v5828_v41 = vmul.f32 %v5823_v42, %v9760_v24  ;;  %v5907_v7 = vrot.slane %v5359_v35, %v9658_v2 }
0x39f3   : > { %v5829_v15 = vadd.f32 %v5828_v41, %v10566_v3  ;;  %v5827_v20 = vadd.f32 %v5826_v44, %v5675_v17 }
0x39f5   : > { %8022 = vmatmul.mubr.msk.f32.vlgmr.msra.gmra.mrb[62].mxu0 %vm299_vm2, %v5829_v15 }
0x3ac8   : > { %v5899_v24 = vpop.f32.mrb[62].mxu0 }
0x3ac9   : > { %v5900_v3 = vadd.f32 %v5899_v24, %v9530_v28  ;;  %v8023_v25 = vpop.f32.mrb[63].mxu0 }
0x3acb   : > { %v5909_v8 = vadd.f32 %v5907_v7, %v5900_v3 }
0x3acd   : > { %9058 = vtanh.f32 %v5909_v8 }
0x3ad7   : > { %v9059_v18 = vpop.eup %9058 }
0x3ad8   : > { %8041 = vmatmul.mubr.msk.f32.vlgmr.msra.gmra.mrb[62].mxu1 %vm299_vm2, %v9059_v18 }
0x3bab   : > { %v5986_v31 = vpop.f32.mrb[62].mxu1 }
0x3bac   : > { %v5987_v23 = vadd.f32 %v5986_v31, %v5915_v21  ;;  %v8042_v27 = vpop.f32.mrb[63].mxu1 }
0x3bae   : > { %v5990_v5 = vmul.f32 %v5987_v23, %v9726_v1 }
0x3bb0   : > { %v5991_v23 = vadd.f32 %v5990_v5, %v5827_v20   ;;  %v5992_v20 = vstv %s9178_s14  ;;  %s588_s14 = sadd.s32 1, %s9178_s14  }
0x3bb1   : > { %vm5993_vm8 = vcmp.eq.s32.totalorder %v9563_v34, %v5992_v20  ;;  %p585_p7 = scmp.ge.s32.totalorder %s588_s14, 8   ;;  %v10731_v20 = vmov %v5361_v30 }
0x3bb2   : > { %v5994_v9 = vmul.f32 %v9520_v22, %v5991_v23  ;;  %s9193_s26 = smov (%p585_p7), [#allocation11]  }
0x3bb3   :  { %s6030_s16 = sshll.u32 (%p585_p7), %s9193_s26, 4  ;;  %s6031_s16 = int_to_ptr.vmem [resolvable:$true] %s6030_s16 }
0x3bb4   : > { %v5995_v36 = vsel %vm299_vm2, %v5994_v9, 0.0  ;;  %s9110_s18 = scalar_lea.vmem (%p585_p7), %s6031_s16, 128  ;;  %p9115_p9 = scmp.lt.s32.totalorder (%p585_p7), %s6031_s16, %s6031_s16 }
0x3bb5   : > { %5996 = vadd.xlane.f32.xlu0 %v5995_v36  ;;  %p9111_p8 = scmp.ne.s32.totalorder (%p585_p7), %s6031_s16, %s9110_s18  ;;  %p9116_p10 = scmp.lt.s32.totalorder (%p585_p7), %s9110_s18, %s9110_s18 }
0x3bb7   :  { %p9117_p11 = por (%p585_p7), %p9116_p10, %p9115_p9 }
0x3bb9   :  { %p9118_p12 = pnand (%p585_p7), %p9117_p11, %p9111_p8 }
0x3c42   : > { %v5997_v11 = vpop.xlane.xlu0 %5996 }
0x3c43   : > { %v5998_v6 = vadd.f32 %v9547_v45, %v5997_v11 }
0x3c45   : > { %v6000_v14 = vand.u32 2147483647, %v5998_v6  ;;  %v5999_v43 = vmax.f32 %v5998_v6, 0.0 }
0x3c47   : > { %v6001_v17 = vsub.f32 0.0, %v6000_v14 }
0x3c49   : > { %v6002_v13 = vmul.f32 1.442695, %v6001_v17 }
0x3c4b   : > { %9060 = vpow2.f32 %v6002_v13 }
0x3c55   : > { %v9061_v2 = vpop.eup %9060 }
0x3c56   : > { %v6004_v12 = vadd.f32 1.0, %v9061_v2  ;;  %v6007_v1 = vmul.f32 -0.5, %v9061_v2  ;;  %v6010_v38 = vand.u32 2147483647, %v9061_v2 }
0x3c58   : > { %9062 = vlog2.f32 %v6004_v12  ;;  %v6008_v4 = vadd.f32 1.0, %v6007_v1  ;;  %vm6011_vm7 = vcmp.lt.f32.partialorder %v6010_v38, 0.0004427343 }
0x3c5a   : > { %v6009_v42 = vmul.f32 %v9061_v2, %v6008_v4 }
0x3c62   : > { %v9063_v19 = vpop.eup %9062 }
0x3c63   : > { %v6006_v40 = vmul.f32 0.6931472, %v9063_v19 }
0x3c65   : > { %v6012_v44 = vsel %vm6011_vm7, %v6009_v42, %v6006_v40 }
0x3c66   : > { %v6013_v41 = vadd.f32 %v6012_v44, %v5999_v43 }
0x3c68   : > { %v6014_v15 = vadd.f32 %v6013_v41, %v9559_v29 }
0x3c6a   : > { %6019 = vperm.xlu0 %8963, %v6014_v15  }
0x3ce5   :  { %587 = sbr.rel (!%p585_p7) target bundleno = 1025 (0x401), region = 115 }
0x3ce9   : > { %v6020_v39 = vpop.permute.xlu0 %6019 }
0x3cea   : > { %v6022_v46 = vsel %vm5993_vm8, %v6020_v39, %v9170_v37  }
0x3ceb   : > { %v10732_v37 = vmov %v6022_v46  ;;  %6023 = vst.msk [vmem:[#allocation11] sm:$0xff] (%p585_p7), %vm122_vm0, %v6022_v46 }
0x3cec   :  { %9121 = shalt.err (!%p9118_p12)
}
0x3ced   :  { %s9122_s4 = scalar_lea.hbm %s10721_s19, 128 }
0x3cee   :  { %p9123_p13 = scmp.ne.s32.totalorder %s10721_s19, %s9122_s4  ;;  %p9126_p0 = scmp.lt.u32.totalorder %s9122_s4, %s10721_s19 }
0x3cf0   :  { %p9128_p1 = pnand %p9126_p0, %p9123_p13 }
0x3cf2   :  { %9131 = shalt.err (!%p9128_p1)
}
0x3cf3   :  { %6033 = dma.vmem_to_hbm [thread:$0]  %s6031_s16, 128, %s10721_s19, [#allocation6]  }
0x3cf4   :  { %9158 = dma.done.wait [#allocation6], 128  }
0x3cf5   :  { %9159 = vsyncadd [#allocation6], 4294967168 }
0x3cf6   :  { %6037 = vsyncpa [#allocation5], 1 }
0x3cf7   :  { %6038 = vsyncpa [#allocation6], 1 }
0x3cf8   :  { %6039 = vsyncpa [#allocation7], 1 }
0x3cf9   :  { %6040 = vsyncpa [#allocation9], 1 }

</bundles_post_ra>
